<compile_context>
chip_gen: v7x
topology: tpu7x:2x2x1
jax: 0.10.0
libtpu: 0.0.40
codegen_flags: <defaults>
</compile_context>

<pallas_src>
import functools
import math

import jax
import jax.numpy as jnp
from jax.experimental import pallas as pl
from jax.experimental.pallas import tpu as pltpu


# ---------------------------------------------------------------------------
# Pallas kernels
# ---------------------------------------------------------------------------

def conv3x3_kernel(xp_ref, w_ref, b_ref, o_ref, *, H, W):
    """3x3 / pad-1 conv as 9 shifted (M, C) @ (C, N) MXU matmuls (no im2col).

    xp_ref: (tile_B, H+2, W+2, C) bf16 — spatially pre-padded NHWC halo block
    w_ref : (9, C, N) bf16 — tap-major (kh*3 + kw), resident across the grid
    b_ref : (1, N) f32
    o_ref : (tile_B*H*W, N) — channels-last, lane-dense output
    """
    tb = xp_ref.shape[0]
    C = xp_ref.shape[3]
    N = o_ref.shape[1]
    M = tb * H * W
    acc = jnp.zeros((M, N), jnp.float32)
    for kh in range(3):
        for kw in range(3):
            x = xp_ref[:, kh:kh + H, kw:kw + W, :].reshape(M, C)
            acc = acc + jnp.dot(x, w_ref[kh * 3 + kw],
                                preferred_element_type=jnp.float32)
    o_ref[...] = (acc + b_ref[...]).astype(o_ref.dtype)


def memory_kernel(qi_ref, mi_ref, mo_ref, mem_ref, m_sc, l_sc, acc_sc, *, scale):
    """STM memory read, tiled over THW with an online (flash-style) softmax.

    qi_ref : (1, HW, D_e)      query keys, channels-last (resident over chunks)
    mi_ref : (1, D_e, t_chunk) memory-key chunk
    mo_ref : (1, D_o, t_chunk) memory-value chunk
    mem_ref: (1, HW, D_o)      readout (written on the last chunk)

    Matches softmax over the full THW axis of  q·k / sqrt(D_e).
    """
    t = pl.program_id(1)

    @pl.when(t == 0)
    def _():
        m_sc[...] = jnp.full_like(m_sc, -jnp.inf)
        l_sc[...] = jnp.zeros_like(l_sc)
        acc_sc[...] = jnp.zeros_like(acc_sc)

    # (HW, D_e) @ (D_e, t_chunk) -> (HW, t_chunk), f32 accumulation on the MXU.
    s = jnp.dot(qi_ref[0], mi_ref[0],
                preferred_element_type=jnp.float32) * scale
    m_prev = m_sc[...]
    m_new = jnp.maximum(m_prev, jnp.max(s, axis=1, keepdims=True))    # (HW, 1)
    alpha = jnp.exp(m_prev - m_new)
    p = jnp.exp(s - m_new)                                            # (HW, t_chunk)
    l_sc[...] = alpha * l_sc[...] + jnp.sum(p, axis=1, keepdims=True)
    # (HW, t) x (D_o, t) contracted on t -> (HW, D_o); bf16 operands, f32 acc.
    acc_sc[...] = alpha * acc_sc[...] + jax.lax.dot_general(
        p.astype(mo_ref.dtype), mo_ref[0],
        dimension_numbers=(((1,), (1,)), ((), ())),
        preferred_element_type=jnp.float32)
    m_sc[...] = m_new

    @pl.when(t == pl.num_programs(1) - 1)
    def _():
        mem_ref[0] = (acc_sc[...] *
                      pl.reciprocal(l_sc[...], approx=True)).astype(mem_ref.dtype)


def pred_agg_kernel(xp_ref, w_ref, b_ref, logit_ref, *, H, W, K):
    """Fused pred head: 3x3 conv -> 2-class channel softmax -> Soft_aggregation.

    xp_ref   : (tile_B, H+2, W+2, C) bf16 padded NHWC memory readout
    w_ref    : (9, C, 2) bf16, b_ref: (1, 2) f32
    logit_ref: (tile_B*H*W, K) f32 log-odds (em clamp + logit of the reference)
    """
    tb = xp_ref.shape[0]
    C = xp_ref.shape[3]
    M = tb * H * W
    acc = jnp.zeros((M, 2), jnp.float32)
    for kh in range(3):
        for kw in range(3):
            x = xp_ref[:, kh:kh + H, kw:kw + W, :].reshape(M, C)
            acc = acc + jnp.dot(x, w_ref[kh * 3 + kw],
                                preferred_element_type=jnp.float32)
    logits = acc + b_ref[...]
    # softmax over the 2 classes; class-1 prob == sigmoid of the margin (f32).
    ps = jax.nn.sigmoid(logits[:, 1:2] - logits[:, 0:1])              # (M, 1)
    eps = 1e-7
    em1 = jnp.clip(ps, eps, 1.0 - eps)
    em0 = jnp.clip(1.0 - ps, eps, 1.0 - eps)
    l1 = jnp.log(em1 / (1.0 - em1))
    l0 = jnp.log(em0 / (1.0 - em0))
    l_bg = jnp.float32(math.log(eps / (1.0 - eps)))                   # empty slots
    k_idx = jax.lax.broadcasted_iota(jnp.int32, (M, K), 1)
    logit_ref[...] = jnp.where(k_idx == 0, l0, jnp.where(k_idx == 1, l1, l_bg))


# ---------------------------------------------------------------------------
# Wrappers (glue: layout prep + pallas_call setup)
# ---------------------------------------------------------------------------

def _round_up(x, m):
    return (x + m - 1) // m * m


def _pick_tile_b(B, H, W, C, N, budget=6 << 20):
    """Largest divisor of B whose halo + output blocks stay well inside VMEM
    and whose M block (tile_B*H*W) keeps the (8, 128) sublane alignment."""
    for tb in range(B, 0, -1):
        if B % tb:
            continue
        if tb != B and (tb * H * W) % 8 != 0:
            continue
        if tb * ((H + 2) * (W + 2) * C * 2 + H * W * N * 4) <= budget or tb == 1:
            return tb
    return B


def _prep_conv_weights(w_oihw, bias, n_pad):
    """(outC, C, 3, 3) OIHW + (outC,) bias -> (9, C, n_pad) bf16, (1, n_pad) f32."""
    outC, C = w_oihw.shape[0], w_oihw.shape[1]
    wm = jnp.transpose(w_oihw, (2, 3, 1, 0)).reshape(9, C, outC)
    if n_pad > outC:
        wm = jnp.pad(wm, ((0, 0), (0, 0), (0, n_pad - outC)))
        bias = jnp.pad(bias, (0, n_pad - outC))
    return wm.astype(jnp.bfloat16), bias.reshape(1, n_pad).astype(jnp.float32)


def conv3x3_cl(xp, wm, bm, H, W, out_dtype=jnp.bfloat16):
    """xp: (B, H+2, W+2, C) bf16 padded NHWC -> (B*H*W, N) channels-last."""
    B, _, _, C = xp.shape
    N = wm.shape[2]
    tb = _pick_tile_b(B, H, W, C, N)
    return pl.pallas_call(
        functools.partial(conv3x3_kernel, H=H, W=W),
        out_shape=jax.ShapeDtypeStruct((B * H * W, N), out_dtype),
        grid=(B // tb,),
        in_specs=[
            pl.BlockSpec((tb, H + 2, W + 2, C), lambda i: (i, 0, 0, 0)),
            pl.BlockSpec((9, C, N), lambda i: (0, 0, 0)),
            pl.BlockSpec((1, N), lambda i: (0, 0)),
        ],
        out_specs=pl.BlockSpec((tb * H * W, N), lambda i: (i, 0)),
        compiler_params=pltpu.CompilerParams(dimension_semantics=("parallel",)),
    )(xp, wm, bm)


def memory_read(q_cl, mi, mo):
    """Memory.forward readout (the unused viz tensor p is not materialized).

    q_cl: (B, HW, D_e) bf16   mi: (B, D_e, THW) bf16   mo: (B, D_o, THW) bf16
    returns mem: (B, HW, D_o) bf16, channels-last.
    """
    B, HW, D_e = q_cl.shape
    D_o = mo.shape[1]
    THW = mi.shape[2]
    t_chunk = THW
    for cand in (512, 256, 128):
        if THW % cand == 0:
            t_chunk = cand
            break
    n_chunks = THW // t_chunk
    return pl.pallas_call(
        functools.partial(memory_kernel, scale=1.0 / math.sqrt(D_e)),
        out_shape=jax.ShapeDtypeStruct((B, HW, D_o), jnp.bfloat16),
        grid=(B, n_chunks),
        in_specs=[
            pl.BlockSpec((1, HW, D_e), lambda b, t: (b, 0, 0)),
            pl.BlockSpec((1, D_e, t_chunk), lambda b, t: (b, 0, t)),
            pl.BlockSpec((1, D_o, t_chunk), lambda b, t: (b, 0, t)),
        ],
        out_specs=pl.BlockSpec((1, HW, D_o), lambda b, t: (b, 0, 0)),
        scratch_shapes=[
            pltpu.VMEM((HW, 1), jnp.float32),      # running max
            pltpu.VMEM((HW, 1), jnp.float32),      # running denom
            pltpu.VMEM((HW, D_o), jnp.float32),    # readout accumulator
        ],
        compiler_params=pltpu.CompilerParams(
            dimension_semantics=("parallel", "arbitrary")),
    )(q_cl, mi, mo)


def pred_softmax_aggregate(m4p, w_oihw, bias, H, W, K):
    """Fused pred conv + channel softmax + Soft_aggregation -> (B, K, H, W)."""
    B, _, _, C = m4p.shape
    wm, bm = _prep_conv_weights(w_oihw, bias, n_pad=w_oihw.shape[0])
    tb = _pick_tile_b(B, H, W, C, K)
    out = pl.pallas_call(
        functools.partial(pred_agg_kernel, H=H, W=W, K=K),
        out_shape=jax.ShapeDtypeStruct((B * H * W, K), jnp.float32),
        grid=(B // tb,),
        in_specs=[
            pl.BlockSpec((tb, H + 2, W + 2, C), lambda i: (i, 0, 0, 0)),
            pl.BlockSpec((9, C, 2), lambda i: (0, 0, 0)),
            pl.BlockSpec((1, 2), lambda i: (0, 0)),
        ],
        out_specs=pl.BlockSpec((tb * H * W, K), lambda i: (i, 0)),
        compiler_params=pltpu.CompilerParams(dimension_semantics=("parallel",)),
    )(m4p, wm, bm)
    return out.reshape(B, H, W, K).transpose(0, 3, 1, 2)


# ---------------------------------------------------------------------------
# EMN.segment (Pallas-backed core)
# ---------------------------------------------------------------------------

def init_params(key, indim, keydim, valdim):
    ks = jax.random.split(key, 3)
    s = 0.02
    return {
        # KV_Q_r4: KeyValue(indim, keydim, valdim) — two 3x3 convs (fused at call time)
        "kq_key_w": s * jax.random.normal(ks[0], (keydim, indim, 3, 3), jnp.float32),
        "kq_key_b": jnp.zeros((keydim,), jnp.float32),
        "kq_val_w": s * jax.random.normal(ks[1], (valdim, indim, 3, 3), jnp.float32),
        "kq_val_b": jnp.zeros((valdim,), jnp.float32),
        # pred head (Decoder.pred2 equivalent): 2-channel 3x3 conv on memory readout
        "pred_w": s * jax.random.normal(ks[2], (2, 2 * valdim, 3, 3), jnp.float32),
        "pred_b": jnp.zeros((2,), jnp.float32),
    }


def segment(params, frame_r4, keys, values):
    """EMN.segment core with Pallas kernels on the hot path.

    frame_r4: (B, indim, H, W)        query r4 features (Encoder_Q output — see TODO)
    keys    : (B, K, keydim, T, H, W)
    values  : (B, K, valdim, T, H, W)
    returns logit: (B, K, H, W)
    """
    B, K, keydim, T, H, W = keys.shape
    valdim = values.shape[2]
    HW, THW = H * W, T * H * W

    # channels-last + spatial pad + bf16 (one small glue pass over query feats)
    xp = jnp.pad(frame_r4.transpose(0, 2, 3, 1),
                 ((0, 0), (1, 1), (1, 1), (0, 0))).astype(jnp.bfloat16)

    # Fused KV_Q_r4: one matmul produces [key || value], outC padded to 128 lanes.
    w_kv = jnp.concatenate([params["kq_key_w"], params["kq_val_w"]], axis=0)
    b_kv = jnp.concatenate([params["kq_key_b"], params["kq_val_b"]], axis=0)
    n_kv = keydim + valdim
    n_pad = _round_up(n_kv, 128)
    wm, bm = _prep_conv_weights(w_kv, b_kv, n_pad)
    kv = conv3x3_cl(xp, wm, bm, H, W, out_dtype=jnp.bfloat16)        # (B*HW, n_pad)
    kv = kv.reshape(B, HW, n_pad)
    k4 = kv[..., :keydim]                                            # (B, HW, keydim)
    v4 = kv[..., keydim:n_kv]                                        # (B, HW, valdim)

    # Memory read on object slot 1 (reference hard-codes keys[:,1]; needs K >= 2).
    # In a full pipeline the memorize path would already store these in bf16.
    mi = keys[:, 1].reshape(B, keydim, THW).astype(jnp.bfloat16)
    mo = values[:, 1].reshape(B, valdim, THW).astype(jnp.bfloat16)
    mem = memory_read(k4, mi, mo)                                    # (B, HW, valdim)

    # mem_out = cat([mem, q_out], channel), kept channels-last for the pred conv.
    m4 = jnp.concatenate([mem, v4], axis=-1).reshape(B, H, W, 2 * valdim)
    m4p = jnp.pad(m4, ((0, 0), (1, 1), (1, 1), (0, 0)))

    # TODO(synk): ASPP + Decoder (Refine/ResBlock/bilinear) + pad_divide_by omitted;
    # a single fused pred head produces the 2-class softmax + Soft_aggregation.
    logit = pred_softmax_aggregate(m4p, params["pred_w"], params["pred_b"], H, W, K)
    return logit


if __name__ == "__main__":
    B, K, T, H, W = 2, 3, 2, 8, 8
    indim, keydim, valdim = 64, 32, 64

    root = jax.random.PRNGKey(0)
    k_param, k_f, k_k, k_v = jax.random.split(root, 4)

    params = init_params(k_param, indim, keydim, valdim)
    frame_r4 = jax.random.normal(k_f, (B, indim, H, W), jnp.float32)
    keys = jax.random.normal(k_k, (B, K, keydim, T, H, W), jnp.float32)
    values = jax.random.normal(k_v, (B, K, valdim, T, H, W), jnp.float32)

    logit = jax.jit(segment)(params, frame_r4, keys, values)
    jax.block_until_ready(logit)

    assert logit.shape == (B, K, H, W)
    assert bool(jnp.all(jnp.isfinite(logit)))
    print("KERNEL_OK")
</pallas_src>

<mosaic_0001>
module attributes {stable_mosaic.version = 11 : i64} {
  func.func @conv3x3_kernel(%arg0: i32, %arg1: memref<2x10x10x64xbf16, #tpu.memory_space<vmem>>, %arg2: memref<9x64x128xbf16, #tpu.memory_space<vmem>>, %arg3: memref<1x128xf32, #tpu.memory_space<vmem>>, %arg4: memref<128x128xbf16, #tpu.memory_space<vmem>>) attributes {dimension_semantics = [#tpu.dimension_semantics<parallel>], iteration_bounds = array<i64: 1>, scalar_prefetch = 0 : i64, scratch_operands = 0 : i64, tpu.core_type = #tpu.core_type<tc>, window_params = [{transform_indices = @transform_0, window_bounds = array<i64: 2, 10, 10, 64>}, {pipeline_mode = #tpu.pipeline_mode<synchronous>, transform_indices = @transform_1, window_bounds = array<i64: 9, 64, 128>}, {pipeline_mode = #tpu.pipeline_mode<synchronous>, transform_indices = @transform_2, window_bounds = array<i64: 1, 128>}, {transform_indices = @transform_3, window_bounds = array<i64: 128, 128>}]} {
    %cst = arith.constant 0.000000e+00 : f32
    %0 = vector.broadcast %cst : f32 to vector<128x128xf32>
    %c0 = arith.constant 0 : index
    %c0_0 = arith.constant 0 : index
    %c0_1 = arith.constant 0 : index
    %c0_2 = arith.constant 0 : index
    %1 = vector.load %arg1[%c0, %c0_0, %c0_1, %c0_2] : memref<2x10x10x64xbf16, #tpu.memory_space<vmem>>, vector<2x8x8x64xbf16>
    %2 = vector.shape_cast %1 : vector<2x8x8x64xbf16> to vector<128x64xbf16>
    %c0_3 = arith.constant 0 : index
    %c0_4 = arith.constant 0 : index
    %c0_5 = arith.constant 0 : index
    %3 = vector.load %arg2[%c0_3, %c0_4, %c0_5] : memref<9x64x128xbf16, #tpu.memory_space<vmem>>, vector<1x64x128xbf16>
    %4 = vector.shape_cast %3 : vector<1x64x128xbf16> to vector<64x128xbf16>
    %cst_6 = arith.constant dense<0.000000e+00> : vector<128x128xf32>
    %5 = tpu.matmul %2, %4, %cst_6 {dimension_numbers = #tpu.dot_dimension_numbers<[1], [0], [0], [1], [0, 0, 1, 1], [], []>} : vector<128x64xbf16>, vector<64x128xbf16>, vector<128x128xf32> -> vector<128x128xf32>
    %6 = arith.addf %0, %5 : vector<128x128xf32>
    %c0_7 = arith.constant 0 : index
    %c0_8 = arith.constant 0 : index
    %c1 = arith.constant 1 : index
    %c0_9 = arith.constant 0 : index
    %7 = vector.load %arg1[%c0_7, %c0_8, %c1, %c0_9] : memref<2x10x10x64xbf16, #tpu.memory_space<vmem>>, vector<2x8x8x64xbf16>
    %8 = vector.shape_cast %7 : vector<2x8x8x64xbf16> to vector<128x64xbf16>
    %c1_10 = arith.constant 1 : index
    %c0_11 = arith.constant 0 : index
    %c0_12 = arith.constant 0 : index
    %9 = vector.load %arg2[%c1_10, %c0_11, %c0_12] : memref<9x64x128xbf16, #tpu.memory_space<vmem>>, vector<1x64x128xbf16>
    %10 = vector.shape_cast %9 : vector<1x64x128xbf16> to vector<64x128xbf16>
    %cst_13 = arith.constant dense<0.000000e+00> : vector<128x128xf32>
    %11 = tpu.matmul %8, %10, %cst_13 {dimension_numbers = #tpu.dot_dimension_numbers<[1], [0], [0], [1], [0, 0, 1, 1], [], []>} : vector<128x64xbf16>, vector<64x128xbf16>, vector<128x128xf32> -> vector<128x128xf32>
    %12 = arith.addf %6, %11 : vector<128x128xf32>
    %c0_14 = arith.constant 0 : index
    %c0_15 = arith.constant 0 : index
    %c2 = arith.constant 2 : index
    %c0_16 = arith.constant 0 : index
    %13 = vector.load %arg1[%c0_14, %c0_15, %c2, %c0_16] : memref<2x10x10x64xbf16, #tpu.memory_space<vmem>>, vector<2x8x8x64xbf16>
    %14 = vector.shape_cast %13 : vector<2x8x8x64xbf16> to vector<128x64xbf16>
    %c2_17 = arith.constant 2 : index
    %c0_18 = arith.constant 0 : index
    %c0_19 = arith.constant 0 : index
    %15 = vector.load %arg2[%c2_17, %c0_18, %c0_19] : memref<9x64x128xbf16, #tpu.memory_space<vmem>>, vector<1x64x128xbf16>
    %16 = vector.shape_cast %15 : vector<1x64x128xbf16> to vector<64x128xbf16>
    %cst_20 = arith.constant dense<0.000000e+00> : vector<128x128xf32>
    %17 = tpu.matmul %14, %16, %cst_20 {dimension_numbers = #tpu.dot_dimension_numbers<[1], [0], [0], [1], [0, 0, 1, 1], [], []>} : vector<128x64xbf16>, vector<64x128xbf16>, vector<128x128xf32> -> vector<128x128xf32>
    %18 = arith.addf %12, %17 : vector<128x128xf32>
    %c0_21 = arith.constant 0 : index
    %c1_22 = arith.constant 1 : index
    %c0_23 = arith.constant 0 : index
    %c0_24 = arith.constant 0 : index
    %19 = vector.load %arg1[%c0_21, %c1_22, %c0_23, %c0_24] : memref<2x10x10x64xbf16, #tpu.memory_space<vmem>>, vector<2x8x8x64xbf16>
    %20 = vector.shape_cast %19 : vector<2x8x8x64xbf16> to vector<128x64xbf16>
    %c3 = arith.constant 3 : index
    %c0_25 = arith.constant 0 : index
    %c0_26 = arith.constant 0 : index
    %21 = vector.load %arg2[%c3, %c0_25, %c0_26] : memref<9x64x128xbf16, #tpu.memory_space<vmem>>, vector<1x64x128xbf16>
    %22 = vector.shape_cast %21 : vector<1x64x128xbf16> to vector<64x128xbf16>
    %cst_27 = arith.constant dense<0.000000e+00> : vector<128x128xf32>
    %23 = tpu.matmul %20, %22, %cst_27 {dimension_numbers = #tpu.dot_dimension_numbers<[1], [0], [0], [1], [0, 0, 1, 1], [], []>} : vector<128x64xbf16>, vector<64x128xbf16>, vector<128x128xf32> -> vector<128x128xf32>
    %24 = arith.addf %18, %23 : vector<128x128xf32>
    %c0_28 = arith.constant 0 : index
    %c1_29 = arith.constant 1 : index
    %c1_30 = arith.constant 1 : index
    %c0_31 = arith.constant 0 : index
    %25 = vector.load %arg1[%c0_28, %c1_29, %c1_30, %c0_31] : memref<2x10x10x64xbf16, #tpu.memory_space<vmem>>, vector<2x8x8x64xbf16>
    %26 = vector.shape_cast %25 : vector<2x8x8x64xbf16> to vector<128x64xbf16>
    %c4 = arith.constant 4 : index
    %c0_32 = arith.constant 0 : index
    %c0_33 = arith.constant 0 : index
    %27 = vector.load %arg2[%c4, %c0_32, %c0_33] : memref<9x64x128xbf16, #tpu.memory_space<vmem>>, vector<1x64x128xbf16>
    %28 = vector.shape_cast %27 : vector<1x64x128xbf16> to vector<64x128xbf16>
    %cst_34 = arith.constant dense<0.000000e+00> : vector<128x128xf32>
    %29 = tpu.matmul %26, %28, %cst_34 {dimension_numbers = #tpu.dot_dimension_numbers<[1], [0], [0], [1], [0, 0, 1, 1], [], []>} : vector<128x64xbf16>, vector<64x128xbf16>, vector<128x128xf32> -> vector<128x128xf32>
    %30 = arith.addf %24, %29 : vector<128x128xf32>
    %c0_35 = arith.constant 0 : index
    %c1_36 = arith.constant 1 : index
    %c2_37 = arith.constant 2 : index
    %c0_38 = arith.constant 0 : index
    %31 = vector.load %arg1[%c0_35, %c1_36, %c2_37, %c0_38] : memref<2x10x10x64xbf16, #tpu.memory_space<vmem>>, vector<2x8x8x64xbf16>
    %32 = vector.shape_cast %31 : vector<2x8x8x64xbf16> to vector<128x64xbf16>
    %c5 = arith.constant 5 : index
    %c0_39 = arith.constant 0 : index
    %c0_40 = arith.constant 0 : index
    %33 = vector.load %arg2[%c5, %c0_39, %c0_40] : memref<9x64x128xbf16, #tpu.memory_space<vmem>>, vector<1x64x128xbf16>
    %34 = vector.shape_cast %33 : vector<1x64x128xbf16> to vector<64x128xbf16>
    %cst_41 = arith.constant dense<0.000000e+00> : vector<128x128xf32>
    %35 = tpu.matmul %32, %34, %cst_41 {dimension_numbers = #tpu.dot_dimension_numbers<[1], [0], [0], [1], [0, 0, 1, 1], [], []>} : vector<128x64xbf16>, vector<64x128xbf16>, vector<128x128xf32> -> vector<128x128xf32>
    %36 = arith.addf %30, %35 : vector<128x128xf32>
    %c0_42 = arith.constant 0 : index
    %c2_43 = arith.constant 2 : index
    %c0_44 = arith.constant 0 : index
    %c0_45 = arith.constant 0 : index
    %37 = vector.load %arg1[%c0_42, %c2_43, %c0_44, %c0_45] : memref<2x10x10x64xbf16, #tpu.memory_space<vmem>>, vector<2x8x8x64xbf16>
    %38 = vector.shape_cast %37 : vector<2x8x8x64xbf16> to vector<128x64xbf16>
    %c6 = arith.constant 6 : index
    %c0_46 = arith.constant 0 : index
    %c0_47 = arith.constant 0 : index
    %39 = vector.load %arg2[%c6, %c0_46, %c0_47] : memref<9x64x128xbf16, #tpu.memory_space<vmem>>, vector<1x64x128xbf16>
    %40 = vector.shape_cast %39 : vector<1x64x128xbf16> to vector<64x128xbf16>
    %cst_48 = arith.constant dense<0.000000e+00> : vector<128x128xf32>
    %41 = tpu.matmul %38, %40, %cst_48 {dimension_numbers = #tpu.dot_dimension_numbers<[1], [0], [0], [1], [0, 0, 1, 1], [], []>} : vector<128x64xbf16>, vector<64x128xbf16>, vector<128x128xf32> -> vector<128x128xf32>
    %42 = arith.addf %36, %41 : vector<128x128xf32>
    %c0_49 = arith.constant 0 : index
    %c2_50 = arith.constant 2 : index
    %c1_51 = arith.constant 1 : index
    %c0_52 = arith.constant 0 : index
    %43 = vector.load %arg1[%c0_49, %c2_50, %c1_51, %c0_52] : memref<2x10x10x64xbf16, #tpu.memory_space<vmem>>, vector<2x8x8x64xbf16>
    %44 = vector.shape_cast %43 : vector<2x8x8x64xbf16> to vector<128x64xbf16>
    %c7 = arith.constant 7 : index
    %c0_53 = arith.constant 0 : index
    %c0_54 = arith.constant 0 : index
    %45 = vector.load %arg2[%c7, %c0_53, %c0_54] : memref<9x64x128xbf16, #tpu.memory_space<vmem>>, vector<1x64x128xbf16>
    %46 = vector.shape_cast %45 : vector<1x64x128xbf16> to vector<64x128xbf16>
    %cst_55 = arith.constant dense<0.000000e+00> : vector<128x128xf32>
    %47 = tpu.matmul %44, %46, %cst_55 {dimension_numbers = #tpu.dot_dimension_numbers<[1], [0], [0], [1], [0, 0, 1, 1], [], []>} : vector<128x64xbf16>, vector<64x128xbf16>, vector<128x128xf32> -> vector<128x128xf32>
    %48 = arith.addf %42, %47 : vector<128x128xf32>
    %c0_56 = arith.constant 0 : index
    %c2_57 = arith.constant 2 : index
    %c2_58 = arith.constant 2 : index
    %c0_59 = arith.constant 0 : index
    %49 = vector.load %arg1[%c0_56, %c2_57, %c2_58, %c0_59] : memref<2x10x10x64xbf16, #tpu.memory_space<vmem>>, vector<2x8x8x64xbf16>
    %50 = vector.shape_cast %49 : vector<2x8x8x64xbf16> to vector<128x64xbf16>
    %c8 = arith.constant 8 : index
    %c0_60 = arith.constant 0 : index
    %c0_61 = arith.constant 0 : index
    %51 = vector.load %arg2[%c8, %c0_60, %c0_61] : memref<9x64x128xbf16, #tpu.memory_space<vmem>>, vector<1x64x128xbf16>
    %52 = vector.shape_cast %51 : vector<1x64x128xbf16> to vector<64x128xbf16>
    %cst_62 = arith.constant dense<0.000000e+00> : vector<128x128xf32>
    %53 = tpu.matmul %50, %52, %cst_62 {dimension_numbers = #tpu.dot_dimension_numbers<[1], [0], [0], [1], [0, 0, 1, 1], [], []>} : vector<128x64xbf16>, vector<64x128xbf16>, vector<128x128xf32> -> vector<128x128xf32>
    %54 = arith.addf %48, %53 : vector<128x128xf32>
    %c0_63 = arith.constant 0 : index
    %c0_64 = arith.constant 0 : index
    %55 = vector.load %arg3[%c0_63, %c0_64] : memref<1x128xf32, #tpu.memory_space<vmem>>, vector<1x128xf32>
    %56 = vector.broadcast %55 : vector<1x128xf32> to vector<128x128xf32>
    %57 = arith.addf %54, %56 : vector<128x128xf32>
    %58 = arith.truncf %57 : vector<128x128xf32> to vector<128x128xbf16>
    %c0_65 = arith.constant 0 : index
    %c0_66 = arith.constant 0 : index
    %59 = vector.load %arg4[%c0_65, %c0_66] : memref<128x128xbf16, #tpu.memory_space<vmem>>, vector<128x128xbf16>
    tpu.vector_store %arg4[%c0_65, %c0_66], %58 {strides = array<i32>} : memref<128x128xbf16, #tpu.memory_space<vmem>>, vector<128x128xbf16>,
    return
  }
  func.func @transform_0(%arg0: i32) -> (i32, i32, i32, i32) {
    %c0_i32 = arith.constant 0 : i32
    %c0_i32_0 = arith.constant 0 : i32
    %c0_i32_1 = arith.constant 0 : i32
    %c0_i32_2 = arith.constant 0 : i32
    return %arg0, %c0_i32, %c0_i32_0, %c0_i32_1 : i32, i32, i32, i32
  }
  func.func @transform_1(%arg0: i32) -> (i32, i32, i32) {
    %c0_i32 = arith.constant 0 : i32
    %c0_i32_0 = arith.constant 0 : i32
    %c0_i32_1 = arith.constant 0 : i32
    %c0_i32_2 = arith.constant 0 : i32
    return %c0_i32, %c0_i32_0, %c0_i32_1 : i32, i32, i32
  }
  func.func @transform_2(%arg0: i32) -> (i32, i32) {
    %c0_i32 = arith.constant 0 : i32
    %c0_i32_0 = arith.constant 0 : i32
    %c0_i32_1 = arith.constant 0 : i32
    return %c0_i32, %c0_i32_0 : i32, i32
  }
  func.func @transform_3(%arg0: i32) -> (i32, i32) {
    %c0_i32 = arith.constant 0 : i32
    %c0_i32_0 = arith.constant 0 : i32
    return %arg0, %c0_i32 : i32, i32
  }
}

module attributes {stable_mosaic.version = 11 : i64} {
  func.func @memory_kernel(%arg0: i32, %arg1: i32, %arg2: memref<1x64x32xbf16, #tpu.memory_space<vmem>>, %arg3: memref<1x32x128xbf16, #tpu.memory_space<vmem>>, %arg4: memref<1x64x128xbf16, #tpu.memory_space<vmem>>, %arg5: memref<1x64x64xbf16, #tpu.memory_space<vmem>>, %arg6: memref<64x1xf32, #tpu.memory_space<vmem>>, %arg7: memref<64x1xf32, #tpu.memory_space<vmem>>, %arg8: memref<64x64xf32, #tpu.memory_space<vmem>>) attributes {dimension_semantics = [#tpu.dimension_semantics<parallel>, #tpu.dimension_semantics<arbitrary>], iteration_bounds = array<i64: 2, 1>, scalar_prefetch = 0 : i64, scratch_operands = 3 : i64, tpu.core_type = #tpu.core_type<tc>, window_params = [{transform_indices = @transform_0, window_bounds = array<i64: 1, 64, 32>}, {transform_indices = @transform_1, window_bounds = array<i64: 1, 32, 128>}, {transform_indices = @transform_2, window_bounds = array<i64: 1, 64, 128>}, {transform_indices = @transform_3, window_bounds = array<i64: 1, 64, 64>}]} {
    %c0_i32 = arith.constant 0 : i32
    %0 = arith.cmpi eq, %arg1, %c0_i32 : i32
    %1 = arith.extui %0 : i1 to i32
    %c0_i32_0 = arith.constant 0 : i32
    %2 = arith.cmpi ne, %1, %c0_i32_0 : i32
    scf.if %2 {
      %cst_27 = arith.constant 0xFF800000 : f32
      %38 = vector.broadcast %cst_27 : f32 to vector<64x1xf32>
      %c0_28 = arith.constant 0 : index
      %c0_29 = arith.constant 0 : index
      %39 = vector.load %arg6[%c0_28, %c0_29] : memref<64x1xf32, #tpu.memory_space<vmem>>, vector<64x1xf32>
      tpu.vector_store %arg6[%c0_28, %c0_29], %38 {strides = array<i32>} : memref<64x1xf32, #tpu.memory_space<vmem>>, vector<64x1xf32>,
      %cst_30 = arith.constant 0.000000e+00 : f32
      %40 = vector.broadcast %cst_30 : f32 to vector<64x1xf32>
      %c0_31 = arith.constant 0 : index
      %c0_32 = arith.constant 0 : index
      %41 = vector.load %arg7[%c0_31, %c0_32] : memref<64x1xf32, #tpu.memory_space<vmem>>, vector<64x1xf32>
      tpu.vector_store %arg7[%c0_31, %c0_32], %40 {strides = array<i32>} : memref<64x1xf32, #tpu.memory_space<vmem>>, vector<64x1xf32>,
      %cst_33 = arith.constant 0.000000e+00 : f32
      %42 = vector.broadcast %cst_33 : f32 to vector<64x64xf32>
      %c0_34 = arith.constant 0 : index
      %c0_35 = arith.constant 0 : index
      %43 = vector.load %arg8[%c0_34, %c0_35] : memref<64x64xf32, #tpu.memory_space<vmem>>, vector<64x64xf32>
      tpu.vector_store %arg8[%c0_34, %c0_35], %42 {strides = array<i32>} : memref<64x64xf32, #tpu.memory_space<vmem>>, vector<64x64xf32>,
    } else {
    }
    %c0 = arith.constant 0 : index
    %c0_1 = arith.constant 0 : index
    %c0_2 = arith.constant 0 : index
    %3 = vector.load %arg2[%c0, %c0_1, %c0_2] : memref<1x64x32xbf16, #tpu.memory_space<vmem>>, vector<1x64x32xbf16>
    %4 = vector.shape_cast %3 : vector<1x64x32xbf16> to vector<64x32xbf16>
    %c0_3 = arith.constant 0 : index
    %c0_4 = arith.constant 0 : index
    %c0_5 = arith.constant 0 : index
    %5 = vector.load %arg3[%c0_3, %c0_4, %c0_5] : memref<1x32x128xbf16, #tpu.memory_space<vmem>>, vector<1x32x128xbf16>
    %6 = vector.shape_cast %5 : vector<1x32x128xbf16> to vector<32x128xbf16>
    %cst = arith.constant dense<0.000000e+00> : vector<64x128xf32>
    %7 = tpu.matmul %4, %6, %cst {dimension_numbers = #tpu.dot_dimension_numbers<[1], [0], [0], [1], [0, 0, 1, 1], [], []>} : vector<64x32xbf16>, vector<32x128xbf16>, vector<64x128xf32> -> vector<64x128xf32>
    %cst_6 = arith.constant 0.176776692 : f32
    %8 = vector.broadcast %cst_6 : f32 to vector<64x128xf32>
    %9 = arith.mulf %7, %8 : vector<64x128xf32>
    %c0_7 = arith.constant 0 : index
    %c0_8 = arith.constant 0 : index
    %10 = vector.load %arg6[%c0_7, %c0_8] : memref<64x1xf32, #tpu.memory_space<vmem>>, vector<64x1xf32>
    %cst_9 = arith.constant dense<0xFF800000> : vector<64xf32>
    %11 = vector.multi_reduction <maximumf>, %9, %cst_9 [1] : vector<64x128xf32> to vector<64xf32>
    %12 = vector.shape_cast %11 : vector<64xf32> to vector<64x1xf32>
    %13 = arith.maximumf %10, %12 : vector<64x1xf32>
    %14 = arith.subf %10, %13 : vector<64x1xf32>
    %15 = math.exp %14 : vector<64x1xf32>
    %16 = vector.broadcast %13 : vector<64x1xf32> to vector<64x128xf32>
    %17 = arith.subf %9, %16 : vector<64x128xf32>
    %18 = math.exp %17 : vector<64x128xf32>
    %c0_10 = arith.constant 0 : index
    %c0_11 = arith.constant 0 : index
    %19 = vector.load %arg7[%c0_10, %c0_11] : memref<64x1xf32, #tpu.memory_space<vmem>>, vector<64x1xf32>
    %20 = arith.mulf %15, %19 : vector<64x1xf32>
    %cst_12 = arith.constant dense<0.000000e+00> : vector<64xf32>
    %21 = vector.multi_reduction <add>, %18, %cst_12 [1] : vector<64x128xf32> to vector<64xf32>
    %22 = vector.shape_cast %21 : vector<64xf32> to vector<64x1xf32>
    %23 = arith.addf %20, %22 : vector<64x1xf32>
    %c0_13 = arith.constant 0 : index
    %c0_14 = arith.constant 0 : index
    %24 = vector.load %arg7[%c0_13, %c0_14] : memref<64x1xf32, #tpu.memory_space<vmem>>, vector<64x1xf32>
    tpu.vector_store %arg7[%c0_13, %c0_14], %23 {strides = array<i32>} : memref<64x1xf32, #tpu.memory_space<vmem>>, vector<64x1xf32>,
    %c0_15 = arith.constant 0 : index
    %c0_16 = arith.constant 0 : index
    %25 = vector.load %arg8[%c0_15, %c0_16] : memref<64x64xf32, #tpu.memory_space<vmem>>, vector<64x64xf32>
    %26 = vector.broadcast %15 : vector<64x1xf32> to vector<64x64xf32>
    %27 = arith.mulf %26, %25 : vector<64x64xf32>
    %28 = arith.truncf %18 : vector<64x128xf32> to vector<64x128xbf16>
    %c0_17 = arith.constant 0 : index
    %c0_18 = arith.constant 0 : index
    %c0_19 = arith.constant 0 : index
    %29 = vector.load %arg4[%c0_17, %c0_18, %c0_19] : memref<1x64x128xbf16, #tpu.memory_space<vmem>>, vector<1x64x128xbf16>
    %30 = vector.shape_cast %29 : vector<1x64x128xbf16> to vector<64x128xbf16>
    %cst_20 = arith.constant dense<0.000000e+00> : vector<64x64xf32>
    %31 = tpu.matmul %28, %30, %cst_20 {dimension_numbers = #tpu.dot_dimension_numbers<[1], [1], [0], [0], [0, 0, 1, 0], [], []>} : vector<64x128xbf16>, vector<64x128xbf16>, vector<64x64xf32> -> vector<64x64xf32>
    %32 = arith.addf %27, %31 : vector<64x64xf32>
    %c0_21 = arith.constant 0 : index
    %c0_22 = arith.constant 0 : index
    %33 = vector.load %arg8[%c0_21, %c0_22] : memref<64x64xf32, #tpu.memory_space<vmem>>, vector<64x64xf32>
    tpu.vector_store %arg8[%c0_21, %c0_22], %32 {strides = array<i32>} : memref<64x64xf32, #tpu.memory_space<vmem>>, vector<64x64xf32>,
    %c0_23 = arith.constant 0 : index
    %c0_24 = arith.constant 0 : index
    %34 = vector.load %arg6[%c0_23, %c0_24] : memref<64x1xf32, #tpu.memory_space<vmem>>, vector<64x1xf32>
    tpu.vector_store %arg6[%c0_23, %c0_24], %13 {strides = array<i32>} : memref<64x1xf32, #tpu.memory_space<vmem>>, vector<64x1xf32>,
    %c0_i32_25 = arith.constant 0 : i32
    %35 = arith.cmpi eq, %arg1, %c0_i32_25 : i32
    %36 = arith.extui %35 : i1 to i32
    %c0_i32_26 = arith.constant 0 : i32
    %37 = arith.cmpi ne, %36, %c0_i32_26 : i32
    scf.if %37 {
      %c0_27 = arith.constant 0 : index
      %c0_28 = arith.constant 0 : index
      %38 = vector.load %arg8[%c0_27, %c0_28] : memref<64x64xf32, #tpu.memory_space<vmem>>, vector<64x64xf32>
      %c0_29 = arith.constant 0 : index
      %c0_30 = arith.constant 0 : index
      %39 = vector.load %arg7[%c0_29, %c0_30] : memref<64x1xf32, #tpu.memory_space<vmem>>, vector<64x1xf32>
      %40 = tpu.reciprocal %39 {approx = true} : vector<64x1xf32> -> vector<64x1xf32>
      %41 = vector.broadcast %40 : vector<64x1xf32> to vector<64x64xf32>
      %42 = arith.mulf %38, %41 : vector<64x64xf32>
      %43 = arith.truncf %42 : vector<64x64xf32> to vector<64x64xbf16>
      %c0_31 = arith.constant 0 : index
      %c0_32 = arith.constant 0 : index
      %c0_33 = arith.constant 0 : index
      %44 = vector.load %arg5[%c0_31, %c0_32, %c0_33] : memref<1x64x64xbf16, #tpu.memory_space<vmem>>, vector<1x64x64xbf16>
      %45 = vector.shape_cast %44 : vector<1x64x64xbf16> to vector<64x64xbf16>
      %46 = vector.shape_cast %43 : vector<64x64xbf16> to vector<1x64x64xbf16>
      tpu.vector_store %arg5[%c0_31, %c0_32, %c0_33], %46 {strides = array<i32>} : memref<1x64x64xbf16, #tpu.memory_space<vmem>>, vector<1x64x64xbf16>,
    } else {
    }
    return
  }
  func.func @transform_0(%arg0: i32, %arg1: i32) -> (i32, i32, i32) {
    %c0_i32 = arith.constant 0 : i32
    %c0_i32_0 = arith.constant 0 : i32
    %c0_i32_1 = arith.constant 0 : i32
    return %arg0, %c0_i32, %c0_i32_0 : i32, i32, i32
  }
  func.func @transform_1(%arg0: i32, %arg1: i32) -> (i32, i32, i32) {
    %c0_i32 = arith.constant 0 : i32
    %c0_i32_0 = arith.constant 0 : i32
    return %arg0, %c0_i32, %arg1 : i32, i32, i32
  }
  func.func @transform_2(%arg0: i32, %arg1: i32) -> (i32, i32, i32) {
    %c0_i32 = arith.constant 0 : i32
    %c0_i32_0 = arith.constant 0 : i32
    return %arg0, %c0_i32, %arg1 : i32, i32, i32
  }
  func.func @transform_3(%arg0: i32, %arg1: i32) -> (i32, i32, i32) {
    %c0_i32 = arith.constant 0 : i32
    %c0_i32_0 = arith.constant 0 : i32
    %c0_i32_1 = arith.constant 0 : i32
    return %arg0, %c0_i32, %c0_i32_0 : i32, i32, i32
  }
}

module attributes {stable_mosaic.version = 11 : i64} {
  func.func @pred_agg_kernel(%arg0: i32, %arg1: memref<2x10x10x128xbf16, #tpu.memory_space<vmem>>, %arg2: memref<9x128x2xbf16, #tpu.memory_space<vmem>>, %arg3: memref<1x2xf32, #tpu.memory_space<vmem>>, %arg4: memref<128x3xf32, #tpu.memory_space<vmem>>) attributes {dimension_semantics = [#tpu.dimension_semantics<parallel>], iteration_bounds = array<i64: 1>, scalar_prefetch = 0 : i64, scratch_operands = 0 : i64, tpu.core_type = #tpu.core_type<tc>, window_params = [{transform_indices = @transform_0, window_bounds = array<i64: 2, 10, 10, 128>}, {pipeline_mode = #tpu.pipeline_mode<synchronous>, transform_indices = @transform_1, window_bounds = array<i64: 9, 128, 2>}, {pipeline_mode = #tpu.pipeline_mode<synchronous>, transform_indices = @transform_2, window_bounds = array<i64: 1, 2>}, {transform_indices = @transform_3, window_bounds = array<i64: 128, 3>}]} {
    %cst = arith.constant 0.000000e+00 : f32
    %0 = vector.broadcast %cst : f32 to vector<128x2xf32>
    %c0 = arith.constant 0 : index
    %c0_0 = arith.constant 0 : index
    %c0_1 = arith.constant 0 : index
    %c0_2 = arith.constant 0 : index
    %1 = vector.load %arg1[%c0, %c0_0, %c0_1, %c0_2] : memref<2x10x10x128xbf16, #tpu.memory_space<vmem>>, vector<2x8x8x128xbf16>
    %2 = vector.shape_cast %1 : vector<2x8x8x128xbf16> to vector<128x128xbf16>
    %c0_3 = arith.constant 0 : index
    %c0_4 = arith.constant 0 : index
    %c0_5 = arith.constant 0 : index
    %3 = vector.load %arg2[%c0_3, %c0_4, %c0_5] : memref<9x128x2xbf16, #tpu.memory_space<vmem>>, vector<1x128x2xbf16>
    %4 = vector.shape_cast %3 : vector<1x128x2xbf16> to vector<128x2xbf16>
    %cst_6 = arith.constant dense<0.000000e+00> : vector<128x2xf32>
    %5 = tpu.matmul %2, %4, %cst_6 {dimension_numbers = #tpu.dot_dimension_numbers<[1], [0], [0], [1], [0, 0, 1, 1], [], []>} : vector<128x128xbf16>, vector<128x2xbf16>, vector<128x2xf32> -> vector<128x2xf32>
    %6 = arith.addf %0, %5 : vector<128x2xf32>
    %c0_7 = arith.constant 0 : index
    %c0_8 = arith.constant 0 : index
    %c1 = arith.constant 1 : index
    %c0_9 = arith.constant 0 : index
    %7 = vector.load %arg1[%c0_7, %c0_8, %c1, %c0_9] : memref<2x10x10x128xbf16, #tpu.memory_space<vmem>>, vector<2x8x8x128xbf16>
    %8 = vector.shape_cast %7 : vector<2x8x8x128xbf16> to vector<128x128xbf16>
    %c1_10 = arith.constant 1 : index
    %c0_11 = arith.constant 0 : index
    %c0_12 = arith.constant 0 : index
    %9 = vector.load %arg2[%c1_10, %c0_11, %c0_12] : memref<9x128x2xbf16, #tpu.memory_space<vmem>>, vector<1x128x2xbf16>
    %10 = vector.shape_cast %9 : vector<1x128x2xbf16> to vector<128x2xbf16>
    %cst_13 = arith.constant dense<0.000000e+00> : vector<128x2xf32>
    %11 = tpu.matmul %8, %10, %cst_13 {dimension_numbers = #tpu.dot_dimension_numbers<[1], [0], [0], [1], [0, 0, 1, 1], [], []>} : vector<128x128xbf16>, vector<128x2xbf16>, vector<128x2xf32> -> vector<128x2xf32>
    %12 = arith.addf %6, %11 : vector<128x2xf32>
    %c0_14 = arith.constant 0 : index
    %c0_15 = arith.constant 0 : index
    %c2 = arith.constant 2 : index
    %c0_16 = arith.constant 0 : index
    %13 = vector.load %arg1[%c0_14, %c0_15, %c2, %c0_16] : memref<2x10x10x128xbf16, #tpu.memory_space<vmem>>, vector<2x8x8x128xbf16>
    %14 = vector.shape_cast %13 : vector<2x8x8x128xbf16> to vector<128x128xbf16>
    %c2_17 = arith.constant 2 : index
    %c0_18 = arith.constant 0 : index
    %c0_19 = arith.constant 0 : index
    %15 = vector.load %arg2[%c2_17, %c0_18, %c0_19] : memref<9x128x2xbf16, #tpu.memory_space<vmem>>, vector<1x128x2xbf16>
    %16 = vector.shape_cast %15 : vector<1x128x2xbf16> to vector<128x2xbf16>
    %cst_20 = arith.constant dense<0.000000e+00> : vector<128x2xf32>
    %17 = tpu.matmul %14, %16, %cst_20 {dimension_numbers = #tpu.dot_dimension_numbers<[1], [0], [0], [1], [0, 0, 1, 1], [], []>} : vector<128x128xbf16>, vector<128x2xbf16>, vector<128x2xf32> -> vector<128x2xf32>
    %18 = arith.addf %12, %17 : vector<128x2xf32>
    %c0_21 = arith.constant 0 : index
    %c1_22 = arith.constant 1 : index
    %c0_23 = arith.constant 0 : index
    %c0_24 = arith.constant 0 : index
    %19 = vector.load %arg1[%c0_21, %c1_22, %c0_23, %c0_24] : memref<2x10x10x128xbf16, #tpu.memory_space<vmem>>, vector<2x8x8x128xbf16>
    %20 = vector.shape_cast %19 : vector<2x8x8x128xbf16> to vector<128x128xbf16>
    %c3 = arith.constant 3 : index
    %c0_25 = arith.constant 0 : index
    %c0_26 = arith.constant 0 : index
    %21 = vector.load %arg2[%c3, %c0_25, %c0_26] : memref<9x128x2xbf16, #tpu.memory_space<vmem>>, vector<1x128x2xbf16>
    %22 = vector.shape_cast %21 : vector<1x128x2xbf16> to vector<128x2xbf16>
    %cst_27 = arith.constant dense<0.000000e+00> : vector<128x2xf32>
    %23 = tpu.matmul %20, %22, %cst_27 {dimension_numbers = #tpu.dot_dimension_numbers<[1], [0], [0], [1], [0, 0, 1, 1], [], []>} : vector<128x128xbf16>, vector<128x2xbf16>, vector<128x2xf32> -> vector<128x2xf32>
    %24 = arith.addf %18, %23 : vector<128x2xf32>
    %c0_28 = arith.constant 0 : index
    %c1_29 = arith.constant 1 : index
    %c1_30 = arith.constant 1 : index
    %c0_31 = arith.constant 0 : index
    %25 = vector.load %arg1[%c0_28, %c1_29, %c1_30, %c0_31] : memref<2x10x10x128xbf16, #tpu.memory_space<vmem>>, vector<2x8x8x128xbf16>
    %26 = vector.shape_cast %25 : vector<2x8x8x128xbf16> to vector<128x128xbf16>
    %c4 = arith.constant 4 : index
    %c0_32 = arith.constant 0 : index
    %c0_33 = arith.constant 0 : index
    %27 = vector.load %arg2[%c4, %c0_32, %c0_33] : memref<9x128x2xbf16, #tpu.memory_space<vmem>>, vector<1x128x2xbf16>
    %28 = vector.shape_cast %27 : vector<1x128x2xbf16> to vector<128x2xbf16>
    %cst_34 = arith.constant dense<0.000000e+00> : vector<128x2xf32>
    %29 = tpu.matmul %26, %28, %cst_34 {dimension_numbers = #tpu.dot_dimension_numbers<[1], [0], [0], [1], [0, 0, 1, 1], [], []>} : vector<128x128xbf16>, vector<128x2xbf16>, vector<128x2xf32> -> vector<128x2xf32>
    %30 = arith.addf %24, %29 : vector<128x2xf32>
    %c0_35 = arith.constant 0 : index
    %c1_36 = arith.constant 1 : index
    %c2_37 = arith.constant 2 : index
    %c0_38 = arith.constant 0 : index
    %31 = vector.load %arg1[%c0_35, %c1_36, %c2_37, %c0_38] : memref<2x10x10x128xbf16, #tpu.memory_space<vmem>>, vector<2x8x8x128xbf16>
    %32 = vector.shape_cast %31 : vector<2x8x8x128xbf16> to vector<128x128xbf16>
    %c5 = arith.constant 5 : index
    %c0_39 = arith.constant 0 : index
    %c0_40 = arith.constant 0 : index
    %33 = vector.load %arg2[%c5, %c0_39, %c0_40] : memref<9x128x2xbf16, #tpu.memory_space<vmem>>, vector<1x128x2xbf16>
    %34 = vector.shape_cast %33 : vector<1x128x2xbf16> to vector<128x2xbf16>
    %cst_41 = arith.constant dense<0.000000e+00> : vector<128x2xf32>
    %35 = tpu.matmul %32, %34, %cst_41 {dimension_numbers = #tpu.dot_dimension_numbers<[1], [0], [0], [1], [0, 0, 1, 1], [], []>} : vector<128x128xbf16>, vector<128x2xbf16>, vector<128x2xf32> -> vector<128x2xf32>
    %36 = arith.addf %30, %35 : vector<128x2xf32>
    %c0_42 = arith.constant 0 : index
    %c2_43 = arith.constant 2 : index
    %c0_44 = arith.constant 0 : index
    %c0_45 = arith.constant 0 : index
    %37 = vector.load %arg1[%c0_42, %c2_43, %c0_44, %c0_45] : memref<2x10x10x128xbf16, #tpu.memory_space<vmem>>, vector<2x8x8x128xbf16>
    %38 = vector.shape_cast %37 : vector<2x8x8x128xbf16> to vector<128x128xbf16>
    %c6 = arith.constant 6 : index
    %c0_46 = arith.constant 0 : index
    %c0_47 = arith.constant 0 : index
    %39 = vector.load %arg2[%c6, %c0_46, %c0_47] : memref<9x128x2xbf16, #tpu.memory_space<vmem>>, vector<1x128x2xbf16>
    %40 = vector.shape_cast %39 : vector<1x128x2xbf16> to vector<128x2xbf16>
    %cst_48 = arith.constant dense<0.000000e+00> : vector<128x2xf32>
    %41 = tpu.matmul %38, %40, %cst_48 {dimension_numbers = #tpu.dot_dimension_numbers<[1], [0], [0], [1], [0, 0, 1, 1], [], []>} : vector<128x128xbf16>, vector<128x2xbf16>, vector<128x2xf32> -> vector<128x2xf32>
    %42 = arith.addf %36, %41 : vector<128x2xf32>
    %c0_49 = arith.constant 0 : index
    %c2_50 = arith.constant 2 : index
    %c1_51 = arith.constant 1 : index
    %c0_52 = arith.constant 0 : index
    %43 = vector.load %arg1[%c0_49, %c2_50, %c1_51, %c0_52] : memref<2x10x10x128xbf16, #tpu.memory_space<vmem>>, vector<2x8x8x128xbf16>
    %44 = vector.shape_cast %43 : vector<2x8x8x128xbf16> to vector<128x128xbf16>
    %c7 = arith.constant 7 : index
    %c0_53 = arith.constant 0 : index
    %c0_54 = arith.constant 0 : index
    %45 = vector.load %arg2[%c7, %c0_53, %c0_54] : memref<9x128x2xbf16, #tpu.memory_space<vmem>>, vector<1x128x2xbf16>
    %46 = vector.shape_cast %45 : vector<1x128x2xbf16> to vector<128x2xbf16>
    %cst_55 = arith.constant dense<0.000000e+00> : vector<128x2xf32>
    %47 = tpu.matmul %44, %46, %cst_55 {dimension_numbers = #tpu.dot_dimension_numbers<[1], [0], [0], [1], [0, 0, 1, 1], [], []>} : vector<128x128xbf16>, vector<128x2xbf16>, vector<128x2xf32> -> vector<128x2xf32>
    %48 = arith.addf %42, %47 : vector<128x2xf32>
    %c0_56 = arith.constant 0 : index
    %c2_57 = arith.constant 2 : index
    %c2_58 = arith.constant 2 : index
    %c0_59 = arith.constant 0 : index
    %49 = vector.load %arg1[%c0_56, %c2_57, %c2_58, %c0_59] : memref<2x10x10x128xbf16, #tpu.memory_space<vmem>>, vector<2x8x8x128xbf16>
    %50 = vector.shape_cast %49 : vector<2x8x8x128xbf16> to vector<128x128xbf16>
    %c8 = arith.constant 8 : index
    %c0_60 = arith.constant 0 : index
    %c0_61 = arith.constant 0 : index
    %51 = vector.load %arg2[%c8, %c0_60, %c0_61] : memref<9x128x2xbf16, #tpu.memory_space<vmem>>, vector<1x128x2xbf16>
    %52 = vector.shape_cast %51 : vector<1x128x2xbf16> to vector<128x2xbf16>
    %cst_62 = arith.constant dense<0.000000e+00> : vector<128x2xf32>
    %53 = tpu.matmul %50, %52, %cst_62 {dimension_numbers = #tpu.dot_dimension_numbers<[1], [0], [0], [1], [0, 0, 1, 1], [], []>} : vector<128x128xbf16>, vector<128x2xbf16>, vector<128x2xf32> -> vector<128x2xf32>
    %54 = arith.addf %48, %53 : vector<128x2xf32>
    %c0_63 = arith.constant 0 : index
    %c0_64 = arith.constant 0 : index
    %55 = vector.load %arg3[%c0_63, %c0_64] : memref<1x2xf32, #tpu.memory_space<vmem>>, vector<1x2xf32>
    %56 = vector.broadcast %55 : vector<1x2xf32> to vector<128x2xf32>
    %57 = arith.addf %54, %56 : vector<128x2xf32>
    %58 = vector.extract_strided_slice %57 {offsets = [0, 1], sizes = [128, 1], strides = [1, 1]} : vector<128x2xf32> to vector<128x1xf32>
    %59 = vector.extract_strided_slice %57 {offsets = [0, 0], sizes = [128, 1], strides = [1, 1]} : vector<128x2xf32> to vector<128x1xf32>
    %60 = arith.subf %58, %59 : vector<128x1xf32>
    %61 = arith.negf %60 : vector<128x1xf32>
    %62 = math.exp %61 : vector<128x1xf32>
    %cst_65 = arith.constant 1.000000e+00 : f32
    %63 = vector.broadcast %cst_65 : f32 to vector<128x1xf32>
    %64 = arith.addf %63, %62 : vector<128x1xf32>
    %65 = arith.divf %63, %64 : vector<128x1xf32>
    %cst_66 = arith.constant 1.000000e-07 : f32
    %cst_67 = arith.constant 0.99999988 : f32
    %66 = vector.broadcast %cst_66 : f32 to vector<128x1xf32>
    %67 = arith.maximumf %66, %65 : vector<128x1xf32>
    %68 = vector.broadcast %cst_67 : f32 to vector<128x1xf32>
    %69 = arith.minimumf %68, %67 : vector<128x1xf32>
    %cst_68 = arith.constant 1.000000e+00 : f32
    %70 = vector.broadcast %cst_68 : f32 to vector<128x1xf32>
    %71 = arith.subf %70, %65 : vector<128x1xf32>
    %cst_69 = arith.constant 1.000000e-07 : f32
    %cst_70 = arith.constant 0.99999988 : f32
    %72 = vector.broadcast %cst_69 : f32 to vector<128x1xf32>
    %73 = arith.maximumf %72, %71 : vector<128x1xf32>
    %74 = vector.broadcast %cst_70 : f32 to vector<128x1xf32>
    %75 = arith.minimumf %74, %73 : vector<128x1xf32>
    %cst_71 = arith.constant 1.000000e+00 : f32
    %76 = vector.broadcast %cst_71 : f32 to vector<128x1xf32>
    %77 = arith.subf %76, %69 : vector<128x1xf32>
    %78 = arith.divf %69, %77 : vector<128x1xf32>
    %79 = math.log %78 : vector<128x1xf32>
    %cst_72 = arith.constant 1.000000e+00 : f32
    %80 = vector.broadcast %cst_72 : f32 to vector<128x1xf32>
    %81 = arith.subf %80, %75 : vector<128x1xf32>
    %82 = arith.divf %75, %81 : vector<128x1xf32>
    %83 = math.log %82 : vector<128x1xf32>
    %84 = tpu.iota {dimensions = array<i32: 1>} : vector<128x3xi32>
    %c0_i32 = arith.constant 0 : i32
    %85 = vector.broadcast %c0_i32 : i32 to vector<128x3xi32>
    %86 = arith.cmpi eq, %84, %85 : vector<128x3xi32>
    %c1_i32 = arith.constant 1 : i32
    %87 = vector.broadcast %c1_i32 : i32 to vector<128x3xi32>
    %88 = arith.cmpi eq, %84, %87 : vector<128x3xi32>
    %cst_73 = arith.constant -16.1180954 : f32
    %89 = vector.shape_cast %79 : vector<128x1xf32> to vector<128x1xf32>
    %90 = vector.broadcast %89 : vector<128x1xf32> to vector<128x3xf32>
    %91 = vector.broadcast %cst_73 : f32 to vector<128x3xf32>
    %92 = arith.select %88, %90, %91 : vector<128x3xi1>, vector<128x3xf32>
    %93 = vector.shape_cast %83 : vector<128x1xf32> to vector<128x1xf32>
    %94 = vector.broadcast %93 : vector<128x1xf32> to vector<128x3xf32>
    %95 = arith.select %86, %94, %92 : vector<128x3xi1>, vector<128x3xf32>
    %c0_74 = arith.constant 0 : index
    %c0_75 = arith.constant 0 : index
    %96 = vector.load %arg4[%c0_74, %c0_75] : memref<128x3xf32, #tpu.memory_space<vmem>>, vector<128x3xf32>
    tpu.vector_store %arg4[%c0_74, %c0_75], %95 {strides = array<i32>} : memref<128x3xf32, #tpu.memory_space<vmem>>, vector<128x3xf32>,
    return
  }
  func.func @transform_0(%arg0: i32) -> (i32, i32, i32, i32) {
    %c0_i32 = arith.constant 0 : i32
    %c0_i32_0 = arith.constant 0 : i32
    %c0_i32_1 = arith.constant 0 : i32
    %c0_i32_2 = arith.constant 0 : i32
    return %arg0, %c0_i32, %c0_i32_0, %c0_i32_1 : i32, i32, i32, i32
  }
  func.func @transform_1(%arg0: i32) -> (i32, i32, i32) {
    %c0_i32 = arith.constant 0 : i32
    %c0_i32_0 = arith.constant 0 : i32
    %c0_i32_1 = arith.constant 0 : i32
    %c0_i32_2 = arith.constant 0 : i32
    return %c0_i32, %c0_i32_0, %c0_i32_1 : i32, i32, i32
  }
  func.func @transform_2(%arg0: i32) -> (i32, i32) {
    %c0_i32 = arith.constant 0 : i32
    %c0_i32_0 = arith.constant 0 : i32
    %c0_i32_1 = arith.constant 0 : i32
    return %c0_i32, %c0_i32_0 : i32, i32
  }
  func.func @transform_3(%arg0: i32) -> (i32, i32) {
    %c0_i32 = arith.constant 0 : i32
    %c0_i32_0 = arith.constant 0 : i32
    return %arg0, %c0_i32 : i32, i32
  }
}

</mosaic_0001>

<bundles_post_ra>
// kernel: segment.4
= control target key start
LH: loop header
LB: loop body
LE: loop exit
PB: predicated region body
PF: predicated region fallthrough
CT: control target
= control target key end

     0   :  { %s1197_s12 = smov 0   ;;  %s1199_s13 = smov 0   ;;  %s1457_s0 = inlined_call_operand.vmem [shape: bf16[2,64,32], index: 0, kind: input, shape index: {}]   ;;  %s1458_s1 = inlined_call_operand.vmem [shape: bf16[2,32,128], index: 1, kind: input, shape index: {}]   ;;  %s1459_s2 = inlined_call_operand.vmem [shape: bf16[2,64,128], index: 2, kind: input, shape index: {}]   ;;  %s1460_s3 = inlined_call_operand.vmem [shape: bf16[2,64,64], index: 3, kind: output, shape index: {}]  }
   0x1   :  { %s1201_s14 = smov 0  }
   0x2 LB: > { %s25_s15 = sadd.s32 1, %s1168_s13  ;;  %p976_p0 = scmp.ge.s32.totalorder %s1172_s14, 1  ;;  %s1172_s14 = sphi %s1201_s14, %s13_s14   ;;  %s1168_s13 = sphi %s1199_s13, %s1462_s13   ;;  %s1164_s12 = sphi %s1197_s12, %s1461_s12  }
   0x3   : > { %p27_p1 = scmp.ge.s32.totalorder %s25_s15, 2  ;;  %p179_p2 = scmp.lt.s32.totalorder %s1172_s14, 3 }
   0x5   : > { %s1464_s15 = smov (%p27_p1, %s25_s15), 0  ;;  %p180_p3 = pnand %p976_p0, %p179_p2 }
   0x6   : > { %p219_p4 = scmp.lt.s32.totalorder (!%p180_p3), %s1164_s12, 1  ;;  %vm320_vm0 = vcmask (!%p180_p3), 261120   ;;  %vm250_vm1 = vcmask (!%p180_p3), 7168   ;;  %v1174_v6 = vmov (!%p180_p3), -inf   ;;  %v1175_v23 = vmov (!%p180_p3), 0  }
   0x7   : > { %183 = sbr.rel (%p180_p3) target bundleno = 849 (0x351), region = 32  ;;  %253 = vst.msk [vmem:[#allocation2 + $0x10] sm:$0xff] (!%p180_p3), %vm250_vm1, %v1174_v6  ;;  %251 = vst.msk [vmem:[#allocation2] sm:$0xff] (!%p180_p3), %vm250_vm1, %v1174_v6  ;;  %1090 = vset.pattern.permute.xlu0 (!%p180_p3), %v1175_v23  ;;  %1091 = vset.pattern.permute.xlu1 (!%p180_p3), %v1175_v23  ;;  %v1176_v24 = vmov (!%p180_p3), 0.0   ;;  %vm267_vm2 = vcmask (!%p180_p3), 523264   ;;  %vm864_vm3 = vcmask (!%p180_p3), 519168  }
   0x8   : > { %252 = vst.msk [vmem:[#allocation2 + $0x8] sm:$0xff] (!%p180_p3), %vm250_vm1, %v1174_v6  ;;  %254 = vst.msk [vmem:[#allocation2 + $0x18] sm:$0xff] (!%p180_p3), %vm250_vm1, %v1174_v6 }
   0x9   : > { %255 = vst.msk [vmem:[#allocation2 + $0x20] sm:$0xff] (!%p180_p3), %vm250_vm1, %v1174_v6  ;;  %256 = vst.msk [vmem:[#allocation2 + $0x28] sm:$0xff] (!%p180_p3), %vm250_vm1, %v1174_v6 }
   0xa   : > { %257 = vst.msk [vmem:[#allocation2 + $0x30] sm:$0xff] (!%p180_p3), %vm250_vm1, %v1174_v6  ;;  %258 = vst.msk [vmem:[#allocation2 + $0x38] sm:$0xff] (!%p180_p3), %vm250_vm1, %v1174_v6 }
   0xb   : > { %261 = vst.msk [vmem:[#allocation3 + $0x10] sm:$0xff] (!%p180_p3), %vm250_vm1, %v1176_v24  ;;  %259 = vst.msk [vmem:[#allocation3] sm:$0xff] (!%p180_p3), %vm250_vm1, %v1176_v24 }
   0xc   : > { %260 = vst.msk [vmem:[#allocation3 + $0x8] sm:$0xff] (!%p180_p3), %vm250_vm1, %v1176_v24  ;;  %262 = vst.msk [vmem:[#allocation3 + $0x18] sm:$0xff] (!%p180_p3), %vm250_vm1, %v1176_v24 }
   0xd   : > { %263 = vst.msk [vmem:[#allocation3 + $0x20] sm:$0xff] (!%p180_p3), %vm250_vm1, %v1176_v24  ;;  %264 = vst.msk [vmem:[#allocation3 + $0x28] sm:$0xff] (!%p180_p3), %vm250_vm1, %v1176_v24 }
   0xe   : > { %s1466_s12 = smov (!%p219_p4, %s1164_s12), 1  ;;  %265 = vst.msk [vmem:[#allocation3 + $0x30] sm:$0xff] %vm250_vm1, %v1176_v24  ;;  %266 = vst.msk [vmem:[#allocation3 + $0x38] sm:$0xff] %vm250_vm1, %v1176_v24  ;;  %v1279_v26 = vld [vmem:[#allocation2 + $0x10] sm:$0xff]  ;;  %v1281_v27 = vld [vmem:[#allocation2] sm:$0xff] }
   0xf   : > { %s1215_s16 = sshll.u32 %s1466_s12, 5  ;;  %s1010_s17 = sshll.u32 %s1466_s12, 4  ;;  %v1289_v32 = vld [vmem:[#allocation2 + $0x18] sm:$0xff]  ;;  %v1296_v34 = vld [vmem:[#allocation2 + $0x8] sm:$0xff]  ;;  %268 = vst.msk [vmem:[#allocation4] sm:$0xff] %vm267_vm2, %v1176_v24  ;;  %269 = vst.msk [vmem:[#allocation4 + $0x8] sm:$0xff] %vm267_vm2, %v1176_v24 }
  0x10   : > { %s223_s20 = scalar_lea.vmem %s1457_s0, %s1215_s16  ;;  %s231_s23 = scalar_lea.vmem %s1458_s1, %s1010_s17  ;;  %v1315_v42 = vld [vmem:[#allocation2 + $0x20] sm:$0xff]  ;;  %v1321_v45 = vld [vmem:[#allocation2 + $0x28] sm:$0xff]  ;;  %270 = vst.msk [vmem:[#allocation4 + $0x10] sm:$0xff] %vm267_vm2, %v1176_v24  ;;  %271 = vst.msk [vmem:[#allocation4 + $0x18] sm:$0xff] %vm267_vm2, %v1176_v24 }
  0x11   : > { %v1092_v0 = vld [vmem:[%s231_s23] sm:$0xff]   ;;  %v1093_v1 = vld [vmem:[%s231_s23 + $0x8] sm:$0xff]   ;;  %s1228_s26 = scalar_lea.vmem %s1459_s2, %s1215_s16  ;;  %v1096_v4 = vld [vmem:[%s223_s20 + $0x10] sm:$0xff]   ;;  %272 = vst.msk [vmem:[#allocation4 + $0x20] sm:$0xff] %vm267_vm2, %v1176_v24  ;;  %s1430_s29 = scalar_lea.vmem %s1460_s3, %s1215_s16 }
  0x12   : > { %1035 = vmatprep.subr.bf16.mxu0 %v1092_v0  ;;  %v1094_v2 = vld [vmem:[%s223_s20] sm:$0xff]   ;;  %v1095_v3 = vld [vmem:[%s223_s20 + $0x8] sm:$0xff]   ;;  %v1097_v5 = vld [vmem:[%s223_s20 + $0x18] sm:$0xff]   ;;  %273 = vst.msk [vmem:[#allocation4 + $0x28] sm:$0xff] %vm267_vm2, %v1176_v24 }
  0x13   : > { %1036 = vmatpush3.bf16.msra.mxu0 %v1092_v0  ;;  %1039 = vmatprep.mubr.msk.bf16.mxu0 %vm320_vm0, %v1094_v2  ;;  %v1098_v25 = vld [vmem:[%s1228_s26] sm:$0xff]   ;;  %v1099_v35 = vld [vmem:[%s1228_s26 + $0x8] sm:$0xff]   ;;  %v1327_v48 = vld [vmem:[#allocation2 + $0x30] sm:$0xff]  ;;  %274 = vst.msk [vmem:[#allocation4 + $0x30] sm:$0xff] %vm267_vm2, %v1176_v24 }
  0x14   : > { %1037 = vmatprep.subr.bf16.mxu0 %v1093_v1  ;;  %1047 = vmatprep.subr.bf16.mxu1 %v1098_v25  ;;  %v1100_v49 = vld [vmem:[%s1228_s26 + $0x10] sm:$0xff]   ;;  %v1337_v53 = vld [vmem:[#allocation2 + $0x38] sm:$0xff]  ;;  %275 = vst.msk [vmem:[#allocation4 + $0x38] sm:$0xff] %vm267_vm2, %v1176_v24 }
  0x15   : > { %1048 = vmatpush3.bf16.xpose.msra.mxu1 %v1098_v25  ;;  %v1101_v60 = vld [vmem:[%s1228_s26 + $0x18] sm:$0xff]  }
  0x16   : > { %1049 = vmatprep.subr.bf16.mxu1 %v1099_v35 }
  0x17   : > { %1038 = vmatpush3.bf16.msra.mxu0 %v1093_v1 }
  0x1a   : > { %1040 = vmatmul.mubr.msk.bf16.vlgmr.msra.gmra.mrb[0].mxu0 %vm320_vm0, %v1095_v3 }
  0x1b   : > { %1043 = vmatprep.mubr.msk.bf16.mxu0 %vm320_vm0, %v1096_v4 }
  0x1d   : > { %1050 = vmatpush3.bf16.xpose.msra.mxu1 %v1099_v35 }
  0x1e   : > { %1051 = vmatprep.subr.bf16.mxu1 %v1100_v49 }
  0x22   : > { %1044 = vmatmul.mubr.msk.bf16.gmra.mrb[4].mxu0 %vm320_vm0, %v1097_v5 }
  0x25   : > { %1052 = vmatpush3.bf16.xpose.msra.mxu1 %v1100_v49 }
  0x26   : > { %1053 = vmatprep.subr.bf16.mxu1 %v1101_v60 }
  0x2d   : > { %1054 = vmatpush3.bf16.xpose.msra.mxu1 %v1101_v60 }
  0xed   : > { %v1041_v7 = vpop.f32.mrb[0].mxu0 }
  0xee   : > { %v1238_v8 = vmul.f32 0.17677669, %v1041_v7  ;;  %v367_v9 = vpop.f32.mrb[1].mxu0 }
  0xef   : > { %v1240_v10 = vmul.f32 0.17677669, %v367_v9  ;;  %v1042_v11 = vpop.f32.mrb[2].mxu0 }
  0xf0   : > { %418 = vmax.xlane.f32.xlu1 %v1238_v8  ;;  %v370_v12 = vpop.f32.mrb[3].mxu0  ;;  %v1244_v13 = vmul.f32 0.17677669, %v1042_v11 }
  0xf1   : > { %414 = vmax.xlane.f32.xlu0 %v1240_v10  ;;  %v1246_v14 = vmul.f32 0.17677669, %v370_v12 }
  0xf4   : > { %420 = vmax.xlane.f32.xlu1 %v1244_v13 }
  0xf5   : > { %416 = vmax.xlane.f32.xlu0 %v1246_v14  ;;  %v1045_v15 = vpop.f32.mrb[4].mxu0 }
  0xf6   : > { %v383_v16 = vpop.f32.mrb[5].mxu0  ;;  %v1255_v21 = vmul.f32 0.17677669, %v1045_v15 }
  0xf7   : > { %v1250_v17 = vmul.f32 0.17677669, %v383_v16  ;;  %v1046_v18 = vpop.f32.mrb[6].mxu0 }
  0xf8   : > { %v386_v19 = vpop.f32.mrb[7].mxu0  ;;  %v1258_v22 = vmul.f32 0.17677669, %v1046_v18 }
  0xf9   : > { %v1252_v20 = vmul.f32 0.17677669, %v386_v19  ;;  %422 = vmax.xlane.f32.xlu0 %v1250_v17 }
  0xfb   : > { %424 = vmax.xlane.f32.xlu1 %v1252_v20 }
  0xfd   : > { %426 = vmax.xlane.f32.xlu0 %v1255_v21 }
  0xff   : > { %428 = vmax.xlane.f32.xlu1 %v1258_v22 }
 0x17d   : > { %v419_v28 = vpop.xlane.xlu1 %418 }
 0x17e   : > { %v1284_v29 = vmax.f32 %v1279_v26, %v419_v28  ;;  %v415_v30 = vpop.xlane.xlu0 %414 }
 0x17f   : > { %v1287_v31 = vmax.f32 %v1281_v27, %v415_v30 }
 0x180   : > { %v440_v33 = vsub.f32 %v1279_v26, %v1284_v29  ;;  %751 = vst.msk [vmem:[#allocation2 + $0x10] sm:$0xff] %vm250_vm1, %v1284_v29  ;;  %474 = vperm.xlu1 %1091, %v1284_v29  }
 0x181   : > { %v438_v36 = vsub.f32 %v1281_v27, %v1287_v31  ;;  %749 = vst.msk [vmem:[#allocation2] sm:$0xff] %vm250_vm1, %v1287_v31  ;;  %v421_v37 = vpop.xlane.xlu1 %420  ;;  %464 = vperm.xlu0 %1090, %v1287_v31  }
 0x182   : > { %v1305_v38 = vmax.f32 %v1289_v32, %v421_v37  ;;  %v417_v39 = vpop.xlane.xlu0 %416  ;;  %v450_v60 = vmul.f32 1.442695, %v440_v33 }
 0x183   : > { %v1308_v40 = vmax.f32 %v1296_v34, %v417_v39 }
 0x184   : > { %v441_v41 = vsub.f32 %v1289_v32, %v1305_v38  ;;  %752 = vst.msk [vmem:[#allocation2 + $0x18] sm:$0xff] %vm250_vm1, %v1305_v38  ;;  %479 = vperm.xlu1 %1091, %v1305_v38  }
 0x185   : > { %v439_v43 = vsub.f32 %v1296_v34, %v1308_v40  ;;  %750 = vst.msk [vmem:[#allocation2 + $0x8] sm:$0xff] %vm250_vm1, %v1308_v40 }
 0x186   : > { %v423_v44 = vpop.xlane.xlu0 %422 }
 0x187   : > { %v1324_v46 = vmax.f32 %v1315_v42, %v423_v44 }
 0x188   : > { %469 = vperm.xlu1 %1091, %v1308_v40   ;;  %v425_v47 = vpop.xlane.xlu1 %424 }
 0x189   : > { %v442_v50 = vsub.f32 %v1315_v42, %v1324_v46  ;;  %753 = vst.msk [vmem:[#allocation2 + $0x20] sm:$0xff] %vm250_vm1, %v1324_v46  ;;  %v1335_v51 = vmax.f32 %v1321_v45, %v425_v47  ;;  %v528_v42 = vld [vmem:[#allocation3 + $0x10] sm:$0xff] }
 0x18a   : > { %v427_v52 = vpop.xlane.xlu0 %426 }
 0x18b   : > { %v443_v54 = vsub.f32 %v1321_v45, %v1335_v51  ;;  %754 = vst.msk [vmem:[#allocation2 + $0x28] sm:$0xff] %vm250_vm1, %v1335_v51  ;;  %v1344_v55 = vmax.f32 %v1327_v48, %v427_v52  ;;  %v454_v34 = vmul.f32 1.442695, %v442_v50 }
 0x18c   : > { %v429_v56 = vpop.xlane.xlu1 %428 }
 0x18d   : > { %v444_v57 = vsub.f32 %v1327_v48, %v1344_v55  ;;  %755 = vst.msk [vmem:[#allocation2 + $0x30] sm:$0xff] %vm250_vm1, %v1344_v55  ;;  %v1351_v58 = vmax.f32 %v1337_v53, %v429_v56  ;;  %494 = vperm.xlu1 %1091, %v1344_v55   ;;  %v448_v56 = vmul.f32 1.442695, %v439_v43  ;;  %v456_v26 = vmul.f32 1.442695, %v443_v54  ;;  %v526_v43 = vld [vmem:[#allocation3] sm:$0xff] }
 0x18f   : > { %v445_v59 = vsub.f32 %v1337_v53, %v1351_v58  ;;  %756 = vst.msk [vmem:[#allocation2 + $0x38] sm:$0xff] %vm250_vm1, %v1351_v58  ;;  %v458_v27 = vmul.f32 1.442695, %v444_v57  ;;  %v529_v53 = vld [vmem:[#allocation3 + $0x18] sm:$0xff]  ;;  %v527_v57 = vld [vmem:[#allocation3 + $0x8] sm:$0xff] }
 0x191   : > { %484 = vperm.xlu1 %1091, %v1324_v46   ;;  %v460_v29 = vmul.f32 1.442695, %v445_v59 }
 0x195   : > { %489 = vperm.xlu1 %1091, %v1335_v51  }
 0x199   : > { %499 = vperm.xlu1 %1091, %v1351_v58  }
 0x1ff   : > { %v475_v61 = vpop.permute.xlu1 %474 }
 0x200   : > { %v504_v62 = vsub.f32 %v1238_v8, %v475_v61  ;;  %v465_v63 = vpop.permute.xlu0 %464  ;;  %v452_v61 = vmul.f32 1.442695, %v441_v41 }
 0x201   : > { %v502_v0 = vsub.f32 %v1240_v10, %v465_v63 }
 0x202   : > { %v514_v1 = vmul.f32 1.442695, %v504_v62 }
 0x203   : > { %v510_v2 = vmul.f32 1.442695, %v502_v0  ;;  %v480_v3 = vpop.permute.xlu1 %479 }
 0x204   : > { %1102 = vpow2.f32 %v514_v1  ;;  %v505_v4 = vsub.f32 %v1244_v13, %v480_v3  ;;  %v530_v3 = vld [vmem:[#allocation3 + $0x20] sm:$0xff] }
 0x205   : > { %1104 = vpow2.f32 %v510_v2 }
 0x206   : > { %v516_v5 = vmul.f32 1.442695, %v505_v4 }
 0x207   : > { %v470_v6 = vpop.permute.xlu1 %469 }
 0x208   : > { %1106 = vpow2.f32 %v516_v5  ;;  %v503_v7 = vsub.f32 %v1246_v14, %v470_v6 }
 0x20a   : > { %v512_v9 = vmul.f32 1.442695, %v503_v7  ;;  %v532_v7 = vld [vmem:[#allocation3 + $0x30] sm:$0xff] }
 0x20c   : > { %1108 = vpow2.f32 %v512_v9  ;;  %v495_v11 = vpop.permute.xlu1 %494  ;;  %v531_v9 = vld [vmem:[#allocation3 + $0x28] sm:$0xff] }
 0x20d   : > { %v508_v10 = vsub.f32 %v1255_v21, %v495_v11 }
 0x20e   : > { %v1103_v12 = vpop.eup %1102 }
 0x20f   : > { %v1105_v8 = vpop.eup %1104  ;;  %546 = vadd.xlane.f32.xlu0 %v1103_v12  ;;  %v522_v19 = vmul.f32 1.442695, %v508_v10 }
 0x210   : > { %542 = vadd.xlane.f32.xlu1 %v1105_v8  ;;  %v485_v15 = vpop.permute.xlu1 %484 }
 0x211   : > { %v506_v16 = vsub.f32 %v1250_v17, %v485_v15 }
 0x212   : > { %v1107_v18 = vpop.eup %1106 }
 0x213   : > { %v518_v13 = vmul.f32 1.442695, %v506_v16  ;;  %v632_v37 = vpack.c.bf16 %v1107_v18, %v1103_v12 }
 0x214   : > { %548 = vadd.xlane.f32.xlu1 %v1107_v18  ;;  %v490_v23 = vpop.permute.xlu1 %489 }
 0x215   : > { %1110 = vpow2.f32 %v518_v13  ;;  %v507_v14 = vsub.f32 %v1252_v20, %v490_v23  ;;  %v533_v13 = vld [vmem:[#allocation3 + $0x38] sm:$0xff] }
 0x216   : > { %v1109_v25 = vpop.eup %1108  ;;  %1112 = vpow2.f32 %v522_v19 }
 0x217   : > { %v520_v28 = vmul.f32 1.442695, %v507_v14  ;;  %544 = vadd.xlane.f32.xlu0 %v1109_v25  ;;  %v631_v30 = vpack.c.bf16 %v1109_v25, %v1105_v8 }
 0x218   : > { %v500_v35 = vpop.permute.xlu1 %499 }
 0x219   : > { %1114 = vpow2.f32 %v520_v28  ;;  %v509_v21 = vsub.f32 %v1258_v22, %v500_v35  ;;  %1055 = vmatprep.mubr.bf16.mxu1 %v631_v30  ;;  %v446_v22 = vmul.f32 1.442695, %v438_v36 }
 0x21a   : > { %1056 = vmatmul.mubr.bf16.vlgmr.msra.gmra.mrb[0].mxu1 %v632_v37 }
 0x21b   : > { %v524_v17 = vmul.f32 1.442695, %v509_v21 }
 0x21d   : > { %1116 = vpow2.f32 %v524_v17 }
 0x21e   : > { %1118 = vpow2.f32 %v448_v56 }
 0x21f   : > { %v1111_v39 = vpop.eup %1110  ;;  %1120 = vpow2.f32 %v446_v22 }
 0x220   : > { %550 = vadd.xlane.f32.xlu0 %v1111_v39  ;;  %v1113_v44 = vpop.eup %1112  ;;  %1122 = vpow2.f32 %v450_v60  ;;  %v577_v60 = vld [vmem:[#allocation4 + $0x10] sm:$0xff] }
 0x221   : > { %1124 = vpow2.f32 %v452_v61 }
 0x222   : > { %1126 = vpow2.f32 %v454_v34  ;;  %v575_v34 = vld [vmem:[#allocation4] sm:$0xff] }
 0x223   : > { %v1115_v47 = vpop.eup %1114  ;;  %1128 = vpow2.f32 %v456_v26  ;;  %v578_v26 = vld [vmem:[#allocation4 + $0x18] sm:$0xff] }
 0x224   : > { %554 = vadd.xlane.f32.xlu0 %v1113_v44  ;;  %552 = vadd.xlane.f32.xlu1 %v1115_v47  ;;  %v633_v20 = vpack.c.bf16 %v1115_v47, %v1111_v39  ;;  %1130 = vpow2.f32 %v458_v27 }
 0x225   : > { %1132 = vpow2.f32 %v460_v29  ;;  %v576_v29 = vld [vmem:[#allocation4 + $0x8] sm:$0xff] }
 0x226   : > { %1059 = vmatprep.mubr.bf16.mxu1 %v633_v20 }
 0x227   : > { %v1117_v49 = vpop.eup %1116 }
 0x228   : > { %556 = vadd.xlane.f32.xlu1 %v1117_v49  ;;  %v634_v52 = vpack.c.bf16 %v1117_v49, %v1113_v44  ;;  %v1119_v31 = vpop.eup %1118 }
 0x229   : > { %v1121_v32 = vpop.eup %1120  ;;  %v535_v62 = vmul.f32 %v1119_v31, %v527_v57 }
 0x22a   : > { %1060 = vmatmul.mubr.bf16.gmra.mrb[4].mxu1 %v634_v52  ;;  %v1123_v24 = vpop.eup %1122  ;;  %v534_v48 = vmul.f32 %v1121_v32, %v526_v43 }
 0x22b   : > { %v1125_v33 = vpop.eup %1124  ;;  %v536_v45 = vmul.f32 %v1123_v24, %v528_v42 }
 0x22c   : > { %v1127_v36 = vpop.eup %1126  ;;  %v537_v55 = vmul.f32 %v1125_v33, %v529_v53 }
 0x22d   : > { %v1129_v38 = vpop.eup %1128  ;;  %v538_v5 = vmul.f32 %v1127_v36, %v530_v3 }
 0x22e   : > { %v1131_v40 = vpop.eup %1130  ;;  %v539_v10 = vmul.f32 %v1129_v38, %v531_v9 }
 0x22f   : > { %v1133_v41 = vpop.eup %1132  ;;  %v540_v8 = vmul.f32 %v1131_v40, %v532_v7 }
 0x230   : > { %v541_v14 = vmul.f32 %v1133_v41, %v533_v13 }
 0x239   : > { %590 = vperm.xlu1 %1091, %v1119_v31  }
 0x23a   : > { %585 = vperm.xlu0 %1090, %v1121_v32  }
 0x23d   : > { %595 = vperm.xlu1 %1091, %v1123_v24  }
 0x23e   : > { %600 = vperm.xlu0 %1090, %v1125_v33  }
 0x241   : > { %605 = vperm.xlu1 %1091, %v1127_v36  }
 0x242   : > { %610 = vperm.xlu0 %1090, %v1129_v38  }
 0x245   : > { %615 = vperm.xlu1 %1091, %v1131_v40  }
 0x246   : > { %620 = vperm.xlu0 %1090, %v1133_v41  }
 0x29c   : > { %v547_v46 = vpop.xlane.xlu0 %546 }
 0x29d   : > { %v560_v50 = vadd.f32 %v547_v46, %v536_v45  ;;  %v543_v51 = vpop.xlane.xlu1 %542 }
 0x29e   : > { %v558_v54 = vadd.f32 %v543_v51, %v534_v48  ;;  %v581_v51 = vld [vmem:[#allocation4 + $0x30] sm:$0xff] }
 0x29f   : > { %569 = vst.msk [vmem:[#allocation3 + $0x10] sm:$0xff] %vm250_vm1, %v560_v50 }
 0x2a0   : > { %567 = vst.msk [vmem:[#allocation3] sm:$0xff] %vm250_vm1, %v558_v54  ;;  %v579_v54 = vld [vmem:[#allocation4 + $0x20] sm:$0xff] }
 0x2a1   : > { %v549_v58 = vpop.xlane.xlu1 %548 }
 0x2a2   : > { %v561_v59 = vadd.f32 %v549_v58, %v537_v55  ;;  %v582_v55 = vld [vmem:[#allocation4 + $0x38] sm:$0xff]  ;;  %v580_v58 = vld [vmem:[#allocation4 + $0x28] sm:$0xff] }
 0x2a4   : > { %570 = vst.msk [vmem:[#allocation3 + $0x18] sm:$0xff] %vm250_vm1, %v561_v59  ;;  %v545_v63 = vpop.xlane.xlu0 %544 }
 0x2a5   : > { %v559_v0 = vadd.f32 %v545_v63, %v535_v62 }
 0x2a6   : > { %v770_v1 = vld [vmem:[#allocation3 + $0x10] sm:$0xff] }
 0x2a7   : > { %568 = vst.msk [vmem:[#allocation3 + $0x8] sm:$0xff] %vm250_vm1, %v559_v0  ;;  %1134 = vrcp.f32 %v770_v1  ;;  %v768_v2 = vld [vmem:[#allocation3] sm:$0xff] }
 0x2a8   : > { %1136 = vrcp.f32 %v768_v2 }
 0x2ab   : > { %v771_v4 = vld [vmem:[#allocation3 + $0x18] sm:$0xff] }
 0x2ac   : > { %1138 = vrcp.f32 %v771_v4 }
 0x2ad   : > { %v551_v6 = vpop.xlane.xlu0 %550 }
 0x2ae   : > { %v562_v11 = vadd.f32 %v551_v6, %v538_v5  ;;  %v769_v12 = vld [vmem:[#allocation3 + $0x8] sm:$0xff] }
 0x2af   : > { %1140 = vrcp.f32 %v769_v12 }
 0x2b0   : > { %571 = vst.msk [vmem:[#allocation3 + $0x20] sm:$0xff] %vm250_vm1, %v562_v11 }
 0x2b1   : > { %v1135_v15 = vpop.eup %1134  ;;  %v555_v16 = vpop.xlane.xlu0 %554 }
 0x2b2   : > { %v553_v18 = vpop.xlane.xlu1 %552  ;;  %v564_v19 = vadd.f32 %v555_v16, %v540_v8  ;;  %796 = vperm.xlu1 %1091, %v1135_v15   ;;  %v1137_v25 = vpop.eup %1136 }
 0x2b3   : > { %v563_v23 = vadd.f32 %v553_v18, %v539_v10 }
 0x2b4   : > { %573 = vst.msk [vmem:[#allocation3 + $0x30] sm:$0xff] %vm250_vm1, %v564_v19 }
 0x2b5   : > { %572 = vst.msk [vmem:[#allocation3 + $0x28] sm:$0xff] %vm250_vm1, %v563_v23 }
 0x2b6   : > { %v557_v28 = vpop.xlane.xlu1 %556  ;;  %v1139_v30 = vpop.eup %1138  ;;  %786 = vperm.xlu1 %1091, %v1137_v25  }
 0x2b7   : > { %v565_v35 = vadd.f32 %v557_v28, %v541_v14  ;;  %801 = vperm.xlu0 %1090, %v1139_v30   ;;  %v772_v37 = vld [vmem:[#allocation3 + $0x20] sm:$0xff] }
 0x2b8   : > { %1142 = vrcp.f32 %v772_v37 }
 0x2b9   : > { %574 = vst.msk [vmem:[#allocation3 + $0x38] sm:$0xff] %vm250_vm1, %v565_v35  ;;  %v1141_v21 = vpop.eup %1140  ;;  %v586_v22 = vpop.permute.xlu0 %585 }
 0x2ba   : > { %v591_v56 = vpop.permute.xlu1 %590  ;;  %v623_v32 = vmul.f32 %v586_v22, %v575_v34 }
 0x2bb   : > { %791 = vperm.xlu0 %1090, %v1141_v21   ;;  %v774_v17 = vld [vmem:[#allocation3 + $0x30] sm:$0xff]  ;;  %v624_v40 = vmul.f32 %v591_v56, %v576_v29 }
 0x2bc   : > { %v773_v39 = vld [vmem:[#allocation3 + $0x28] sm:$0xff]  ;;  %1144 = vrcp.f32 %v774_v17 }
 0x2bd   : > { %1146 = vrcp.f32 %v773_v39  ;;  %v601_v27 = vpop.permute.xlu0 %600 }
 0x2be   : > { %v596_v61 = vpop.permute.xlu1 %595  ;;  %v626_v33 = vmul.f32 %v601_v27, %v578_v26 }
 0x2bf   : > { %v625_v31 = vmul.f32 %v596_v61, %v577_v60 }
 0x2c0   : > { %v775_v44 = vld [vmem:[#allocation3 + $0x38] sm:$0xff] }
 0x2c1   : > { %1148 = vrcp.f32 %v775_v44  ;;  %v611_v50 = vpop.permute.xlu0 %610 }
 0x2c2   : > { %v1143_v47 = vpop.eup %1142  ;;  %v606_v48 = vpop.permute.xlu1 %605  ;;  %v628_v3 = vmul.f32 %v611_v50, %v580_v58 }
 0x2c3   : > { %806 = vperm.xlu1 %1091, %v1143_v47   ;;  %v627_v62 = vmul.f32 %v606_v48, %v579_v54 }
 0x2c5   : > { %v621_v57 = vpop.permute.xlu0 %620 }
 0x2c6   : > { %v1145_v20 = vpop.eup %1144  ;;  %v616_v53 = vpop.permute.xlu1 %615  ;;  %v630_v0 = vmul.f32 %v621_v57, %v582_v55 }
 0x2c7   : > { %v1147_v49 = vpop.eup %1146  ;;  %816 = vperm.xlu1 %1091, %v1145_v20   ;;  %v629_v59 = vmul.f32 %v616_v53, %v581_v51 }
 0x2c8   : > { %811 = vperm.xlu0 %1090, %v1147_v49  }
 0x2cb   : > { %v1149_v52 = vpop.eup %1148 }
 0x2cc   : > { %821 = vperm.xlu0 %1090, %v1149_v52  }
 0x2ed   : > { %v1057_v24 = vpop.f32.mrb[0].mxu1 }
 0x2ee   : > { %v734_v36 = vadd.f32 %v1057_v24, %v625_v31  ;;  %v701_v38 = vpop.f32.mrb[1].mxu1 }
 0x2ef   : > { %v732_v41 = vadd.f32 %v701_v38, %v623_v32  ;;  %v1058_v42 = vpop.f32.mrb[2].mxu1 }
 0x2f0   : > { %743 = vst.msk [vmem:[#allocation4 + $0x10] sm:$0xff] %vm267_vm2, %v734_v36  ;;  %v735_v43 = vadd.f32 %v1058_v42, %v626_v33  ;;  %v704_v45 = vpop.f32.mrb[3].mxu1 }
 0x2f1   : > { %741 = vst.msk [vmem:[#allocation4] sm:$0xff] %vm267_vm2, %v732_v41  ;;  %v733_v46 = vadd.f32 %v704_v45, %v624_v40 }
 0x2f2   : > { %744 = vst.msk [vmem:[#allocation4 + $0x18] sm:$0xff] %vm267_vm2, %v735_v43 }
 0x2f3   : > { %742 = vst.msk [vmem:[#allocation4 + $0x8] sm:$0xff] %vm267_vm2, %v733_v46 }
 0x2f7   : > { %v762_v11 = vld [vmem:[#allocation4 + $0x10] sm:$0xff] }
 0x2f8   : > { %v760_v15 = vld [vmem:[#allocation4] sm:$0xff] }
 0x2f9   : > { %v763_v13 = vld [vmem:[#allocation4 + $0x18] sm:$0xff] }
 0x2fa   : > { %v761_v30 = vld [vmem:[#allocation4 + $0x8] sm:$0xff] }
 0x2fd   : > { %v1061_v63 = vpop.f32.mrb[4].mxu1 }
 0x2fe   : > { %v738_v1 = vadd.f32 %v1061_v63, %v629_v59  ;;  %v717_v2 = vpop.f32.mrb[5].mxu1 }
 0x2ff   : > { %v736_v4 = vadd.f32 %v717_v2, %v627_v62  ;;  %v1062_v5 = vpop.f32.mrb[6].mxu1 }
 0x300   : > { %747 = vst.msk [vmem:[#allocation4 + $0x30] sm:$0xff] %vm267_vm2, %v738_v1  ;;  %v739_v6 = vadd.f32 %v1062_v5, %v630_v0  ;;  %v720_v7 = vpop.f32.mrb[7].mxu1 }
 0x301   : > { %745 = vst.msk [vmem:[#allocation4 + $0x20] sm:$0xff] %vm267_vm2, %v736_v4  ;;  %v737_v9 = vadd.f32 %v720_v7, %v628_v3 }
 0x302   : > { %748 = vst.msk [vmem:[#allocation4 + $0x38] sm:$0xff] %vm267_vm2, %v739_v6 }
 0x303   : > { %746 = vst.msk [vmem:[#allocation4 + $0x28] sm:$0xff] %vm267_vm2, %v737_v9 }
 0x307   : > { %v766_v47 = vld [vmem:[#allocation4 + $0x30] sm:$0xff] }
 0x308   : > { %v764_v21 = vld [vmem:[#allocation4 + $0x20] sm:$0xff] }
 0x309   : > { %v767_v34 = vld [vmem:[#allocation4 + $0x38] sm:$0xff] }
 0x30a   : > { %v765_v49 = vld [vmem:[#allocation4 + $0x28] sm:$0xff] }
 0x331   : > { %v797_v12 = vpop.permute.xlu1 %796 }
 0x332   : > { %v826_v8 = vmul.f32 %v797_v12, %v762_v11 }
 0x334   : > { %v1015_v10 = vpack.c.bf16 %v826_v8, %v826_v8 }
 0x335   : > { %v787_v16 = vpop.permute.xlu1 %786 }
 0x336   : > { %867 = vst.msk [vmem:[%s1430_s29 + $0x8] sm:$0xf] %vm864_vm3, %v1015_v10  ;;  %v824_v18 = vmul.f32 %v787_v16, %v760_v15  ;;  %v802_v19 = vpop.permute.xlu0 %801 }
 0x337   : > { %v827_v23 = vmul.f32 %v802_v19, %v763_v13 }
 0x338   : > { %v1013_v14 = vpack.c.bf16 %v824_v18, %v824_v18 }
 0x339   : > { %v1016_v25 = vpack.c.bf16 %v827_v23, %v827_v23 }
 0x33a   : > { %865 = vst.msk [vmem:[%s1430_s29] sm:$0xf] %vm864_vm3, %v1013_v14  ;;  %v792_v28 = vpop.permute.xlu0 %791 }
 0x33b   : > { %868 = vst.msk [vmem:[%s1430_s29 + $0xc] sm:$0xf] %vm864_vm3, %v1016_v25  ;;  %v825_v35 = vmul.f32 %v792_v28, %v761_v30 }
 0x33d   : > { %v1014_v37 = vpack.c.bf16 %v825_v35, %v825_v35 }
 0x33f   : > { %866 = vst.msk [vmem:[%s1430_s29 + $0x4] sm:$0xf] %vm864_vm3, %v1014_v37 }
 0x342   : > { %v807_v17 = vpop.permute.xlu1 %806 }
 0x343   : > { %v828_v39 = vmul.f32 %v807_v17, %v764_v21 }
 0x345   : > { %v1017_v44 = vpack.c.bf16 %v828_v39, %v828_v39 }
 0x346   : > { %v817_v20 = vpop.permute.xlu1 %816 }
 0x347   : > { %869 = vst.msk [vmem:[%s1430_s29 + $0x10] sm:$0xf] %vm864_vm3, %v1017_v44  ;;  %v812_v52 = vpop.permute.xlu0 %811  ;;  %v830_v56 = vmul.f32 %v817_v20, %v766_v47 }
 0x348   : > { %v829_v22 = vmul.f32 %v812_v52, %v765_v49 }
 0x349   : > { %v1019_v60 = vpack.c.bf16 %v830_v56, %v830_v56 }
 0x34a   : > { %v1018_v61 = vpack.c.bf16 %v829_v22, %v829_v22 }
 0x34b   : > { %871 = vst.msk [vmem:[%s1430_s29 + $0x18] sm:$0xf] %vm864_vm3, %v1019_v60  ;;  %v822_v26 = vpop.permute.xlu0 %821 }
 0x34c   : > { %870 = vst.msk [vmem:[%s1430_s29 + $0x14] sm:$0xf] %vm864_vm3, %v1018_v61  ;;  %v831_v27 = vmul.f32 %v822_v26, %v767_v34 }
 0x34e   : > { %v1020_v29 = vpack.c.bf16 %v831_v27, %v831_v27 }
 0x350   : > { %872 = vst.msk [vmem:[%s1430_s29 + $0x1c] sm:$0xf] %vm864_vm3, %v1020_v29 }
 0x351 PF: > { %s13_s14 = sadd.s32 1, %s1172_s14   ;;  %s1461_s12 = smov %s1168_s13 }
 0x352   : > { %p10_p5 = scmp.ge.s32.totalorder %s13_s14, 4   ;;  %s1462_s13 = smov %s1464_s15 }
 0x354   :  { %12 = sbr.rel (!%p10_p5) target bundleno = 2 (0x2), region = 76 }

// kernel: segment.3
= control target key start
LH: loop header
LB: loop body
LE: loop exit
PB: predicated region body
PF: predicated region fallthrough
CT: control target
= control target key end

     0   :  { %vm55_vm0 = vsmask.f32 3328  ;;  %vm56_vm1 = vsmask.f32 7440  ;;  %vm339_vm3 = vcmask 523264   ;;  %vm694_vm4 = vcmask 1042432   ;;  %s5421_s1 = inlined_call_operand.vmem [shape: bf16[9,64,128], index: 1, kind: input, shape index: {}]   ;;  %s5422_s0 = inlined_call_operand.vmem [shape: bf16[2,10,10,64], index: 0, kind: input, shape index: {}]   ;;  %s5423_s2 = inlined_call_operand.vmem [shape: f32[1,128], index: 2, kind: input, shape index: {}]   ;;  %s5424_s3 = inlined_call_operand.vmem [shape: bf16[128,128], index: 3, kind: output, shape index: {}]  }
   0x1   :  { %v3988_v0 = vld [vmem:[%s5421_s1 + $0x20] sm:$0xff]   ;;  %v3990_v2 = vld [vmem:[%s5421_s1 + $0x28] sm:$0xff]   ;;  %v3992_v4 = vld [vmem:[%s5421_s1 + $0x30] sm:$0xff]   ;;  %vm695_vm5 = vcmask 1046532  }
   0x2   :  { %v3989_v1 = vld [vmem:[%s5421_s1 + $0x80] sm:$0xff]   ;;  %3636 = vmatprep.subr.bf16.mxu1 %v3988_v0  ;;  %v3991_v3 = vld [vmem:[%s5421_s1 + $0x88] sm:$0xff]   ;;  %v3993_v5 = vld [vmem:[%s5421_s1 + $0x90] sm:$0xff]  }
   0x3   :  { %3732 = vmatprep.subr.bf16.mxu0 %v3989_v1  ;;  %3637 = vmatpush3.bf16.msra.mxu1 %v3988_v0  ;;  %v3994_v6 = vld [vmem:[%s5421_s1 + $0x38] sm:$0xff]   ;;  %v4105_v8 = vld [vmem:[%s5422_s0] sm:$0xf]  ;;  %v4110_v9 = vld [vmem:[%s5422_s0 + $0x8] sm:$0xf] }
   0x4   :  { %3733 = vmatpush3.bf16.msra.mxu0 %v3989_v1  ;;  %3638 = vmatprep.subr.bf16.mxu1 %v3990_v2  ;;  %v3995_v7 = vld [vmem:[%s5421_s1 + $0x98] sm:$0xff]   ;;  %v4115_v10 = vld [vmem:[%s5422_s0 + $0x4] sm:$0x1]  ;;  %v4120_v11 = vld [vmem:[%s5422_s0 + $0xc] sm:$0x1]  ;;  %v59_v12 = vshrl.u32 %v4105_v8, 16  ;;  %v3056_v28 = vcombine.low %v4105_v8, %v4110_v9 }
   0x5   :  { %3734 = vmatprep.subr.bf16.mxu0 %v3991_v3  ;;  %v62_v13 = vshll.u32 %v4105_v8, 16  ;;  %v68_v14 = vshll.u32 %v4115_v10, 16  ;;  %v73_v15 = vshrl.u32 %v4110_v9, 16  ;;  %v76_v16 = vshll.u32 %v4110_v9, 16  ;;  %v3164_v18 = vld [vmem:[%s5422_s0 + $0x8] sm:$0xf]  ;;  %vm4154_vm2 = vmor %vm55_vm0, %vm56_vm1 }
   0x6   :  { %v82_v17 = vshll.u32 %v4120_v11, 16  ;;  %v61_v19 = vrot.slane %v59_v12, 4  ;;  %v4134_v23 = vld [vmem:[%s5422_s0 + $0xc] sm:$0x1]  ;;  %v3166_v26 = vld [vmem:[%s5422_s0 + $0x10] sm:$0xf]  ;;  %vm4406_vm6 = vmor %vm694_vm4, %vm695_vm5 }
   0x7   :  { %3639 = vmatpush3.bf16.msra.mxu1 %v3990_v2  ;;  %v64_v20 = vrot.slane %v62_v13, 5  ;;  %v70_v21 = vrot.slane %v68_v14, 5  ;;  %v75_v22 = vrot.slane %v73_v15, 4  ;;  %v78_v24 = vrot.slane %v76_v16, 5  ;;  %v4142_v27 = vld [vmem:[%s5422_s0 + $0x14] sm:$0x1] }
   0x8   :  { %3735 = vmatpush3.bf16.msra.mxu0 %v3991_v3  ;;  %3640 = vmatprep.subr.bf16.mxu1 %v3992_v4  ;;  %v84_v25 = vrot.slane %v82_v17, 5  ;;  %v1215_v30 = vshrl.u32 %v3164_v18, 16  ;;  %v1218_v31 = vshll.u32 %v3164_v18, 16  ;;  %v1224_v32 = vshll.u32 %v4134_v23, 16  ;;  %v4150_v33 = vld [vmem:[%s5421_s1] sm:$0xff]  }
   0x9   :  { %3736 = vmatprep.subr.bf16.mxu0 %v3993_v5  ;;  %v65_v29 = vor.u32 %v64_v20, %v61_v19  ;;  %v79_v35 = vor.u32 %v78_v24, %v75_v22  ;;  %v1229_v36 = vshrl.u32 %v3166_v26, 16  ;;  %v1232_v37 = vshll.u32 %v3166_v26, 16  ;;  %v4162_v39 = vld [vmem:[%s5422_s0 + $0x10] sm:$0xf]  ;;  %v4167_v40 = vld [vmem:[%s5421_s1 + $0xa0] sm:$0xff]  }
   0xa   :  { %v1238_v38 = vshll.u32 %v4142_v27, 16  ;;  %v1217_v42 = vrot.slane %v1215_v30, 4  ;;  %v1220_v43 = vrot.slane %v1218_v31, 5  ;;  %v4172_v44 = vld [vmem:[%s5422_s0 + $0x18] sm:$0xf]  ;;  %v1226_v46 = vrot.slane %v1224_v32, 5 }
   0xb   :  { %3641 = vmatpush3.bf16.msra.mxu1 %v3992_v4  ;;  %v66_v41 = vrot.slane %v65_v29, 4  ;;  %v80_v45 = vrot.slane %v79_v35, 4  ;;  %v1231_v47 = vrot.slane %v1229_v36, 4  ;;  %v1234_v48 = vrot.slane %v1232_v37, 5  ;;  %v4177_v49 = vld [vmem:[%s5422_s0 + $0x14] sm:$0x1] }
   0xc   :  { %3737 = vmatpush3.bf16.msra.mxu0 %v3993_v5  ;;  %3642 = vmatprep.subr.bf16.mxu1 %v3994_v6  ;;  %v1221_v51 = vor.u32 %v1220_v43, %v1217_v42  ;;  %v1240_v52 = vrot.slane %v1238_v38, 5  ;;  %v1682_v53 = vrot.slane %v4134_v23, 5  ;;  %v4189_v56 = vld [vmem:[%s5422_s0 + $0x1c] sm:$0x1]  ;;  %v87_v57 = vshrl.u32 %v4162_v39, 16 }
   0xd   :  { %3738 = vmatprep.subr.bf16.mxu0 %v3995_v7  ;;  %v71_v50 = vsel %vm4154_vm2, %v66_v41, %v70_v21  ;;  %v85_v54 = vsel %vm4154_vm2, %v80_v45, %v84_v25  ;;  %v1235_v55 = vor.u32 %v1234_v48, %v1231_v47  ;;  %v90_v58 = vshll.u32 %v4162_v39, 16  ;;  %v3168_v59 = vld [vmem:[%s5422_s0 + $0x18] sm:$0xf]  ;;  %v4201_v0 = vld [vmem:[%s5422_s0 + $0x1c] sm:$0x1] }
   0xe   :  { %v3036_v60 = vcombine.low %v71_v50, %v85_v54  ;;  %v1222_v61 = vrot.slane %v1221_v51, 4  ;;  %v96_v62 = vshll.u32 %v4177_v49, 16  ;;  %v101_v63 = vshrl.u32 %v4172_v44, 16  ;;  %v3170_v5 = vld [vmem:[%s5422_s0 + $0x20] sm:$0xf] }
   0xf   :  { %3643 = vmatpush3.bf16.msra.mxu1 %v3994_v6  ;;  %v1236_v1 = vrot.slane %v1235_v55, 4  ;;  %v89_v2 = vrot.slane %v87_v57, 4  ;;  %v92_v3 = vrot.slane %v90_v58, 5  ;;  %v104_v4 = vshll.u32 %v4172_v44, 16  ;;  %v4214_v13 = vld [vmem:[%s5422_s0 + $0x24] sm:$0x1] }
  0x10   :  { %3739 = vmatpush3.bf16.msra.mxu0 %v3995_v7  ;;  %3660 = vmatprep.subr.bf16.mxu1 %v4150_v33  ;;  %v1227_v6 = vsel %vm4154_vm2, %v1222_v61, %v1226_v46  ;;  %v103_v7 = vrot.slane %v101_v63, 4  ;;  %v110_v12 = vshll.u32 %v4189_v56, 16  ;;  %v98_v16 = vrot.slane %v96_v62, 5  ;;  %v4225_v35 = vld [vmem:[%s5422_s0 + $0x20] sm:$0xf]  ;;  %v3999_v62 = vld [vmem:[%s5421_s1 + $0x8] sm:$0xff]  }
  0x11   :  { %3756 = vmatprep.subr.bf16.mxu0 %v4167_v40  ;;  %3644 = vmatprep.mubr.msk.bf16.mxu1 %vm339_vm3, %v3036_v60  ;;  %v1241_v14 = vsel %vm4154_vm2, %v1236_v1, %v1240_v52  ;;  %v93_v15 = vor.u32 %v92_v3, %v89_v2  ;;  %v106_v17 = vrot.slane %v104_v4, 5  ;;  %v1686_v19 = vrot.slane %v4142_v27, 5  ;;  %v4232_v42 = vld [vmem:[%s5422_s0 + $0x24] sm:$0x1]  ;;  %v4238_v48 = vld [vmem:[%s5422_s0 + $0x28] sm:$0xf] }
  0x12   :  { %v3204_v18 = vcombine.low %v1227_v6, %v1241_v14  ;;  %v112_v20 = vrot.slane %v110_v12, 5  ;;  %v1243_v21 = vshrl.u32 %v3168_v59, 16  ;;  %v1246_v25 = vshll.u32 %v3168_v59, 16  ;;  %v4246_v54 = vld [vmem:[%s5422_s0 + $0x2c] sm:$0x1] }
  0x13   :  { %v94_v22 = vrot.slane %v93_v15, 4  ;;  %v107_v24 = vor.u32 %v106_v17, %v103_v7  ;;  %v1252_v26 = vshll.u32 %v4201_v0, 16  ;;  %v1257_v30 = vshrl.u32 %v3170_v5, 16  ;;  %v3172_v61 = vld [vmem:[%s5422_s0 + $0x28] sm:$0xf] }
  0x14   :  { %3740 = vmatprep.mubr.msk.bf16.mxu0 %vm339_vm3, %v3204_v18  ;;  %v1245_v29 = vrot.slane %v1243_v21, 4  ;;  %v1260_v31 = vshll.u32 %v3170_v5, 16  ;;  %v1266_v32 = vshll.u32 %v4214_v13, 16  ;;  %v1248_v38 = vrot.slane %v1246_v25, 5  ;;  %v4262_v4 = vld [vmem:[%s5422_s0 + $0x2c] sm:$0x1] }
  0x15   :  { %v99_v36 = vsel %vm4154_vm2, %v94_v22, %v98_v16  ;;  %v108_v37 = vrot.slane %v107_v24, 4  ;;  %v1254_v41 = vrot.slane %v1252_v26, 5  ;;  %v1259_v43 = vrot.slane %v1257_v30, 4  ;;  %v3174_v14 = vld [vmem:[%s5422_s0 + $0x30] sm:$0xf]  ;;  %v3998_v30 = vld [vmem:[%s5421_s1 + $0xa8] sm:$0xff]  }
  0x16   :  { %v1262_v45 = vrot.slane %v1260_v31, 5  ;;  %v1268_v46 = vrot.slane %v1266_v32, 5  ;;  %v1690_v47 = vrot.slane %v4201_v0, 5  ;;  %v1249_v51 = vor.u32 %v1248_v38, %v1245_v29  ;;  %v4275_v18 = vld [vmem:[%s5422_s0 + $0x34] sm:$0x1] }
  0x17   :  { %v113_v50 = vsel %vm4154_vm2, %v108_v37, %v112_v20  ;;  %v1694_v52 = vrot.slane %v4214_v13, 5  ;;  %v115_v55 = vshrl.u32 %v4225_v35, 16  ;;  %v118_v59 = vshll.u32 %v4225_v35, 16  ;;  %v4002_v21 = vld [vmem:[%s5421_s1 + $0x10] sm:$0xff]   ;;  %v5379_v34 = vld [vmem:[%s5423_s2] ss:$0 sm:$0xff] }
  0x18   :  { %v3037_v57 = vcombine.low %v99_v36, %v113_v50  ;;  %v1263_v58 = vor.u32 %v1262_v45, %v1259_v43  ;;  %v124_v60 = vshll.u32 %v4232_v42, 16  ;;  %v1250_v63 = vrot.slane %v1249_v51, 4  ;;  %v4294_v45 = vld [vmem:[%s5422_s0 + $0x38] sm:$0xf]  ;;  %v4453_v27 = vld [vmem:[%s5422_s0 + $0x70] sm:$0xf] }
  0x19   :  { %v117_v1 = vrot.slane %v115_v55, 4  ;;  %v129_v2 = vshrl.u32 %v4238_v48, 16  ;;  %v132_v3 = vshll.u32 %v4238_v48, 16  ;;  %v120_v6 = vrot.slane %v118_v59, 5  ;;  %v4000_v59 = vld [vmem:[%s5421_s1 + $0xb0] sm:$0xff]  }
  0x1a   :  { %3645 = vmatmul.mubr.msk.bf16.vlgmr.msra.gmra.mrb[0].mxu1 %vm339_vm3, %v3037_v57  ;;  %v1264_v5 = vrot.slane %v1263_v58, 4  ;;  %v126_v7 = vrot.slane %v124_v60, 5  ;;  %v138_v12 = vshll.u32 %v4246_v54, 16  ;;  %v1255_v15 = vsel %vm4154_vm2, %v1250_v63, %v1254_v41  ;;  %v4306_v57 = vld [vmem:[%s5422_s0 + $0x3c] sm:$0x1] }
  0x1b   :  { %3661 = vmatpush3.bf16.msra.mxu1 %v4150_v33  ;;  %v131_v16 = vrot.slane %v129_v2, 4  ;;  %v134_v17 = vrot.slane %v132_v3, 5  ;;  %v1271_v20 = vshrl.u32 %v3172_v61, 16  ;;  %v121_v24 = vor.u32 %v120_v6, %v117_v1  ;;  %v4285_v33 = vld [vmem:[%s5422_s0 + $0x30] sm:$0xf] }
  0x1c   :  { %v1269_v22 = vsel %vm4154_vm2, %v1264_v5, %v1268_v46  ;;  %v140_v25 = vrot.slane %v138_v12, 5  ;;  %v1274_v26 = vshll.u32 %v3172_v61, 16  ;;  %3662 = vmatprep.subr.bf16.mxu1 %v3999_v62  ;;  %v1280_v36 = vshll.u32 %v4262_v4, 16  ;;  %v4299_v46 = vld [vmem:[%s5422_s0 + $0x34] sm:$0x1] }
  0x1d   :  { %v3205_v29 = vcombine.low %v1255_v15, %v1269_v22  ;;  %v135_v31 = vor.u32 %v134_v17, %v131_v16  ;;  %v1273_v32 = vrot.slane %v1271_v20, 4  ;;  %v122_v37 = vrot.slane %v121_v24, 4  ;;  %v3176_v2 = vld [vmem:[%s5422_s0 + $0x38] sm:$0xf]  ;;  %v4331_v24 = vld [vmem:[%s5422_s0 + $0x3c] sm:$0x1] }
  0x1e   :  { %v1276_v38 = vrot.slane %v1274_v26, 5  ;;  %v1285_v41 = vshrl.u32 %v3174_v14, 16  ;;  %v1288_v43 = vshll.u32 %v3174_v14, 16  ;;  %v1282_v51 = vrot.slane %v1280_v36, 5  ;;  %v4001_v36 = vld [vmem:[%s5421_s1 + $0xb8] sm:$0xff]  }
  0x1f   :  { %3741 = vmatmul.mubr.msk.bf16.vlgmr.msra.gmra.mrb[0].mxu0 %vm339_vm3, %v3205_v29  ;;  %v136_v50 = vrot.slane %v135_v31, 4  ;;  %v1294_v55 = vshll.u32 %v4275_v18, 16  ;;  %v143_v58 = vshrl.u32 %v4285_v33, 16  ;;  %3663 = vmatpush3.bf16.msra.mxu1 %v3999_v62  ;;  %v127_v60 = vsel %vm4154_vm2, %v122_v37, %v126_v7  ;;  %v3178_v31 = vld [vmem:[%s5422_s0 + $0x40] sm:$0xf] }
  0x20   :  { %3757 = vmatpush3.bf16.msra.mxu0 %v4167_v40  ;;  %v1277_v61 = vor.u32 %v1276_v38, %v1273_v32  ;;  %v1287_v63 = vrot.slane %v1285_v41, 4  ;;  %v1290_v1 = vrot.slane %v1288_v43, 5  ;;  %3664 = vmatprep.subr.bf16.mxu1 %v4002_v21  ;;  %v146_v62 = vshll.u32 %v4285_v33, 16  ;;  %v4004_v40 = vld [vmem:[%s5421_s1 + $0x18] sm:$0xff]   ;;  %v4345_v41 = vld [vmem:[%s5422_s0 + $0x44] sm:$0x1] }
  0x21   :  { %3758 = vmatprep.subr.bf16.mxu0 %v3998_v30  ;;  %v141_v3 = vsel %vm4154_vm2, %v136_v50, %v140_v25  ;;  %v1296_v5 = vrot.slane %v1294_v55, 5  ;;  %v145_v6 = vrot.slane %v143_v58, 4  ;;  %v152_v15 = vshll.u32 %v4299_v46, 16  ;;  %v4350_v43 = vld [vmem:[%s5421_s1 + $0x40] sm:$0xff]   ;;  %v3229_v0 = vld [vmem:[%s5422_s0 + $0x30] sm:$0xe] }
  0x22   :  { %v3038_v7 = vcombine.low %v127_v60, %v141_v3  ;;  %v1278_v12 = vrot.slane %v1277_v61, 4  ;;  %v1291_v14 = vor.u32 %v1290_v1, %v1287_v63  ;;  %v148_v16 = vrot.slane %v146_v62, 5  ;;  %v4358_v60 = vld [vmem:[%s5422_s0 + $0x50] sm:$0xf] }
  0x23   :  { %v157_v17 = vshrl.u32 %v4294_v45, 16  ;;  %v160_v20 = vshll.u32 %v4294_v45, 16  ;;  %v166_v22 = vshll.u32 %v4306_v57, 16  ;;  %3665 = vmatpush3.bf16.msra.mxu1 %v4002_v21  ;;  %v154_v29 = vrot.slane %v152_v15, 5 }
  0x24   :  { %3759 = vmatpush3.bf16.msra.mxu0 %v3998_v30  ;;  %3648 = vmatprep.mubr.msk.bf16.mxu1 %vm339_vm3, %v3038_v7  ;;  %v1283_v25 = vsel %vm4154_vm2, %v1278_v12, %v1282_v51  ;;  %v1292_v26 = vrot.slane %v1291_v14, 4  ;;  %v1299_v32 = vshrl.u32 %v3176_v2, 16  ;;  %v149_v37 = vor.u32 %v148_v16, %v145_v6  ;;  %v4363_v6 = vld [vmem:[%s5422_s0 + $0x58] sm:$0xf]  ;;  %v4374_v14 = vld [vmem:[%s5422_s0 + $0x5c] sm:$0x1] }
  0x25   :  { %v159_v38 = vrot.slane %v157_v17, 4  ;;  %v162_v21 = vrot.slane %v160_v20, 5  ;;  %v168_v30 = vrot.slane %v166_v22, 5  ;;  %3760 = vmatprep.subr.bf16.mxu0 %v4000_v59  ;;  %3666 = vmatprep.subr.bf16.mxu1 %v4004_v40  ;;  %v1302_v55 = vshll.u32 %v3176_v2, 16  ;;  %v4368_v2 = vld [vmem:[%s5422_s0 + $0x54] sm:$0x1] }
  0x26   :  { %v1297_v50 = vsel %vm4154_vm2, %v1292_v26, %v1296_v5  ;;  %v1301_v51 = vrot.slane %v1299_v32, 4  ;;  %v1308_v58 = vshll.u32 %v4331_v24, 16  ;;  %v150_v63 = vrot.slane %v149_v37, 4  ;;  %v4387_v20 = vld [vmem:[%s5421_s1 + $0xc0] sm:$0xff]  }
  0x27   :  { %v3206_v61 = vcombine.low %v1283_v25, %v1297_v50  ;;  %v163_v1 = vor.u32 %v162_v21, %v159_v38  ;;  %v1313_v3 = vshrl.u32 %v3178_v31, 16  ;;  %3667 = vmatpush3.bf16.msra.mxu1 %v4004_v40  ;;  %v1304_v5 = vrot.slane %v1302_v55, 5  ;;  %v4400_v50 = vld [vmem:[%s5422_s0 + $0x60] sm:$0xf] }
  0x28   :  { %v1310_v62 = vrot.slane %v1308_v58, 5  ;;  %v1316_v7 = vshll.u32 %v3178_v31, 16  ;;  %v1322_v12 = vshll.u32 %v4345_v41, 16  ;;  %3761 = vmatpush3.bf16.msra.mxu0 %v4000_v59  ;;  %3684 = vmatprep.subr.bf16.mxu1 %v4350_v43  ;;  %v155_v15 = vsel %vm4154_vm2, %v150_v63, %v154_v29  ;;  %v3224_v59 = vld [vmem:[%s5422_s0 + $0x8] sm:$0xe] }
  0x29   :  { %3744 = vmatprep.mubr.msk.bf16.mxu0 %vm339_vm3, %v3206_v61  ;;  %v164_v16 = vrot.slane %v163_v1, 4  ;;  %v1315_v40 = vrot.slane %v1313_v3, 4  ;;  %3762 = vmatprep.subr.bf16.mxu0 %v4001_v36  ;;  %v171_v17 = vshrl.u32 %v4358_v60, 16  ;;  %v1305_v22 = vor.u32 %v1304_v5, %v1301_v51  ;;  %v3225_v29 = vld [vmem:[%s5422_s0 + $0x10] sm:$0xe] }
  0x2a   :  { %v1318_v25 = vrot.slane %v1316_v7, 5  ;;  %v1324_v26 = vrot.slane %v1322_v12, 5  ;;  %v174_v31 = vshll.u32 %v4358_v60, 16  ;;  %v180_v38 = vshll.u32 %v4368_v2, 16 }
  0x2b   :  { %v169_v32 = vsel %vm4154_vm2, %v164_v16, %v168_v30  ;;  %v173_v37 = vrot.slane %v171_v17, 4  ;;  %v185_v21 = vshrl.u32 %v4363_v6, 16  ;;  %v1306_v55 = vrot.slane %v1305_v22, 4  ;;  %v4417_v16 = vld [vmem:[%s5422_s0 + $0x64] sm:$0x1] }
  0x2c   :  { %v3039_v51 = vcombine.low %v155_v15, %v169_v32  ;;  %v1319_v58 = vor.u32 %v1318_v25, %v1315_v40  ;;  %3763 = vmatpush3.bf16.msra.mxu0 %v4001_v36  ;;  %v176_v61 = vrot.slane %v174_v31, 5  ;;  %v182_v63 = vrot.slane %v180_v38, 5 }
  0x2d   :  { %v187_v1 = vrot.slane %v185_v21, 4  ;;  %v188_v3 = vshll.u32 %v4363_v6, 16  ;;  %v194_v30 = vshll.u32 %v4374_v14, 16  ;;  %3780 = vmatprep.subr.bf16.mxu0 %v4387_v20  ;;  %v1311_v36 = vsel %vm4154_vm2, %v1306_v55, %v1310_v62  ;;  %v3226_v21 = vld [vmem:[%s5422_s0 + $0x18] sm:$0xe] }
  0x2e   :  { %3649 = vmatmul.mubr.msk.bf16.gmra.mrb[4].mxu1 %vm339_vm3, %v3039_v51  ;;  %v1320_v7 = vrot.slane %v1319_v58, 4  ;;  %v177_v12 = vor.u32 %v176_v61, %v173_v37  ;;  %v3240_v15 = vrot.slane %v3224_v59, 9  ;;  %v3241_v22 = vrot.slane %v3225_v29, 9  ;;  %v4429_v59 = vld [vmem:[%s5422_s0 + $0x68] sm:$0xf] }
  0x2f   :  { %v190_v40 = vrot.slane %v188_v3, 5  ;;  %v196_v17 = vrot.slane %v194_v30, 5  ;;  %v199_v25 = vshrl.u32 %v4400_v50, 16  ;;  %v4434_v29 = vld [vmem:[%s5422_s0 + $0x6c] sm:$0x1]  ;;  %v202_v37 = vshll.u32 %v4400_v50, 16 }
  0x30   :  { %v1325_v31 = vsel %vm4154_vm2, %v1320_v7, %v1324_v26  ;;  %v178_v32 = vrot.slane %v177_v12, 4  ;;  %v1683_v62 = vsel %vm4406_vm6, %v3240_v15, %v1682_v53  ;;  %v1687_v23 = vsel %vm4406_vm6, %v3241_v22, %v1686_v19  ;;  %v3227_v51 = vld [vmem:[%s5422_s0 + $0x20] sm:$0xe]  ;;  %v4468_v22 = vld [vmem:[%s5422_s0 + $0x74] sm:$0x1] }
  0x31   :  { %v3207_v38 = vcombine.low %v1311_v36, %v1325_v31  ;;  %v191_v26 = vor.u32 %v190_v40, %v187_v1  ;;  %v201_v53 = vrot.slane %v199_v25, 4  ;;  %v3264_v58 = vcombine.low %v1683_v62, %v1687_v23 }
  0x32   :  { %v183_v55 = vsel %vm4154_vm2, %v178_v32, %v182_v63  ;;  %v204_v61 = vrot.slane %v202_v37, 5  ;;  %v208_v1 = vshll.u32 %v4417_v16, 16  ;;  %v213_v3 = vshrl.u32 %v4429_v59, 16  ;;  %v4462_v63 = vld [vmem:[%s5422_s0 + $0x78] sm:$0xf] }
  0x33   :  { %3745 = vmatmul.mubr.msk.bf16.gmra.mrb[4].mxu0 %vm339_vm3, %v3207_v38  ;;  %v192_v19 = vrot.slane %v191_v26, 4  ;;  %v216_v30 = vshll.u32 %v4429_v59, 16  ;;  %v222_v36 = vshll.u32 %v4434_v29, 16  ;;  %v3242_v15 = vrot.slane %v3226_v21, 9  ;;  %v4475_v37 = vld [vmem:[%s5422_s0 + $0x7c] sm:$0x1] }
  0x34   :  { %3764 = vmatprep.mubr.msk.bf16.mxu0 %vm339_vm3, %v3264_v58  ;;  %v205_v7 = vor.u32 %v204_v61, %v201_v53  ;;  %v210_v12 = vrot.slane %v208_v1, 5  ;;  %v3243_v40 = vrot.slane %v3227_v51, 9  ;;  %v215_v31 = vrot.slane %v213_v3, 4  ;;  %v3228_v53 = vld [vmem:[%s5422_s0 + $0x28] sm:$0xe] }
  0x35   :  { %v197_v25 = vsel %vm4154_vm2, %v192_v19, %v196_v17  ;;  %v218_v32 = vrot.slane %v216_v30, 5  ;;  %v224_v62 = vrot.slane %v222_v36, 5  ;;  %v1691_v23 = vsel %vm4406_vm6, %v3242_v15, %v1690_v47  ;;  %v4502_v1 = vld [vmem:[%s5422_s0 + $0x80] sm:$0xf]  ;;  %v4005_v19 = vld [vmem:[%s5421_s1 + $0xc8] sm:$0xff]  }
  0x36   :  { %v3040_v38 = vcombine.low %v183_v55, %v197_v25  ;;  %v206_v26 = vrot.slane %v205_v7, 4  ;;  %v1695_v17 = vsel %vm4406_vm6, %v3243_v40, %v1694_v52  ;;  %v227_v58 = vshrl.u32 %v4453_v27, 16 }
  0x37   :  { %v219_v21 = vor.u32 %v218_v32, %v215_v31  ;;  %v3265_v51 = vcombine.low %v1691_v23, %v1695_v17  ;;  %v230_v55 = vshll.u32 %v4453_v27, 16  ;;  %v236_v47 = vshll.u32 %v4468_v22, 16  ;;  %v4515_v23 = vld [vmem:[%s5422_s0 + $0x88] sm:$0xf]  ;;  %v4520_v17 = vld [vmem:[%s5422_s0 + $0x84] sm:$0x1] }
  0x38   :  { %3652 = vmatprep.mubr.msk.bf16.mxu1 %vm339_vm3, %v3040_v38  ;;  %v211_v13 = vsel %vm4154_vm2, %v206_v26, %v210_v12  ;;  %v241_v52 = vshrl.u32 %v4462_v63, 16  ;;  %v244_v61 = vshll.u32 %v4462_v63, 16  ;;  %v229_v30 = vrot.slane %v227_v58, 4  ;;  %v3230_v58 = vld [vmem:[%s5422_s0 + $0x38] sm:$0xe] }
  0x39   :  { %v220_v3 = vrot.slane %v219_v21, 4  ;;  %v232_v36 = vrot.slane %v230_v55, 5  ;;  %v250_v7 = vshll.u32 %v4475_v37, 16  ;;  %v238_v12 = vrot.slane %v236_v47, 5 }
  0x3a   :  { %v243_v15 = vrot.slane %v241_v52, 4  ;;  %v246_v40 = vrot.slane %v244_v61, 5  ;;  %v3244_v25 = vrot.slane %v3228_v53, 9  ;;  %v1698_v26 = vrot.slane %v4262_v4, 5  ;;  %v4527_v4 = vld [vmem:[%s5422_s0 + $0x8c] sm:$0x1] }
  0x3b   :  { %v225_v31 = vsel %vm4154_vm2, %v220_v3, %v224_v62  ;;  %3765 = vmatmul.mubr.msk.bf16.vlgmr.msra.gmra.mrb[0].mxu0 %vm339_vm3, %v3265_v51  ;;  %v233_v32 = vor.u32 %v232_v36, %v229_v30  ;;  %v252_v38 = vrot.slane %v250_v7, 5  ;;  %v3245_v21 = vrot.slane %v3229_v0, 9 }
  0x3c   :  { %v3041_v53 = vcombine.low %v211_v13, %v225_v31  ;;  %3781 = vmatpush3.bf16.msra.mxu0 %v4387_v20  ;;  %v247_v62 = vor.u32 %v246_v40, %v243_v15  ;;  %v1702_v51 = vrot.slane %v4275_v18, 5  ;;  %v1699_v47 = vsel %vm4406_vm6, %v3244_v25, %v1698_v26  ;;  %v4009_v18 = vld [vmem:[%s5421_s1 + $0xd0] sm:$0xff]   ;;  %v3231_v40 = vld [vmem:[%s5422_s0 + $0x40] sm:$0xe]  ;;  %v3181_v25 = vld [vmem:[%s5422_s0 + $0x5c] sm:$0x1] }
  0x3d   :  { %v234_v55 = vrot.slane %v233_v32, 4  ;;  %v255_v13 = vshrl.u32 %v4502_v1, 16  ;;  %v258_v20 = vshll.u32 %v4502_v1, 16  ;;  %3782 = vmatprep.subr.bf16.mxu0 %v4005_v19  ;;  %v264_v61 = vshll.u32 %v4520_v17, 16 }
  0x3e   :  { %3653 = vmatmul.mubr.msk.bf16.gmra.mrb[8].mxu1 %vm339_vm3, %v3041_v53  ;;  %v248_v0 = vrot.slane %v247_v62, 4  ;;  %v1703_v52 = vsel %vm4406_vm6, %v3245_v21, %v1702_v51  ;;  %v269_v3 = vshrl.u32 %v4515_v23, 16  ;;  %v272_v53 = vshll.u32 %v4515_v23, 16  ;;  %v3232_v62 = vld [vmem:[%s5422_s0 + $0x58] sm:$0xe] }
  0x3f   :  { %v239_v30 = vsel %vm4154_vm2, %v234_v55, %v238_v12  ;;  %v3266_v36 = vcombine.low %v1699_v47, %v1703_v52  ;;  %v257_v7 = vrot.slane %v255_v13, 4  ;;  %v260_v15 = vrot.slane %v258_v20, 5  ;;  %v3183_v12 = vld [vmem:[%s5422_s0 + $0x64] sm:$0x1]  ;;  %v4013_v21 = vld [vmem:[%s5421_s1 + $0xd8] sm:$0xff]  }
  0x40   :  { %v253_v31 = vsel %vm4154_vm2, %v248_v0, %v252_v38  ;;  %v266_v32 = vrot.slane %v264_v61, 5  ;;  %v271_v26 = vrot.slane %v269_v3, 4  ;;  %3783 = vmatpush3.bf16.msra.mxu0 %v4005_v19  ;;  %v278_v55 = vshll.u32 %v4527_v4, 16  ;;  %v3233_v19 = vld [vmem:[%s5422_s0 + $0x60] sm:$0xe] }
  0x41   :  { %v3042_v51 = vcombine.low %v239_v30, %v253_v31  ;;  %3768 = vmatprep.mubr.msk.bf16.mxu0 %vm339_vm3, %v3266_v36  ;;  %v261_v38 = vor.u32 %v260_v15, %v257_v7  ;;  %v3246_v47 = vrot.slane %v3230_v58, 9  ;;  %3784 = vmatprep.subr.bf16.mxu0 %v4009_v18  ;;  %v274_v13 = vrot.slane %v272_v53, 5  ;;  %v4575_v58 = vld [vmem:[%s5422_s0 + $0x6c] sm:$0x1]  ;;  %v3235_v31 = vld [vmem:[%s5422_s0 + $0x70] sm:$0xe] }
  0x42   :  { %v1706_v20 = vrot.slane %v4331_v24, 5  ;;  %v3247_v0 = vrot.slane %v3231_v40, 9  ;;  %v1710_v52 = vrot.slane %v4345_v41, 5  ;;  %v280_v3 = vrot.slane %v278_v55, 5  ;;  %v4584_v41 = vld [vmem:[%s5422_s0 + $0x74] sm:$0x1] }
  0x43   :  { %3656 = vmatprep.mubr.msk.bf16.mxu1 %vm339_vm3, %v3042_v51  ;;  %v262_v61 = vrot.slane %v261_v38, 4  ;;  %v3248_v30 = vrot.slane %v3232_v62, 9  ;;  %v1714_v36 = vrot.slane %v3181_v25, 5  ;;  %v275_v7 = vor.u32 %v274_v13, %v271_v26  ;;  %v3234_v25 = vld [vmem:[%s5422_s0 + $0x68] sm:$0xe]  ;;  %v4603_v55 = vld [vmem:[%s5421_s1 + $0xe0] sm:$0xff]  }
  0x44   :  { %v1707_v15 = vsel %vm4406_vm6, %v3246_v47, %v1706_v20  ;;  %v1711_v24 = vsel %vm4406_vm6, %v3247_v0, %v1710_v52  ;;  %v3249_v40 = vrot.slane %v3233_v19, 9  ;;  %3785 = vmatpush3.bf16.msra.mxu0 %v4009_v18  ;;  %v1718_v62 = vrot.slane %v3183_v12, 5  ;;  %v3189_v51 = vld [vmem:[%s5422_s0 + $0x7c] sm:$0x1]  ;;  %v3191_v38 = vld [vmem:[%s5422_s0 + $0x84] sm:$0x1] }
  0x45   :  { %v3267_v26 = vcombine.low %v1707_v15, %v1711_v24  ;;  %v1715_v53 = vsel %vm4406_vm6, %v3248_v30, %v1714_v36  ;;  %3786 = vmatprep.subr.bf16.mxu0 %v4013_v21  ;;  %v267_v18 = vsel %vm4154_vm2, %v262_v61, %v266_v32  ;;  %v276_v47 = vrot.slane %v275_v7, 4  ;;  %v3236_v19 = vld [vmem:[%s5422_s0 + $0x78] sm:$0xe]  ;;  %v3237_v32 = vld [vmem:[%s5422_s0 + $0x80] sm:$0xe] }
  0x46   :  { %v3057_v12 = vcombine.low %v4162_v39, %v4172_v44  ;;  %v1719_v13 = vsel %vm4406_vm6, %v3249_v40, %v1718_v62  ;;  %v3250_v20 = vrot.slane %v3234_v25, 9  ;;  %v1722_v0 = vrot.slane %v4575_v58, 5  ;;  %v3193_v61 = vld [vmem:[%s5422_s0 + $0x8c] sm:$0x1]  ;;  %v3195_v30 = vld [vmem:[%s5422_s0 + $0x94] sm:$0x1] }
  0x47   :  { %3769 = vmatmul.mubr.msk.bf16.gmra.mrb[4].mxu0 %vm339_vm3, %v3267_v26  ;;  %v3251_v52 = vrot.slane %v3235_v31, 9  ;;  %v281_v39 = vsel %vm4154_vm2, %v276_v47, %v280_v3  ;;  %v3268_v44 = vcombine.low %v1715_v53, %v1719_v13  ;;  %v3238_v36 = vld [vmem:[%s5422_s0 + $0x88] sm:$0xe]  ;;  %v1726_v3 = vrot.slane %v4584_v41, 5  ;;  %v3239_v24 = vld [vmem:[%s5422_s0 + $0x90] sm:$0xe] }
  0x48   :  { %3787 = vmatpush3.bf16.msra.mxu0 %v4013_v21  ;;  %v3043_v7 = vcombine.low %v267_v18, %v281_v39  ;;  %v1723_v15 = vsel %vm4406_vm6, %v3250_v20, %v1722_v0  ;;  %v3252_v40 = vrot.slane %v3236_v19, 9  ;;  %v1730_v25 = vrot.slane %v3189_v51, 5 }
  0x49   :  { %3804 = vmatprep.subr.bf16.mxu0 %v4603_v55  ;;  %3772 = vmatprep.mubr.msk.bf16.mxu0 %vm339_vm3, %v3268_v44  ;;  %v3253_v31 = vrot.slane %v3237_v32, 9  ;;  %v1734_v26 = vrot.slane %v3191_v38, 5  ;;  %v1727_v21 = vsel %vm4406_vm6, %v3251_v52, %v1726_v3  ;;  %v3254_v53 = vrot.slane %v3238_v36, 9  ;;  %v4023_v3 = vld [vmem:[%s5421_s1 + $0x58] sm:$0xff]  }
  0x4a   :  { %3657 = vmatmul.mubr.msk.bf16.gmra.mrb[12].mxu1 %vm339_vm3, %v3043_v7  ;;  %v1738_v62 = vrot.slane %v3193_v61, 5  ;;  %v3269_v18 = vcombine.low %v1723_v15, %v1727_v21  ;;  %v1731_v47 = vsel %vm4406_vm6, %v3252_v40, %v1730_v25  ;;  %v3255_v38 = vrot.slane %v3239_v24, 9 }
  0x4b   :  { %3668 = vmatprep.mubr.msk.bf16.mxu1 %vm339_vm3, %v3056_v28  ;;  %v1735_v51 = vsel %vm4406_vm6, %v3253_v31, %v1734_v26  ;;  %v1742_v13 = vrot.slane %v3195_v30, 5  ;;  %v699_v20 = vrot.slane %v4115_v10, 5  ;;  %v703_v0 = vrot.slane %v4120_v11, 5  ;;  %v4012_v10 = vld [vmem:[%s5421_s1 + $0x48] sm:$0xff]   ;;  %v646_v11 = vld [vmem:[%s5422_s0] sm:$0xe] }
  0x4c   :  { %v3270_v19 = vcombine.low %v1731_v47, %v1735_v51  ;;  %v707_v8 = vrot.slane %v4177_v49, 5  ;;  %v3058_v9 = vcombine.low %v4225_v35, %v4238_v48  ;;  %v1739_v28 = vsel %vm4406_vm6, %v3254_v53, %v1738_v62  ;;  %v4017_v35 = vld [vmem:[%s5421_s1 + $0x50] sm:$0xff]   ;;  %v647_v48 = vld [vmem:[%s5422_s0 + $0x8] sm:$0xe] }
  0x4d   :  { %v1743_v52 = vsel %vm4406_vm6, %v3255_v38, %v1742_v13  ;;  %v711_v32 = vrot.slane %v4189_v56, 5  ;;  %v3076_v56 = vrot.slane %v646_v11, 9  ;;  %v1364_v39 = vshll.u32 %v4575_v58, 16  ;;  %v648_v30 = vld [vmem:[%s5422_s0 + $0x10] sm:$0xe]  ;;  %v4025_v47 = vld [vmem:[%s5421_s1 + $0xe8] sm:$0xff]  }
  0x4e   :  { %v3271_v49 = vcombine.low %v1739_v28, %v1743_v52  ;;  %v3077_v44 = vrot.slane %v647_v48, 9  ;;  %v3078_v36 = vrot.slane %v648_v30, 9  ;;  %v3059_v15 = vcombine.low %v4285_v33, %v4294_v45  ;;  %v4021_v53 = vld [vmem:[%s5422_s0 + $0x30] ss:$8 sps:$4 sm:$0xff]  }
  0x4f   :  { %3773 = vmatmul.mubr.msk.bf16.gmra.mrb[8].mxu0 %vm339_vm3, %v3269_v18  ;;  %v4682_v61 = vsel %vm4406_vm6, %v3076_v56, %v699_v20  ;;  %v715_v40 = vrot.slane %v4232_v42, 5  ;;  %v719_v25 = vrot.slane %v4246_v54, 5  ;;  %v3060_v31 = vcombine.low %v4358_v60, %v4363_v6  ;;  %v650_v42 = vld [vmem:[%s5422_s0 + $0x20] sm:$0xe]  ;;  %v651_v54 = vld [vmem:[%s5422_s0 + $0x28] sm:$0xe] }
  0x50   :  { %3776 = vmatprep.mubr.msk.bf16.mxu0 %vm339_vm3, %v3270_v19  ;;  %v4692_v58 = vsel %vm4406_vm6, %v3077_v44, %v703_v0  ;;  %v4709_v33 = vsel %vm4406_vm6, %v3078_v36, %v707_v8  ;;  %v4018_v60 = vld [vmem:[%s5422_s0 + $0x20] ss:$8 sps:$4 sm:$0xff]   ;;  %v3080_v26 = vrot.slane %v650_v42, 9  ;;  %v3081_v21 = vrot.slane %v651_v54, 9  ;;  %v652_v62 = vld [vmem:[%s5422_s0 + $0x30] sm:$0xe] }
  0x51   :  { %v3100_v24 = vcombine.low %v4682_v61, %v4692_v58  ;;  %v653_v18 = vld [vmem:[%s5422_s0 + $0x38] sm:$0xe]  ;;  %v3082_v19 = vrot.slane %v652_v62, 9  ;;  %v723_v13 = vrot.slane %v4299_v46, 5  ;;  %v4752_v20 = vld [vmem:[%s5421_s1 + $0x60] sm:$0xff]   ;;  %v4757_v28 = vrot.slane %v1364_v39, 5 }
  0x52   :  { %3669 = vmatmul.mubr.msk.bf16.vlgmr.msra.gmra.mrb[0].mxu1 %vm339_vm3, %v3057_v12  ;;  %v4015_v12 = vld [vmem:[%s5422_s0 + $0x10] ss:$8 sps:$4 sm:$0xff]   ;;  %v4741_v51 = vsel %vm4406_vm6, %v3080_v26, %v715_v40  ;;  %v4745_v38 = vsel %vm4406_vm6, %v3081_v21, %v719_v25  ;;  %v3083_v8 = vrot.slane %v653_v18, 9  ;;  %v1378_v52 = vshll.u32 %v4584_v41, 16  ;;  %v4802_v44 = vld [vmem:[%s5422_s0 + $0x1c] sm:$0x1] }
  0x53   :  { %3685 = vmatpush3.bf16.msra.mxu1 %v4350_v43  ;;  %3672 = vmatprep.mubr.msk.bf16.mxu1 %vm339_vm3, %v3058_v9  ;;  %v649_v43 = vld [vmem:[%s5422_s0 + $0x18] sm:$0xe]  ;;  %v3102_v0 = vcombine.low %v4741_v51, %v4745_v38  ;;  %v727_v9 = vrot.slane %v4306_v57, 5  ;;  %v4762_v46 = vsel %vm4406_vm6, %v3082_v19, %v723_v13  ;;  %v731_v11 = vrot.slane %v4368_v2, 5  ;;  %v4029_v48 = vld [vmem:[%s5421_s1 + $0xf0] sm:$0xff]  }
  0x54   :  { %3686 = vmatprep.subr.bf16.mxu1 %v4012_v10  ;;  %v3079_v7 = vrot.slane %v649_v43, 9  ;;  %v655_v57 = vld [vmem:[%s5422_s0 + $0x58] sm:$0xe]  ;;  %v3328_v2 = vld [vmem:[%s5422_s0 + $0x10] sm:$0xf]  ;;  %v2221_v21 = vshll.u32 %v4802_v44, 16 }
  0x55   :  { %v2198_v30 = vshrl.u32 %v3328_v2, 16  ;;  %v2201_v43 = vshll.u32 %v3328_v2, 16  ;;  %v657_v40 = vld [vmem:[%s5422_s0 + $0x68] sm:$0xe]  ;;  %v4033_v62 = vld [vmem:[%s5421_s1 + $0xf8] sm:$0xff]   ;;  %v739_v13 = vrot.slane %v4417_v16, 5 }
  0x56   :  { %v4713_v45 = vsel %vm4406_vm6, %v3079_v7, %v711_v32  ;;  %v4766_v32 = vsel %vm4406_vm6, %v3083_v8, %v727_v9  ;;  %v3087_v8 = vrot.slane %v657_v40, 9  ;;  %v3332_v9 = vld [vmem:[%s5422_s0 + $0x20] sm:$0xf]  ;;  %v3334_v16 = vld [vmem:[%s5422_s0 + $0x28] sm:$0xf] }
  0x57   :  { %3777 = vmatmul.mubr.msk.bf16.gmra.mrb[12].mxu0 %vm339_vm3, %v3271_v49  ;;  %3687 = vmatpush3.bf16.msra.mxu1 %v4012_v10  ;;  %v3101_v6 = vcombine.low %v4709_v33, %v4713_v45  ;;  %v654_v10 = vld [vmem:[%s5422_s0 + $0x50] sm:$0xe]  ;;  %v735_v49 = vrot.slane %v4374_v14, 5  ;;  %v3103_v56 = vcombine.low %v4762_v46, %v4766_v32  ;;  %v4790_v14 = vld [vmem:[%s5422_s0 + $0x14] sm:$0x1]  ;;  %v2203_v42 = vrot.slane %v2201_v43, 5 }
  0x58   :  { %3788 = vmatprep.mubr.msk.bf16.mxu0 %vm339_vm3, %v4015_v12  ;;  %3688 = vmatprep.subr.bf16.mxu1 %v4017_v35  ;;  %v3084_v39 = vrot.slane %v654_v10, 9  ;;  %v3085_v12 = vrot.slane %v655_v57, 9  ;;  %v2207_v36 = vshll.u32 %v4790_v14, 16  ;;  %v3063_v10 = vcombine.low %v4502_v1, %v4515_v23  ;;  %v4858_v1 = vld [vmem:[%s5422_s0 + $0x2c] sm:$0x1] }
  0x59   :  { %v2223_v57 = vrot.slane %v2221_v21, 5  ;;  %v3344_v51 = vld [vmem:[%s5422_s0 + $0x60] sm:$0xf] }
  0x5a   :  { %3673 = vmatmul.mubr.msk.bf16.gmra.mrb[4].mxu1 %vm339_vm3, %v3059_v15  ;;  %v656_v15 = vld [vmem:[%s5422_s0 + $0x60] sm:$0xe] }
  0x5b   :  { %3676 = vmatprep.mubr.msk.bf16.mxu1 %vm339_vm3, %v3060_v31  ;;  %3689 = vmatpush3.bf16.msra.mxu1 %v4017_v35  ;;  %v3061_v35 = vcombine.low %v4400_v50, %v4429_v59  ;;  %v3062_v50 = vcombine.low %v4453_v27, %v4462_v63  ;;  %v3330_v59 = vld [vmem:[%s5422_s0 + $0x18] sm:$0xf]  ;;  %v4809_v27 = vsel %vm4406_vm6, %v3084_v39, %v731_v11  ;;  %v2200_v31 = vrot.slane %v2198_v30, 4  ;;  %v4846_v11 = vld [vmem:[%s5422_s0 + $0x24] sm:$0x1] }
  0x5c   :  { %3690 = vmatprep.subr.bf16.mxu1 %v4023_v3  ;;  %v4813_v63 = vsel %vm4406_vm6, %v3085_v12, %v735_v49  ;;  %v2212_v7 = vshrl.u32 %v3330_v59, 16  ;;  %v2215_v54 = vshll.u32 %v3330_v59, 16  ;;  %v2229_v12 = vshll.u32 %v3332_v9, 16 }
  0x5d   :  { %v3104_v25 = vcombine.low %v4809_v27, %v4813_v63  ;;  %v2204_v18 = vor.u32 %v2203_v42, %v2200_v31  ;;  %v2235_v2 = vshll.u32 %v4846_v11, 16  ;;  %v4884_v31 = vld [vmem:[%s5421_s1 + $0x100] sm:$0xff]   ;;  %v3336_v42 = vld [vmem:[%s5422_s0 + $0x30] sm:$0xf] }
  0x5e   :  { %v2214_v26 = vrot.slane %v2212_v7, 4  ;;  %v2217_v19 = vrot.slane %v2215_v54, 5  ;;  %v4028_v7 = vld [vmem:[%s5422_s0 + $0x70] ss:$8 sps:$4 sm:$0xff]   ;;  %v2257_v61 = vshll.u32 %v3336_v42, 16 }
  0x5f   :  { %3789 = vmatmul.mubr.msk.bf16.vlgmr.msra.gmra.mrb[0].mxu0 %vm339_vm3, %v4018_v60  ;;  %3691 = vmatpush3.bf16.msra.mxu1 %v4023_v3  ;;  %v4026_v3 = vld [vmem:[%s5422_s0 + $0x60] ss:$8 sps:$4 sm:$0xff]   ;;  %v4829_v60 = vrot.slane %v2207_v36, 5  ;;  %v2205_v49 = vrot.slane %v2204_v18, 4  ;;  %v659_v36 = vld [vmem:[%s5422_s0 + $0x78] sm:$0xe] }
  0x60   :  { %3805 = vmatpush3.bf16.msra.mxu0 %v4603_v55  ;;  %3792 = vmatprep.mubr.msk.bf16.mxu0 %vm339_vm3, %v4021_v53  ;;  %v4024_v55 = vld [vmem:[%s5422_s0 + $0x40] ss:$8 sps:$4 sm:$0xff]   ;;  %v3086_v53 = vrot.slane %v656_v15, 9  ;;  %v2231_v15 = vrot.slane %v2229_v12, 5  ;;  %v4889_v54 = vrot.slane %v2235_v2, 5 }
  0x61   :  { %3806 = vmatprep.subr.bf16.mxu0 %v4025_v47  ;;  %3708 = vmatprep.subr.bf16.mxu1 %v4752_v20  ;;  %v4030_v18 = vld [vmem:[%s5422_s0 + $0x80] ss:$8 sps:$4 sm:$0xff]  }
  0x62   :  { %3677 = vmatmul.mubr.msk.bf16.gmra.mrb[8].mxu1 %vm339_vm3, %v3061_v35  ;;  %v2218_v35 = vor.u32 %v2217_v19, %v2214_v26  ;;  %v4853_v39 = vsel %vm4406_vm6, %v3086_v53, %v739_v13  ;;  %v2249_v26 = vshll.u32 %v4858_v1, 16  ;;  %v747_v53 = vrot.slane %v4468_v22, 5  ;;  %v3338_v22 = vld [vmem:[%s5422_s0 + $0x38] sm:$0xf] }
  0x63   :  { %3680 = vmatprep.mubr.msk.bf16.mxu1 %vm339_vm3, %v3062_v50  ;;  %v2240_v50 = vshrl.u32 %v3334_v16, 16  ;;  %v2268_v12 = vshrl.u32 %v3338_v22, 16  ;;  %v2271_v2 = vshll.u32 %v3338_v22, 16 }
  0x64   :  { %3807 = vmatpush3.bf16.msra.mxu0 %v4025_v47  ;;  %v743_v47 = vrot.slane %v4434_v29, 5  ;;  %v2226_v29 = vshrl.u32 %v3332_v9, 16  ;;  %v2219_v59 = vrot.slane %v2218_v35, 4  ;;  %v3089_v9 = vrot.slane %v659_v36, 9 }
  0x65   :  { %3808 = vmatprep.subr.bf16.mxu0 %v4029_v48  ;;  %v2242_v40 = vrot.slane %v2240_v50, 4  ;;  %v4031_v50 = vld [vmem:[%s5421_s1 + $0x68] sm:$0xff]   ;;  %v2259_v36 = vrot.slane %v2257_v61, 5 }
  0x66   :  { %v4863_v23 = vsel %vm4406_vm6, %v3087_v8, %v743_v47  ;;  %v2228_v43 = vrot.slane %v2226_v29, 4  ;;  %v2224_v19 = vsel %vm4154_vm2, %v2219_v59, %v2223_v57  ;;  %v751_v57 = vrot.slane %v4475_v37, 5 }
  0x67   :  { %3793 = vmatmul.mubr.msk.bf16.gmra.mrb[4].mxu0 %vm339_vm3, %v4024_v55  ;;  %v3105_v30 = vcombine.low %v4853_v39, %v4863_v23  ;;  %v658_v55 = vld [vmem:[%s5422_s0 + $0x70] sm:$0xe] }
  0x68   :  { %3796 = vmatprep.mubr.msk.bf16.mxu0 %vm339_vm3, %v4026_v3  ;;  %3809 = vmatpush3.bf16.msra.mxu0 %v4029_v48  ;;  %v2210_v48 = vsel %vm4154_vm2, %v2205_v49, %v4829_v60  ;;  %v2243_v3 = vshll.u32 %v3334_v16, 16  ;;  %v3088_v21 = vrot.slane %v658_v55, 9  ;;  %v4896_v60 = vld [vmem:[%s5422_s0 + $0x34] sm:$0x1]  ;;  %v2232_v13 = vor.u32 %v2231_v15, %v2228_v43  ;;  %v4919_v16 = vld [vmem:[%s5422_s0 + $0x3c] sm:$0x1] }
  0x69   :  { %3810 = vmatprep.subr.bf16.mxu0 %v4033_v62  ;;  %v2254_v49 = vshrl.u32 %v3336_v42, 16  ;;  %v2263_v58 = vshll.u32 %v4896_v60, 16  ;;  %v4928_v37 = vsel %vm4406_vm6, %v3089_v9, %v751_v57  ;;  %v3368_v59 = vcombine.low %v2210_v48, %v2224_v19  ;;  %v661_v15 = vld [vmem:[%s5422_s0 + $0x88] sm:$0xe]  ;;  %v3340_v48 = vld [vmem:[%s5422_s0 + $0x40] sm:$0xf] }
  0x6a   :  { %3681 = vmatmul.mubr.msk.bf16.gmra.mrb[12].mxu1 %vm339_vm3, %v3063_v10  ;;  %v2245_v8 = vrot.slane %v2243_v3, 5  ;;  %v2251_v10 = vrot.slane %v2249_v26, 5  ;;  %v4913_v47 = vsel %vm4406_vm6, %v3088_v21, %v747_v53  ;;  %v2233_v35 = vrot.slane %v2232_v13, 4  ;;  %v4032_v26 = vld [vmem:[%s5422_s0 + $0x90] ss:$8 sps:$4 sm:$0xff]  }
  0x6b   :  { %3692 = vmatprep.mubr.msk.bf16.mxu1 %vm339_vm3, %v3100_v24  ;;  %v660_v24 = vld [vmem:[%s5422_s0 + $0x80] sm:$0xe]  ;;  %v3106_v55 = vcombine.low %v4913_v47, %v4928_v37  ;;  %v2270_v3 = vrot.slane %v2268_v12, 4  ;;  %v2277_v42 = vshll.u32 %v4919_v16, 16  ;;  %v755_v19 = vrot.slane %v4520_v17, 5 }
  0x6c   :  { %3811 = vmatpush3.bf16.msra.mxu0 %v4033_v62  ;;  %v2246_v29 = vor.u32 %v2245_v8, %v2242_v40  ;;  %v2256_v62 = vrot.slane %v2254_v49, 4  ;;  %v4940_v40 = vrot.slane %v2263_v58, 5  ;;  %v2238_v21 = vsel %vm4154_vm2, %v2233_v35, %v4889_v54  ;;  %v4956_v13 = vld [vmem:[%s5422_s0 + $0x44] sm:$0x1]  ;;  %v3342_v8 = vld [vmem:[%s5422_s0 + $0x48] sm:$0xf] }
  0x6d   :  { %3828 = vmatprep.subr.bf16.mxu0 %v4884_v31  ;;  %v2279_v57 = vrot.slane %v2277_v42, 5  ;;  %v3091_v49 = vrot.slane %v661_v15, 9  ;;  %v4966_v54 = vld [vmem:[%s5422_s0 + $0x4c] sm:$0x1]  ;;  %v2285_v58 = vshll.u32 %v3340_v48, 16  ;;  %v2291_v33 = vshll.u32 %v4956_v13, 16 }
  0x6e   :  { %v2247_v43 = vrot.slane %v2246_v29, 4  ;;  %v2260_v53 = vor.u32 %v2259_v36, %v2256_v62  ;;  %v2282_v29 = vshrl.u32 %v3340_v48, 16  ;;  %v2296_v45 = vshrl.u32 %v3342_v8, 16  ;;  %v3346_v36 = vld [vmem:[%s5422_s0 + $0x68] sm:$0xf] }
  0x6f   :  { %3797 = vmatmul.mubr.msk.bf16.gmra.mrb[8].mxu0 %vm339_vm3, %v4028_v7  ;;  %v2273_v7 = vrot.slane %v2271_v2, 5  ;;  %v2299_v62 = vshll.u32 %v3342_v8, 16  ;;  %v2287_v2 = vrot.slane %v2285_v58, 5  ;;  %v2293_v15 = vrot.slane %v2291_v33, 5  ;;  %v5013_v42 = vld [vmem:[%s5422_s0 + $0x6c] sm:$0x1] }
  0x70   :  { %3800 = vmatprep.mubr.msk.bf16.mxu0 %vm339_vm3, %v4030_v18  ;;  %v3090_v18 = vrot.slane %v660_v24, 9  ;;  %v2252_v9 = vsel %vm4154_vm2, %v2247_v43, %v2251_v10  ;;  %v2261_v17 = vrot.slane %v2260_v53, 4  ;;  %v759_v10 = vrot.slane %v4527_v4, 5  ;;  %v5003_v43 = vld [vmem:[%s5422_s0 + $0x64] sm:$0x1] }
  0x71   :  { %v2274_v22 = vor.u32 %v2273_v7, %v2270_v3  ;;  %v3369_v24 = vcombine.low %v2238_v21, %v2252_v9  ;;  %v2301_v3 = vrot.slane %v2299_v62, 5  ;;  %v2305_v7 = vshll.u32 %v4966_v54, 16  ;;  %v3348_v33 = vld [vmem:[%s5422_s0 + $0x70] sm:$0xf] }
  0x72   :  { %3693 = vmatmul.mubr.msk.bf16.vlgmr.msra.gmra.mrb[0].mxu1 %vm339_vm3, %v3101_v6  ;;  %v4974_v35 = vsel %vm4406_vm6, %v3090_v18, %v755_v19  ;;  %v4034_v6 = vld [vmem:[%s5421_s1 + $0x70] sm:$0xff]   ;;  %v4988_v4 = vsel %vm4406_vm6, %v3091_v49, %v759_v10  ;;  %v2266_v38 = vsel %vm4154_vm2, %v2261_v17, %v4940_v40  ;;  %v2298_v40 = vrot.slane %v2296_v45, 4  ;;  %v4037_v10 = vld [vmem:[%s5421_s1 + $0x108] sm:$0xff]   ;;  %v3350_v45 = vld [vmem:[%s5422_s0 + $0x78] sm:$0xf] }
  0x73   :  { %3709 = vmatpush3.bf16.msra.mxu1 %v4752_v20  ;;  %3696 = vmatprep.mubr.msk.bf16.mxu1 %vm339_vm3, %v3102_v0  ;;  %v2275_v61 = vrot.slane %v2274_v22, 4  ;;  %v2284_v20 = vrot.slane %v2282_v29, 4  ;;  %v3107_v12 = vcombine.low %v4974_v35, %v4988_v4  ;;  %v2310_v21 = vshrl.u32 %v3344_v51, 16  ;;  %v4038_v47 = vld [vmem:[%s5422_s0 + $0x8] ss:$8 sps:$4 sm:$0xff]  }
  0x74   :  { %3710 = vmatprep.subr.bf16.mxu1 %v4031_v50  ;;  %v2313_v53 = vshll.u32 %v3344_v51, 16  ;;  %v2319_v18 = vshll.u32 %v5003_v43, 16  ;;  %v2302_v19 = vor.u32 %v2301_v3, %v2298_v40  ;;  %v2307_v8 = vrot.slane %v2305_v7, 5  ;;  %v3389_v35 = vld [vmem:[%s5422_s0 + $0x18] sm:$0xe] }
  0x75   :  { %v2280_v0 = vsel %vm4154_vm2, %v2275_v61, %v2279_v57  ;;  %v2288_v48 = vor.u32 %v2287_v2, %v2284_v20  ;;  %v2324_v9 = vshrl.u32 %v3346_v36, 16  ;;  %v2327_v22 = vshll.u32 %v3346_v36, 16  ;;  %v5046_v20 = vld [vmem:[%s5422_s0 + $0x7c] sm:$0x1] }
  0x76   :  { %v2312_v49 = vrot.slane %v2310_v21, 4  ;;  %v2315_v17 = vrot.slane %v2313_v53, 5  ;;  %v2333_v58 = vshll.u32 %v5013_v42, 16  ;;  %v3370_v46 = vcombine.low %v2266_v38, %v2280_v0  ;;  %v4040_v53 = vld [vmem:[%s5421_s1 + $0x110] sm:$0xff]  }
  0x77   :  { %3801 = vmatmul.mubr.msk.bf16.gmra.mrb[12].mxu0 %vm339_vm3, %v4032_v26  ;;  %3711 = vmatpush3.bf16.msra.mxu1 %v4031_v50  ;;  %v4036_v26 = vld [vmem:[%s5421_s1 + $0x78] sm:$0xff]   ;;  %v2289_v57 = vrot.slane %v2288_v48, 4  ;;  %v2321_v50 = vrot.slane %v2319_v18, 5  ;;  %v2326_v29 = vrot.slane %v2324_v9, 4  ;;  %v2329_v61 = vrot.slane %v2327_v22, 5 }
  0x78   :  { %3812 = vmatprep.mubr.msk.bf16.mxu0 %vm339_vm3, %v3368_v59  ;;  %3712 = vmatprep.subr.bf16.mxu1 %v4034_v6  ;;  %v2303_v59 = vrot.slane %v2302_v19, 4  ;;  %v2316_v32 = vor.u32 %v2315_v17, %v2312_v49  ;;  %v2341_v38 = vshll.u32 %v3348_v33, 16  ;;  %v2352_v40 = vshrl.u32 %v3350_v45, 16  ;;  %v5070_v9 = vld [vmem:[%s5422_s0 + $0x84] sm:$0x1] }
  0x79   :  { %v2294_v27 = vsel %vm4154_vm2, %v2289_v57, %v2293_v15  ;;  %v2330_v63 = vor.u32 %v2329_v61, %v2326_v29  ;;  %v2355_v3 = vshll.u32 %v3350_v45, 16  ;;  %v2361_v21 = vshll.u32 %v5046_v20, 16  ;;  %v5075_v57 = vld [vmem:[%s5421_s1 + $0x80] sm:$0xff]   ;;  %v3354_v17 = vld [vmem:[%s5422_s0 + $0x88] sm:$0xf] }
  0x7a   :  { %3697 = vmatmul.mubr.msk.bf16.gmra.mrb[4].mxu1 %vm339_vm3, %v3103_v56  ;;  %v5038_v56 = vld [vmem:[%s5422_s0 + $0x74] sm:$0x1]  ;;  %v2308_v62 = vsel %vm4154_vm2, %v2303_v59, %v2307_v8  ;;  %v2317_v51 = vrot.slane %v2316_v32, 4  ;;  %v2343_v7 = vrot.slane %v2341_v38, 5  ;;  %v3352_v8 = vld [vmem:[%s5422_s0 + $0x80] sm:$0xf] }
  0x7b   :  { %3700 = vmatprep.mubr.msk.bf16.mxu1 %vm339_vm3, %v3104_v25  ;;  %3713 = vmatpush3.bf16.msra.mxu1 %v4034_v6  ;;  %v2335_v25 = vrot.slane %v2333_v58, 5  ;;  %v2338_v6 = vshrl.u32 %v3348_v33, 16  ;;  %v2347_v0 = vshll.u32 %v5038_v56, 16  ;;  %v2331_v2 = vrot.slane %v2330_v63, 4 }
  0x7c   :  { %3714 = vmatprep.subr.bf16.mxu1 %v4036_v26  ;;  %v2322_v15 = vsel %vm4154_vm2, %v2317_v51, %v2321_v50  ;;  %v2357_v19 = vrot.slane %v2355_v3, 5  ;;  %v2363_v49 = vrot.slane %v2361_v21, 5  ;;  %v5084_v50 = vld [vmem:[%s5422_s0 + $0x8c] sm:$0x1]  ;;  %v2366_v59 = vshrl.u32 %v3352_v8, 16 }
  0x7d   :  { %v2340_v36 = vrot.slane %v2338_v6, 4  ;;  %v2349_v48 = vrot.slane %v2347_v0, 5  ;;  %v2336_v18 = vsel %vm4154_vm2, %v2331_v2, %v2335_v25  ;;  %v2369_v61 = vshll.u32 %v3352_v8, 16  ;;  %v4043_v25 = vld [vmem:[%s5421_s1 + $0x118] sm:$0xff]   ;;  %v3356_v6 = vld [vmem:[%s5422_s0 + $0x90] sm:$0xf] }
  0x7e   :  { %v3372_v22 = vcombine.low %v2322_v15, %v2336_v18  ;;  %v2375_v58 = vshll.u32 %v5070_v9, 16  ;;  %v2380_v33 = vshrl.u32 %v3354_v17, 16  ;;  %v2368_v32 = vrot.slane %v2366_v59, 4  ;;  %v3358_v0 = vld [vmem:[%s5422_s0 + $0x98] sm:$0xf] }
  0x7f   :  { %3813 = vmatmul.mubr.msk.bf16.vlgmr.msra.gmra.mrb[0].mxu0 %vm339_vm3, %v3369_v24  ;;  %v3371_v24 = vcombine.low %v2294_v27, %v2308_v62  ;;  %3715 = vmatpush3.bf16.msra.mxu1 %v4036_v26  ;;  %v2344_v26 = vor.u32 %v2343_v7, %v2340_v36  ;;  %v2383_v45 = vshll.u32 %v3354_v17, 16  ;;  %v2389_v27 = vshll.u32 %v5084_v50, 16  ;;  %v5110_v62 = vld [vmem:[%s5422_s0 + $0x94] sm:$0x1]  ;;  %v5121_v2 = vld [vmem:[%s5422_s0 + $0x9c] sm:$0x1] }
  0x80   :  { %3829 = vmatpush3.bf16.msra.mxu0 %v4884_v31  ;;  %3816 = vmatprep.mubr.msk.bf16.mxu0 %vm339_vm3, %v3370_v46  ;;  %v2354_v31 = vrot.slane %v2352_v40, 4  ;;  %v2371_v39 = vrot.slane %v2369_v61, 5  ;;  %v2377_v23 = vrot.slane %v2375_v58, 5  ;;  %v2394_v36 = vshrl.u32 %v3356_v6, 16  ;;  %v3388_v59 = vld [vmem:[%s5422_s0 + $0x10] sm:$0xe] }
  0x81   :  { %3830 = vmatprep.subr.bf16.mxu0 %v4037_v10  ;;  %3852 = vmatprep.subr.bf16.mxu1 %v5075_v57  ;;  %v2345_v46 = vrot.slane %v2344_v26, 4  ;;  %v2397_v40 = vshll.u32 %v3356_v6, 16  ;;  %v2403_v7 = vshll.u32 %v5110_v62, 16  ;;  %v3404_v4 = vrot.slane %v3388_v59, 9  ;;  %v3396_v59 = vld [vmem:[%s5422_s0 + $0x60] sm:$0xe] }
  0x82   :  { %3701 = vmatmul.mubr.msk.bf16.gmra.mrb[8].mxu1 %vm339_vm3, %v3105_v30  ;;  %v2358_v29 = vor.u32 %v2357_v19, %v2354_v31  ;;  %v2382_v30 = vrot.slane %v2380_v33, 4  ;;  %v2372_v38 = vor.u32 %v2371_v39, %v2368_v32  ;;  %v2411_v31 = vshll.u32 %v3358_v0, 16 }
  0x83   :  { %3704 = vmatprep.mubr.msk.bf16.mxu1 %vm339_vm3, %v3106_v55  ;;  %v2350_v37 = vsel %vm4154_vm2, %v2345_v46, %v2349_v48  ;;  %v2385_v55 = vrot.slane %v2383_v45, 5  ;;  %v2408_v48 = vshrl.u32 %v3358_v0, 16  ;;  %v2399_v18 = vrot.slane %v2397_v40, 5 }
  0x84   :  { %3831 = vmatpush3.bf16.msra.mxu0 %v4037_v10  ;;  %v2359_v63 = vrot.slane %v2358_v29, 4  ;;  %v2391_v10 = vrot.slane %v2389_v27, 5  ;;  %v2373_v21 = vrot.slane %v2372_v38, 4  ;;  %v2405_v8 = vrot.slane %v2403_v7, 5  ;;  %v3390_v27 = vld [vmem:[%s5422_s0 + $0x20] sm:$0xe] }
  0x85   :  { %3832 = vmatprep.subr.bf16.mxu0 %v4040_v53  ;;  %v2386_v15 = vor.u32 %v2385_v55, %v2382_v30  ;;  %v2410_v26 = vrot.slane %v2408_v48, 4  ;;  %v2413_v17 = vrot.slane %v2411_v31, 5  ;;  %v2665_v29 = vrot.slane %v4790_v14, 5  ;;  %v4039_v14 = vld [vmem:[%s5422_s0 + $0x18] ss:$8 sps:$4 sm:$0xff]  }
  0x86   :  { %v2364_v51 = vsel %vm4154_vm2, %v2359_v63, %v2363_v49  ;;  %v2417_v49 = vshll.u32 %v5121_v2, 16  ;;  %v3405_v45 = vrot.slane %v3389_v35, 9  ;;  %v3391_v63 = vld [vmem:[%s5422_s0 + $0x28] sm:$0xe]  ;;  %v2677_v55 = vrot.slane %v4858_v1, 5 }
  0x87   :  { %3817 = vmatmul.mubr.msk.bf16.gmra.mrb[4].mxu0 %vm339_vm3, %v3371_v24  ;;  %v3373_v3 = vcombine.low %v2350_v37, %v2364_v51  ;;  %v2396_v24 = vrot.slane %v2394_v36, 4  ;;  %v2387_v19 = vrot.slane %v2386_v15, 4  ;;  %v2414_v32 = vor.u32 %v2413_v17, %v2410_v26  ;;  %v4041_v30 = vld [vmem:[%s5422_s0 + $0x28] ss:$8 sps:$4 sm:$0xff]   ;;  %v3393_v38 = vld [vmem:[%s5422_s0 + $0x38] sm:$0xe] }
  0x88   :  { %3820 = vmatprep.mubr.msk.bf16.mxu0 %vm339_vm3, %v3372_v22  ;;  %3833 = vmatpush3.bf16.msra.mxu0 %v4040_v53  ;;  %v2378_v53 = vsel %vm4154_vm2, %v2373_v21, %v2377_v23  ;;  %v2419_v58 = vrot.slane %v2417_v49, 5  ;;  %v3406_v23 = vrot.slane %v3390_v27, 9  ;;  %v3407_v37 = vrot.slane %v3391_v63, 9  ;;  %v3392_v51 = vld [vmem:[%s5422_s0 + $0x30] sm:$0xe] }
  0x89   :  { %3834 = vmatprep.subr.bf16.mxu0 %v4043_v25  ;;  %v2400_v22 = vor.u32 %v2399_v18, %v2396_v24  ;;  %v2392_v61 = vsel %vm4154_vm2, %v2387_v19, %v2391_v10  ;;  %v2415_v39 = vrot.slane %v2414_v32, 4  ;;  %v2681_v0 = vrot.slane %v4896_v60, 5  ;;  %v3394_v60 = vld [vmem:[%s5422_s0 + $0x40] sm:$0xe]  ;;  %v3395_v48 = vld [vmem:[%s5422_s0 + $0x48] sm:$0xe] }
  0x8a   :  { %3705 = vmatmul.mubr.msk.bf16.gmra.mrb[12].mxu1 %vm339_vm3, %v3107_v12  ;;  %v2669_v12 = vrot.slane %v4802_v44, 5  ;;  %v3374_v33 = vcombine.low %v2378_v53, %v2392_v61  ;;  %v5177_v1 = vrot.slane %v1378_v52, 5  ;;  %v3408_v40 = vrot.slane %v3392_v51, 9  ;;  %v4049_v18 = vld [vmem:[%s5421_s1 + $0x88] sm:$0xff]   ;;  %v4050_v53 = vld [vmem:[%s5422_s0 + $0x5c] sm:$0x1] }
  0x8b   :  { %3716 = vmatprep.mubr.msk.bf16.mxu1 %vm339_vm3, %v4038_v47  ;;  %v2401_v46 = vrot.slane %v2400_v22, 4  ;;  %v2673_v47 = vrot.slane %v4846_v11, 5  ;;  %v2420_v10 = vsel %vm4154_vm2, %v2415_v39, %v2419_v58  ;;  %v2685_v11 = vrot.slane %v4919_v16, 5  ;;  %v4052_v63 = vld [vmem:[%s5421_s1 + $0x90] sm:$0xff]  }
  0x8c   :  { %3835 = vmatpush3.bf16.msra.mxu0 %v4043_v25  ;;  %v2666_v25 = vsel %vm4406_vm6, %v3404_v4, %v2665_v29  ;;  %v2670_v6 = vsel %vm4406_vm6, %v3405_v45, %v2669_v12  ;;  %v5186_v15 = vsel %vm4406_vm6, %v3407_v37, %v2677_v55  ;;  %v3409_v7 = vrot.slane %v3393_v38, 9  ;;  %v3397_v29 = vld [vmem:[%s5422_s0 + $0x68] sm:$0xe] }
  0x8d   :  { %v2406_v44 = vsel %vm4154_vm2, %v2401_v46, %v2405_v8  ;;  %v2689_v41 = vrot.slane %v4956_v13, 5  ;;  %v3428_v52 = vcombine.low %v2666_v25, %v2670_v6  ;;  %v5196_v16 = vsel %vm4406_vm6, %v3408_v40, %v2681_v0  ;;  %v3180_v13 = vld [vmem:[%s5422_s0 + $0x58] sm:$0xf]  ;;  %v3184_v12 = vld [vmem:[%s5422_s0 + $0x68] sm:$0xf] }
  0x8e   :  { %v3375_v36 = vcombine.low %v2406_v44, %v2420_v10  ;;  %v3410_v21 = vrot.slane %v3394_v60, 9  ;;  %v2693_v24 = vrot.slane %v4966_v54, 5  ;;  %v5213_v31 = vsel %vm4406_vm6, %v3409_v7, %v2685_v11  ;;  %v3182_v54 = vld [vmem:[%s5422_s0 + $0x60] sm:$0xf]  ;;  %v3186_v25 = vld [vmem:[%s5422_s0 + $0x70] sm:$0xf] }
  0x8f   :  { %3821 = vmatmul.mubr.msk.bf16.gmra.mrb[8].mxu0 %vm339_vm3, %v3373_v3  ;;  %v5182_v3 = vsel %vm4406_vm6, %v3406_v23, %v2673_v47  ;;  %v3411_v19 = vrot.slane %v3395_v48, 9  ;;  %v1327_v8 = vshrl.u32 %v3180_v13, 16  ;;  %v1330_v26 = vshll.u32 %v3180_v13, 16 }
  0x90   :  { %3824 = vmatprep.mubr.msk.bf16.mxu0 %vm339_vm3, %v3374_v33  ;;  %v3429_v49 = vcombine.low %v5182_v3, %v5186_v15  ;;  %v1336_v22 = vshll.u32 %v4050_v53, 16  ;;  %v1341_v17 = vshrl.u32 %v3182_v54, 16  ;;  %v3430_v61 = vcombine.low %v5196_v16, %v5213_v31  ;;  %v4044_v33 = vld [vmem:[%s5422_s0 + $0x58] ss:$8 sps:$4 sm:$0xff]  }
  0x91   :  { %v1329_v58 = vrot.slane %v1327_v8, 4  ;;  %v1332_v35 = vrot.slane %v1330_v26, 5  ;;  %v1344_v4 = vshll.u32 %v3182_v54, 16  ;;  %v5241_v46 = vsel %vm4406_vm6, %v3410_v21, %v2689_v41  ;;  %v3399_v3 = vld [vmem:[%s5422_s0 + $0x78] sm:$0xe] }
  0x92   :  { %3717 = vmatmul.mubr.msk.bf16.vlgmr.msra.gmra.mrb[0].mxu1 %vm339_vm3, %v4039_v14  ;;  %v1338_v32 = vrot.slane %v1336_v22, 5  ;;  %v1343_v45 = vrot.slane %v1341_v17, 4  ;;  %v4051_v14 = vld [vmem:[%s5422_s0 + $0x64] sm:$0x1]  ;;  %v3412_v23 = vrot.slane %v3396_v59, 9  ;;  %v5255_v47 = vsel %vm4406_vm6, %v3411_v19, %v2693_v24  ;;  %v4053_v15 = vld [vmem:[%s5421_s1 + $0x98] sm:$0xff]  }
  0x93   :  { %3856 = vmatpush3.bf16.msra.mxu1 %v5075_v57  ;;  %3720 = vmatprep.mubr.msk.bf16.mxu1 %vm339_vm3, %v4041_v30  ;;  %v4042_v57 = vld [vmem:[%s5422_s0 + $0x38] ss:$8 sps:$4 sm:$0xff]   ;;  %v1350_v27 = vshll.u32 %v4051_v14, 16  ;;  %v1333_v44 = vor.u32 %v1332_v35, %v1329_v58  ;;  %v1346_v39 = vrot.slane %v1344_v4, 5  ;;  %v2697_v30 = vrot.slane %v5003_v43, 5 }
  0x94   :  { %3853 = vmatprep.subr.bf16.mxu1 %v4049_v18  ;;  %v3413_v37 = vrot.slane %v3397_v29, 9  ;;  %v2701_v55 = vrot.slane %v5013_v42, 5  ;;  %v1355_v10 = vshrl.u32 %v3184_v12, 16  ;;  %v1358_v0 = vshll.u32 %v3184_v12, 16  ;;  %v3398_v43 = vld [vmem:[%s5422_s0 + $0x70] sm:$0xe] }
  0x95   :  { %v1334_v6 = vrot.slane %v1333_v44, 4  ;;  %v1347_v51 = vor.u32 %v1346_v39, %v1343_v45  ;;  %v1352_v38 = vrot.slane %v1350_v27, 5  ;;  %v5265_v11 = vsel %vm4406_vm6, %v3412_v23, %v2697_v30  ;;  %v3188_v16 = vld [vmem:[%s5422_s0 + $0x78] sm:$0xf]  ;;  %v3190_v8 = vld [vmem:[%s5422_s0 + $0x80] sm:$0xf] }
  0x96   :  { %v1369_v42 = vshrl.u32 %v3186_v25, 16  ;;  %v1372_v40 = vshll.u32 %v3186_v25, 16  ;;  %v2702_v41 = vsel %vm4406_vm6, %v3413_v37, %v2701_v55  ;;  %v3414_v24 = vrot.slane %v3398_v43, 9  ;;  %v3400_v58 = vld [vmem:[%s5422_s0 + $0x80] sm:$0xe] }
  0x97   :  { %3825 = vmatmul.mubr.msk.bf16.gmra.mrb[12].mxu0 %vm339_vm3, %v3375_v36  ;;  %3857 = vmatpush3.bf16.msra.mxu1 %v4049_v18  ;;  %v1357_v36 = vrot.slane %v1355_v10, 4  ;;  %v1339_v7 = vsel %vm4154_vm2, %v1334_v6, %v1338_v32  ;;  %v1348_v60 = vrot.slane %v1347_v51, 4  ;;  %v2705_v13 = vrot.slane %v5038_v56, 5  ;;  %v4046_v56 = vld [vmem:[%s5422_s0 + $0x78] ss:$8 sps:$4 sm:$0xff]  }
  0x98   :  { %3836 = vmatprep.mubr.msk.bf16.mxu0 %vm339_vm3, %v3428_v52  ;;  %3854 = vmatprep.subr.bf16.mxu1 %v4052_v63  ;;  %v1360_v52 = vrot.slane %v1358_v0, 5  ;;  %v1371_v48 = vrot.slane %v1369_v42, 4  ;;  %v1374_v21 = vrot.slane %v1372_v40, 5  ;;  %v3415_v19 = vrot.slane %v3399_v3, 9  ;;  %v4054_v4 = vld [vmem:[%s5422_s0 + $0x7c] sm:$0x1] }
  0x99   :  { %v1353_v18 = vsel %vm4154_vm2, %v1348_v60, %v1352_v38  ;;  %v2709_v54 = vrot.slane %v5046_v20, 5  ;;  %v3431_v26 = vcombine.low %v5241_v46, %v5255_v47  ;;  %v1383_v22 = vshrl.u32 %v3188_v16, 16  ;;  %v3401_v27 = vld [vmem:[%s5422_s0 + $0x88] sm:$0xe]  ;;  %v4055_v39 = vld [vmem:[%s5422_s0 + $0x84] sm:$0x1] }
  0x9a   :  { %3721 = vmatmul.mubr.msk.bf16.gmra.mrb[4].mxu1 %vm339_vm3, %v4042_v57  ;;  %v4045_v57 = vld [vmem:[%s5422_s0 + $0x68] ss:$8 sps:$4 sm:$0xff]   ;;  %v1361_v31 = vor.u32 %v1360_v52, %v1357_v36  ;;  %v1375_v53 = vor.u32 %v1374_v21, %v1371_v48  ;;  %v3208_v17 = vcombine.low %v1339_v7, %v1353_v18  ;;  %v5300_v59 = vsel %vm4406_vm6, %v3414_v24, %v2705_v13  ;;  %v3403_v52 = vld [vmem:[%s5422_s0 + $0x98] sm:$0xe]  ;;  %v4056_v48 = vld [vmem:[%s5422_s0 + $0x8c] sm:$0x1] }
  0x9b   :  { %3724 = vmatprep.mubr.msk.bf16.mxu1 %vm339_vm3, %v4044_v33  ;;  %3858 = vmatpush3.bf16.msra.mxu1 %v4052_v63  ;;  %v1386_v29 = vshll.u32 %v3188_v16, 16  ;;  %v1385_v35 = vrot.slane %v1383_v22, 4  ;;  %v1392_v12 = vshll.u32 %v4054_v4, 16  ;;  %v1397_v33 = vshrl.u32 %v3190_v8, 16  ;;  %v3192_v63 = vld [vmem:[%s5422_s0 + $0x88] sm:$0xf] }
  0x9c   :  { %3855 = vmatprep.subr.bf16.mxu1 %v4053_v15  ;;  %v1362_v20 = vrot.slane %v1361_v31, 4  ;;  %v2710_v32 = vsel %vm4406_vm6, %v3415_v19, %v2709_v54  ;;  %v1400_v14 = vshll.u32 %v3190_v8, 16  ;;  %v1406_v23 = vshll.u32 %v4055_v39, 16  ;;  %v3194_v10 = vld [vmem:[%s5422_s0 + $0x90] sm:$0xf] }
  0x9d   :  { %v1388_v45 = vrot.slane %v1386_v29, 5  ;;  %v3416_v30 = vrot.slane %v3400_v58, 9  ;;  %v2713_v55 = vrot.slane %v5070_v9, 5  ;;  %v1394_v6 = vrot.slane %v1392_v12, 5  ;;  %v4047_v0 = vld [vmem:[%s5422_s0 + $0x88] ss:$8 sps:$4 sm:$0xff]  }
  0x9e   :  { %v1367_v46 = vsel %vm4154_vm2, %v1362_v20, %v4757_v28  ;;  %v1399_v28 = vrot.slane %v1397_v33, 4  ;;  %v1402_v37 = vrot.slane %v1400_v14, 5  ;;  %v3417_v51 = vrot.slane %v3401_v27, 9  ;;  %v4057_v19 = vld [vmem:[%s5422_s0 + $0x94] sm:$0x1] }
  0x9f   :  { %3837 = vmatmul.mubr.msk.bf16.vlgmr.msra.gmra.mrb[0].mxu0 %vm339_vm3, %v3429_v49  ;;  %3859 = vmatpush3.bf16.msra.mxu1 %v4053_v15  ;;  %v3432_v49 = vcombine.low %v5265_v11, %v2702_v41  ;;  %v1389_v47 = vor.u32 %v1388_v45, %v1385_v35  ;;  %v1411_v38 = vshrl.u32 %v3192_v63, 16  ;;  %v1408_v36 = vrot.slane %v1406_v23, 5  ;;  %v3402_v41 = vld [vmem:[%s5422_s0 + $0x90] sm:$0xe] }
  0xa0   :  { %3840 = vmatprep.mubr.msk.bf16.mxu0 %vm339_vm3, %v3430_v61  ;;  %v1376_v61 = vrot.slane %v1375_v53, 4  ;;  %v1403_v11 = vor.u32 %v1402_v37, %v1399_v28  ;;  %v1414_v42 = vshll.u32 %v3192_v63, 16  ;;  %v2714_v9 = vsel %vm4406_vm6, %v3416_v30, %v2713_v55 }
  0xa1   :  { %v1390_v43 = vrot.slane %v1389_v47, 4  ;;  %v1425_v3 = vshrl.u32 %v3194_v10, 16  ;;  %v3433_v15 = vcombine.low %v5300_v59, %v2710_v32  ;;  %v1420_v21 = vshll.u32 %v4056_v48, 16 }
  0xa2   :  { %3725 = vmatmul.mubr.msk.bf16.gmra.mrb[8].mxu1 %vm339_vm3, %v4045_v57  ;;  %v1381_v44 = vsel %vm4154_vm2, %v1376_v61, %v5177_v1  ;;  %v2717_v1 = vrot.slane %v5084_v50, 5  ;;  %v1413_v50 = vrot.slane %v1411_v38, 4  ;;  %v1404_v7 = vrot.slane %v1403_v11, 4 }
  0xa3   :  { %3728 = vmatprep.mubr.msk.bf16.mxu1 %vm339_vm3, %v4046_v56  ;;  %v3209_v25 = vcombine.low %v1367_v46, %v1381_v44  ;;  %v1416_v60 = vrot.slane %v1414_v42, 5  ;;  %v1395_v16 = vsel %vm4154_vm2, %v1390_v43, %v1394_v6  ;;  %v1427_v24 = vrot.slane %v1425_v3, 4 }
  0xa4   :  { %v2718_v40 = vsel %vm4406_vm6, %v3417_v51, %v2717_v1  ;;  %v1428_v13 = vshll.u32 %v3194_v10, 16  ;;  %v1409_v57 = vsel %vm4154_vm2, %v1404_v7, %v1408_v36  ;;  %v1434_v54 = vshll.u32 %v4057_v19, 16 }
  0xa5   :  { %v3434_v18 = vcombine.low %v2714_v9, %v2718_v40  ;;  %v1417_v31 = vor.u32 %v1416_v60, %v1413_v50  ;;  %v3418_v56 = vrot.slane %v3402_v41, 9  ;;  %v2725_v53 = vrot.slane %v5121_v2, 5 }
  0xa6   :  { %v1430_v8 = vrot.slane %v1428_v13, 5  ;;  %v3210_v20 = vcombine.low %v1395_v16, %v1409_v57  ;;  %v1422_v59 = vrot.slane %v1420_v21, 5  ;;  %v1436_v29 = vrot.slane %v1434_v54, 5 }
  0xa7   :  { %3841 = vmatmul.mubr.msk.bf16.gmra.mrb[4].mxu0 %vm339_vm3, %v3431_v26  ;;  %v2721_v26 = vrot.slane %v5110_v62, 5  ;;  %v1418_v58 = vrot.slane %v1417_v31, 4 }
  0xa8   :  { %3844 = vmatprep.mubr.msk.bf16.mxu0 %vm339_vm3, %v3432_v49  ;;  %v3419_v49 = vrot.slane %v3403_v52, 9  ;;  %v1431_v22 = vor.u32 %v1430_v8, %v1427_v24 }
  0xa9   :  { %v1423_v2 = vsel %vm4154_vm2, %v1418_v58, %v1422_v59 }
  0xaa   :  { %3729 = vmatmul.mubr.msk.bf16.gmra.mrb[12].mxu1 %vm339_vm3, %v4047_v0  ;;  %v1432_v61 = vrot.slane %v1431_v22, 4  ;;  %v2726_v35 = vsel %vm4406_vm6, %v3419_v49, %v2725_v53 }
  0xab   :  { %3748 = vmatprep.mubr.msk.bf16.mxu1 %vm339_vm3, %v3208_v17  ;;  %v2722_v17 = vsel %vm4406_vm6, %v3418_v56, %v2721_v26 }
  0xac   :  { %v3435_v62 = vcombine.low %v2722_v17, %v2726_v35  ;;  %v1437_v4 = vsel %vm4154_vm2, %v1432_v61, %v1436_v29 }
  0xad   :  { %v3211_v12 = vcombine.low %v1423_v2, %v1437_v4 }
  0xaf   :  { %3845 = vmatmul.mubr.msk.bf16.gmra.mrb[8].mxu0 %vm339_vm3, %v3433_v15 }
  0xb0   :  { %3848 = vmatprep.mubr.msk.bf16.mxu0 %vm339_vm3, %v3434_v18 }
  0xb2   :  { %3749 = vmatmul.mubr.msk.bf16.vlgmr.msra.gmra.mrb[8].mxu1 %vm339_vm3, %v3209_v25 }
  0xb3   :  { %3752 = vmatprep.mubr.msk.bf16.mxu1 %vm339_vm3, %v3210_v20 }
  0xb7   :  { %3849 = vmatmul.mubr.msk.bf16.gmra.mrb[12].mxu0 %vm339_vm3, %v3435_v62 }
  0xba   :  { %3753 = vmatmul.mubr.msk.bf16.gmra.mrb[12].mxu1 %vm339_vm3, %v3211_v12 }
 0x165   :  { %v3718_v33 = vpop.f32.mrb[0].mxu1 }
 0x166   :  { %v1103_v46 = vpop.f32.mrb[1].mxu1 }
 0x167   :  { %v3719_v5 = vpop.f32.mrb[2].mxu1 }
 0x168   :  { %v1106_v32 = vpop.f32.mrb[3].mxu1 }
 0x16d   :  { %v3722_v45 = vpop.f32.mrb[4].mxu1 }
 0x16e   :  { %v1119_v14 = vpop.f32.mrb[5].mxu1 }
 0x16f   :  { %v3723_v27 = vpop.f32.mrb[6].mxu1 }
 0x170   :  { %v1122_v63 = vpop.f32.mrb[7].mxu1 }
 0x172   :  { %v3838_v44 = vpop.f32.mrb[0].mxu0 }
 0x173   :  { %v3860_v28 = vadd.f32 %v3838_v44, %v3718_v33  ;;  %v2842_v39 = vpop.f32.mrb[1].mxu0 }
 0x174   :  { %v3861_v23 = vadd.f32 %v2842_v39, %v1103_v46  ;;  %v3839_v30 = vpop.f32.mrb[2].mxu0 }
 0x175   :  { %v3862_v25 = vadd.f32 %v3839_v30, %v3719_v5  ;;  %v2845_v47 = vpop.f32.mrb[3].mxu0  ;;  %v2930_v55 = vadd.f32 %v3860_v28, %v5379_v34 }
 0x176   :  { %v3863_v37 = vadd.f32 %v2845_v47, %v1106_v32  ;;  %v2928_v6 = vadd.f32 %v3861_v23, %v5379_v34 }
 0x177   :  { %v2931_v10 = vadd.f32 %v3862_v25, %v5379_v34 }
 0x178   :  { %v2929_v51 = vadd.f32 %v3863_v37, %v5379_v34 }
 0x179   :  { %v3489_v1 = vpack.c.bf16 %v2931_v10, %v2930_v55 }
 0x17a   :  { %v3484_v38 = vpack.c.bf16 %v2929_v51, %v2928_v6  ;;  %v3842_v0 = vpop.f32.mrb[4].mxu0 }
 0x17b   :  { %3521 = vst [vmem:[%s5424_s3 + $0x8] sm:$0xff] %v3489_v1   ;;  %v3864_v43 = vadd.f32 %v3842_v0, %v3722_v45  ;;  %v2858_v11 = vpop.f32.mrb[5].mxu0 }
 0x17c   :  { %3485 = vst [vmem:[%s5424_s3] sm:$0xff] %v3484_v38   ;;  %v3865_v36 = vadd.f32 %v2858_v11, %v1119_v14  ;;  %v3843_v42 = vpop.f32.mrb[6].mxu0 }
 0x17d   :  { %v3866_v9 = vadd.f32 %v3843_v42, %v3723_v27  ;;  %v2861_v40 = vpop.f32.mrb[7].mxu0  ;;  %v2934_v3 = vadd.f32 %v3864_v43, %v5379_v34 }
 0x17e   :  { %v3867_v50 = vadd.f32 %v2861_v40, %v1122_v63  ;;  %v2932_v7 = vadd.f32 %v3865_v36, %v5379_v34 }
 0x17f   :  { %v2935_v15 = vadd.f32 %v3866_v9, %v5379_v34 }
 0x180   :  { %v2933_v60 = vadd.f32 %v3867_v50, %v5379_v34 }
 0x181   :  { %v3499_v41 = vpack.c.bf16 %v2935_v15, %v2934_v3 }
 0x182   :  { %v3494_v52 = vpack.c.bf16 %v2933_v60, %v2932_v7  ;;  %v3846_v16 = vpop.f32.mrb[8].mxu0 }
 0x183   :  { %3523 = vst [vmem:[%s5424_s3 + $0x18] sm:$0xff] %v3499_v41   ;;  %v2874_v48 = vpop.f32.mrb[9].mxu0 }
 0x184   :  { %3522 = vst [vmem:[%s5424_s3 + $0x10] sm:$0xff] %v3494_v52   ;;  %v3847_v21 = vpop.f32.mrb[10].mxu0 }
 0x185   :  { %v2877_v24 = vpop.f32.mrb[11].mxu0  ;;  %v3750_v13 = vpop.f32.mrb[8].mxu1 }
 0x186   :  { %v3868_v57 = vadd.f32 %v3846_v16, %v3750_v13  ;;  %v1585_v18 = vpop.f32.mrb[9].mxu1 }
 0x187   :  { %v3869_v31 = vadd.f32 %v2874_v48, %v1585_v18  ;;  %v3751_v19 = vpop.f32.mrb[10].mxu1 }
 0x188   :  { %v3870_v54 = vadd.f32 %v3847_v21, %v3751_v19  ;;  %v1588_v8 = vpop.f32.mrb[11].mxu1  ;;  %v2938_v49 = vadd.f32 %v3868_v57, %v5379_v34 }
 0x189   :  { %v3871_v56 = vadd.f32 %v2877_v24, %v1588_v8  ;;  %v2936_v20 = vadd.f32 %v3869_v31, %v5379_v34 }
 0x18a   :  { %v3850_v26 = vpop.f32.mrb[12].mxu0  ;;  %v2939_v53 = vadd.f32 %v3870_v54, %v5379_v34 }
 0x18b   :  { %v2890_v22 = vpop.f32.mrb[13].mxu0  ;;  %v2937_v59 = vadd.f32 %v3871_v56, %v5379_v34 }
 0x18c   :  { %v3851_v29 = vpop.f32.mrb[14].mxu0  ;;  %v3509_v58 = vpack.c.bf16 %v2939_v53, %v2938_v49 }
 0x18d   :  { %v2893_v61 = vpop.f32.mrb[15].mxu0  ;;  %v3504_v17 = vpack.c.bf16 %v2937_v59, %v2936_v20  ;;  %v3754_v35 = vpop.f32.mrb[12].mxu1 }
 0x18e   :  { %3525 = vst [vmem:[%s5424_s3 + $0x28] sm:$0xff] %v3509_v58   ;;  %v3872_v62 = vadd.f32 %v3850_v26, %v3754_v35  ;;  %v1601_v2 = vpop.f32.mrb[13].mxu1 }
 0x18f   :  { %3524 = vst [vmem:[%s5424_s3 + $0x20] sm:$0xff] %v3504_v17   ;;  %v3873_v4 = vadd.f32 %v2890_v22, %v1601_v2  ;;  %v3755_v12 = vpop.f32.mrb[14].mxu1 }
 0x190   :  { %v3874_v33 = vadd.f32 %v3851_v29, %v3755_v12  ;;  %v1604_v46 = vpop.f32.mrb[15].mxu1  ;;  %v2942_v32 = vadd.f32 %v3872_v62, %v5379_v34 }
 0x191   :  { %v3875_v5 = vadd.f32 %v2893_v61, %v1604_v46  ;;  %v2940_v14 = vadd.f32 %v3873_v4, %v5379_v34 }
 0x192   :  { %v2943_v45 = vadd.f32 %v3874_v33, %v5379_v34 }
 0x193   :  { %v2941_v27 = vadd.f32 %v3875_v5, %v5379_v34 }
 0x194   :  { %v3519_v63 = vpack.c.bf16 %v2943_v45, %v2942_v32 }
 0x195   :  { %v3514_v44 = vpack.c.bf16 %v2941_v27, %v2940_v14 }
 0x196   :  { %3527 = vst [vmem:[%s5424_s3 + $0x38] sm:$0xff] %v3519_v63  }
 0x197   :  { %3526 = vst [vmem:[%s5424_s3 + $0x30] sm:$0xff] %v3514_v44  }

// kernel: segment.5
= control target key start
LH: loop header
LB: loop body
LE: loop exit
PB: predicated region body
PF: predicated region fallthrough
CT: control target
= control target key end

     0   :  { %vm63_vm0 = vsmask.f32 3328  ;;  %vm64_vm1 = vsmask.f32 7440  ;;  %vm725_vm3 = vcmask 1042432   ;;  %vm726_vm4 = vcmask 1046532   ;;  %s6817_s1 = inlined_call_operand.vmem [shape: bf16[9,128,2], index: 1, kind: input, shape index: {}]   ;;  %s6818_s0 = inlined_call_operand.vmem [shape: bf16[2,10,10,128], index: 0, kind: input, shape index: {}]   ;;  %s6819_s2 = inlined_call_operand.vmem [shape: f32[1,2], index: 2, kind: input, shape index: {}]   ;;  %s6820_s3 = inlined_call_operand.vmem [shape: f32[128,3], index: 3, kind: output, shape index: {}]  }
   0x1   :  { %v4765_v0 = vld [vmem:[%s6817_s1 + $0x40] sm:$0xff]   ;;  %v4767_v2 = vld [vmem:[%s6817_s1 + $0x48] sm:$0xff]   ;;  %v4769_v4 = vld [vmem:[%s6817_s1 + $0x50] sm:$0xff]   ;;  %s5059_s29 = smov 1   ;;  %vm3699_vm8 = vcmask 23552  }
   0x2   :  { %v4766_v1 = vld [vmem:[%s6817_s1 + $0x100] sm:$0xff]   ;;  %4329 = vmatprep.subr.bf16.mxu1 %v4765_v0  ;;  %v4768_v3 = vld [vmem:[%s6817_s1 + $0x108] sm:$0xff]   ;;  %v4770_v5 = vld [vmem:[%s6817_s1 + $0x110] sm:$0xff]  }
   0x3   :  { %4457 = vmatprep.subr.bf16.mxu0 %v4766_v1  ;;  %4330 = vmatpush3.bf16.msra.mxu1 %v4765_v0  ;;  %v4771_v6 = vld [vmem:[%s6817_s1 + $0x58] sm:$0xff]   ;;  %v4773_v8 = vld [vmem:[%s6817_s1 + $0x60] sm:$0xff]   ;;  %v4775_v10 = vld [vmem:[%s6817_s1 + $0x68] sm:$0xff]  }
   0x4   :  { %4458 = vmatpush3.bf16.msra.mxu0 %v4766_v1  ;;  %4331 = vmatprep.subr.bf16.mxu1 %v4767_v2  ;;  %v4772_v7 = vld [vmem:[%s6817_s1 + $0x118] sm:$0xff]   ;;  %v4774_v9 = vld [vmem:[%s6817_s1 + $0x120] sm:$0xff]   ;;  %v4776_v11 = vld [vmem:[%s6817_s1 + $0x128] sm:$0xff]  }
   0x5   :  { %4459 = vmatprep.subr.bf16.mxu0 %v4768_v3  ;;  %v5120_v12 = vld [vmem:[%s6818_s0] sm:$0xf]  ;;  %v5125_v13 = vld [vmem:[%s6818_s0 + $0x8] sm:$0xf]  ;;  %v47_v14 = vld [vmem:[%s6818_s0 + $0x4] sm:$0x1] }
   0x6   :  { %v48_v15 = vld [vmem:[%s6818_s0 + $0xc] sm:$0x1]  ;;  %v67_v16 = vshrl.u32 %v5120_v12, 16  ;;  %v70_v17 = vshll.u32 %v5120_v12, 16  ;;  %v76_v18 = vshll.u32 %v47_v14, 16  ;;  %v81_v19 = vshrl.u32 %v5125_v13, 16  ;;  %vm5164_vm2 = vmor %vm63_vm0, %vm64_vm1 }
   0x7   :  { %4332 = vmatpush3.bf16.msra.mxu1 %v4767_v2  ;;  %v4777_v20 = vld [vmem:[%s6817_s1 + $0x70] sm:$0xff]   ;;  %v84_v21 = vshll.u32 %v5125_v13, 16  ;;  %v90_v22 = vshll.u32 %v48_v15, 16  ;;  %v3864_v23 = vld [vmem:[%s6818_s0 + $0x8] sm:$0xf]  ;;  %v4779_v45 = vld [vmem:[%s6817_s1 + $0x78] sm:$0xff]  }
   0x8   :  { %4460 = vmatpush3.bf16.msra.mxu0 %v4768_v3  ;;  %4333 = vmatprep.subr.bf16.mxu1 %v4769_v4  ;;  %v69_v24 = vrot.slane %v67_v16, 4  ;;  %v72_v25 = vrot.slane %v70_v17, 5  ;;  %v78_v26 = vrot.slane %v76_v18, 5  ;;  %v83_v27 = vrot.slane %v81_v19, 4  ;;  %v5146_v28 = vld [vmem:[%s6818_s0 + $0xc] sm:$0x1]  ;;  %vm5606_vm5 = vmor %vm725_vm3, %vm726_vm4 }
   0x9   :  { %4461 = vmatprep.subr.bf16.mxu0 %v4770_v5  ;;  %v86_v29 = vrot.slane %v84_v21, 5  ;;  %v92_v30 = vrot.slane %v90_v22, 5  ;;  %v3866_v31 = vld [vmem:[%s6818_s0 + $0x10] sm:$0xf]  ;;  %v5154_v32 = vld [vmem:[%s6818_s0 + $0x14] sm:$0x1] }
   0xa   :  { %v4778_v34 = vld [vmem:[%s6817_s1 + $0x130] sm:$0xff]   ;;  %v73_v35 = vor.u32 %v72_v25, %v69_v24  ;;  %v1278_v36 = vshrl.u32 %v3864_v23, 16  ;;  %v1281_v37 = vshll.u32 %v3864_v23, 16  ;;  %v1287_v38 = vshll.u32 %v5146_v28, 16  ;;  %v5180_v49 = vld [vmem:[%s6818_s0 + $0x18] sm:$0xf] }
   0xb   :  { %4334 = vmatpush3.bf16.msra.mxu1 %v4769_v4  ;;  %v87_v40 = vor.u32 %v86_v29, %v83_v27  ;;  %v1292_v41 = vshrl.u32 %v3866_v31, 16  ;;  %v1295_v42 = vshll.u32 %v3866_v31, 16  ;;  %v1301_v43 = vshll.u32 %v5154_v32, 16  ;;  %v5172_v44 = vld [vmem:[%s6818_s0 + $0x10] sm:$0xf]  ;;  %v4780_v50 = vld [vmem:[%s6817_s1 + $0x138] sm:$0xff]  }
   0xc   :  { %4462 = vmatpush3.bf16.msra.mxu0 %v4770_v5  ;;  %4335 = vmatprep.subr.bf16.mxu1 %v4771_v6  ;;  %v74_v46 = vrot.slane %v73_v35, 4  ;;  %v1280_v47 = vrot.slane %v1278_v36, 4  ;;  %v1283_v48 = vrot.slane %v1281_v37, 5  ;;  %v5188_v54 = vld [vmem:[%s6818_s0 + $0x14] sm:$0x1]  ;;  %v1289_v57 = vrot.slane %v1287_v38, 5 }
   0xd   :  { %4463 = vmatprep.subr.bf16.mxu0 %v4772_v7  ;;  %v88_v51 = vrot.slane %v87_v40, 4  ;;  %v1294_v52 = vrot.slane %v1292_v41, 4  ;;  %v1297_v53 = vrot.slane %v1295_v42, 5  ;;  %v1303_v58 = vrot.slane %v1301_v43, 5  ;;  %v5197_v61 = vld [vmem:[%s6818_s0 + $0x1c] sm:$0x1] }
   0xe   :  { %v79_v55 = vsel %vm5164_vm2, %v74_v46, %v78_v26  ;;  %v1284_v56 = vor.u32 %v1283_v48, %v1280_v47  ;;  %v95_v62 = vshrl.u32 %v5172_v44, 16  ;;  %v98_v63 = vshll.u32 %v5172_v44, 16  ;;  %v5204_v0 = vld [vmem:[%s6817_s1] sm:$0xff]   ;;  %v3868_v1 = vld [vmem:[%s6818_s0 + $0x18] sm:$0xf] }
   0xf   :  { %4336 = vmatpush3.bf16.msra.mxu1 %v4771_v6  ;;  %v93_v59 = vsel %vm5164_vm2, %v88_v51, %v92_v30  ;;  %v1298_v60 = vor.u32 %v1297_v53, %v1294_v52  ;;  %v104_v4 = vshll.u32 %v5188_v54, 16  ;;  %v109_v5 = vshrl.u32 %v5180_v49, 16  ;;  %v5214_v6 = vld [vmem:[%s6818_s0 + $0x1c] sm:$0x1]  ;;  %v3870_v14 = vld [vmem:[%s6818_s0 + $0x20] sm:$0xf] }
  0x10   :  { %4464 = vmatpush3.bf16.msra.mxu0 %v4772_v7  ;;  %4337 = vmatprep.subr.bf16.mxu1 %v4773_v8  ;;  %v3736_v2 = vcombine.low %v79_v55, %v93_v59  ;;  %v1285_v3 = vrot.slane %v1284_v56, 4  ;;  %v5219_v7 = vld [vmem:[%s6817_s1 + $0x140] sm:$0xff]   ;;  %v118_v17 = vshll.u32 %v5197_v61, 16  ;;  %v1306_v26 = vshrl.u32 %v3868_v1, 16  ;;  %v52_v56 = vld [vmem:[%s6818_s0 + $0x2c] sm:$0x1] }
  0x11   :  { %4465 = vmatprep.subr.bf16.mxu0 %v4774_v9  ;;  %v111_v16 = vrot.slane %v109_v5, 4  ;;  %v5231_v18 = vld [vmem:[%s6818_s0 + $0x24] sm:$0x1]  ;;  %v106_v21 = vrot.slane %v104_v4, 5  ;;  %v1309_v30 = vshll.u32 %v3868_v1, 16  ;;  %v1315_v31 = vshll.u32 %v5214_v6, 16 }
  0x12   :  { %4345 = vmatprep.mubr.bf16.mxu1 %v3736_v2  ;;  %v1290_v15 = vsel %vm5164_vm2, %v1285_v3, %v1289_v57  ;;  %v120_v25 = vrot.slane %v118_v17, 5  ;;  %v1320_v35 = vshrl.u32 %v3870_v14, 16  ;;  %v1323_v36 = vshll.u32 %v3870_v14, 16  ;;  %v5246_v43 = vld [vmem:[%s6818_s0 + $0x20] sm:$0xf] }
  0x13   :  { %4338 = vmatpush3.bf16.msra.mxu1 %v4773_v8  ;;  %v1299_v8 = vrot.slane %v1298_v60, 4  ;;  %v1329_v37 = vshll.u32 %v5231_v18, 16  ;;  %v1311_v42 = vrot.slane %v1309_v30, 5  ;;  %v51_v55 = vld [vmem:[%s6818_s0 + $0x24] sm:$0x1]  ;;  %v123_v57 = vshrl.u32 %v5246_v43, 16 }
  0x14   :  { %4466 = vmatpush3.bf16.msra.mxu0 %v4774_v9  ;;  %4339 = vmatprep.subr.bf16.mxu1 %v4775_v10  ;;  %v97_v9 = vrot.slane %v95_v62, 4  ;;  %v1322_v46 = vrot.slane %v1320_v35, 4  ;;  %v1325_v47 = vrot.slane %v1323_v36, 5  ;;  %v4783_v60 = vld [vmem:[%s6817_s1 + $0x8] sm:$0xff]   ;;  %v126_v62 = vshll.u32 %v5246_v43, 16 }
  0x15   :  { %4467 = vmatprep.subr.bf16.mxu0 %v4776_v11  ;;  %v1304_v19 = vsel %vm5164_vm2, %v1299_v8, %v1303_v58  ;;  %v1331_v48 = vrot.slane %v1329_v37, 5  ;;  %v3872_v1 = vld [vmem:[%s6818_s0 + $0x28] sm:$0xf]  ;;  %v125_v3 = vrot.slane %v123_v57, 4  ;;  %v5275_v14 = vld [vmem:[%s6818_s0 + $0x2c] sm:$0x1] }
  0x16   :  { %v3912_v23 = vcombine.low %v1290_v15, %v1304_v19  ;;  %v1326_v59 = vor.u32 %v1325_v47, %v1322_v46  ;;  %v3874_v19 = vld [vmem:[%s6818_s0 + $0x30] sm:$0xf]  ;;  %v4784_v30 = vld [vmem:[%s6817_s1 + $0x148] sm:$0xff]   ;;  %v1343_v35 = vshll.u32 %v5275_v14, 16 }
  0x17   :  { %4340 = vmatpush3.bf16.msra.mxu1 %v4775_v10  ;;  %v100_v10 = vrot.slane %v98_v63, 5  ;;  %v132_v63 = vshll.u32 %v51_v55, 16 }
  0x18   :  { %4468 = vmatpush3.bf16.msra.mxu0 %v4776_v11  ;;  %4341 = vmatprep.subr.bf16.mxu1 %v4777_v20  ;;  %v112_v11 = vshll.u32 %v5180_v49, 16  ;;  %v1327_v8 = vrot.slane %v1326_v59, 4  ;;  %v1345_v46 = vrot.slane %v1343_v35, 5  ;;  %v54_v59 = vld [vmem:[%s6818_s0 + $0x3c] sm:$0x1] }
  0x19   :  { %4469 = vmatprep.subr.bf16.mxu0 %v4778_v34  ;;  %4473 = vmatprep.mubr.bf16.mxu0 %v3912_v23 }
  0x1a   :  { %v114_v22 = vrot.slane %v112_v11, 5  ;;  %v146_v11 = vshll.u32 %v52_v56, 16 }
  0x1b   :  { %4342 = vmatpush3.bf16.msra.mxu1 %v4777_v20  ;;  %v101_v20 = vor.u32 %v100_v10, %v97_v9  ;;  %v128_v9 = vrot.slane %v126_v62, 5  ;;  %v134_v10 = vrot.slane %v132_v63, 5 }
  0x1c   :  { %4470 = vmatpush3.bf16.msra.mxu0 %v4778_v34  ;;  %4343 = vmatprep.subr.bf16.mxu1 %v4779_v45  ;;  %v115_v29 = vor.u32 %v114_v22, %v111_v16  ;;  %v1308_v34 = vrot.slane %v1306_v26, 4  ;;  %v1332_v22 = vsel %vm5164_vm2, %v1327_v8, %v1331_v48  ;;  %v1337_v26 = vshll.u32 %v3872_v1, 16  ;;  %v53_v48 = vld [vmem:[%s6818_s0 + $0x34] sm:$0x1] }
  0x1d   :  { %4471 = vmatprep.subr.bf16.mxu0 %v4780_v50  ;;  %v102_v27 = vrot.slane %v101_v20, 4  ;;  %v1334_v20 = vshrl.u32 %v3872_v1, 16  ;;  %v129_v23 = vor.u32 %v128_v9, %v125_v3  ;;  %v4787_v3 = vld [vmem:[%s6817_s1 + $0x18] sm:$0xff]   ;;  %v160_v9 = vshll.u32 %v53_v48, 16 }
  0x1e   :  { %v116_v41 = vrot.slane %v115_v29, 4  ;;  %v1312_v52 = vor.u32 %v1311_v42, %v1308_v34  ;;  %v1339_v37 = vrot.slane %v1337_v26, 5  ;;  %v5305_v42 = vld [vmem:[%s6818_s0 + $0x38] sm:$0xf]  ;;  %v4789_v26 = vld [vmem:[%s6817_s1 + $0x20] sm:$0xff]  }
  0x1f   :  { %4344 = vmatpush3.bf16.msra.mxu1 %v4779_v45  ;;  %v107_v40 = vsel %vm5164_vm2, %v102_v27, %v106_v21  ;;  %v1317_v45 = vrot.slane %v1315_v31, 5  ;;  %v4785_v21 = vld [vmem:[%s6817_s1 + $0x10] sm:$0xff]   ;;  %v1336_v34 = vrot.slane %v1334_v20, 4  ;;  %v130_v36 = vrot.slane %v129_v23, 4 }
  0x20   :  { %4472 = vmatpush3.bf16.msra.mxu0 %v4780_v50  ;;  %4361 = vmatprep.subr.bf16.mxu1 %v5204_v0  ;;  %v5251_v50 = vld [vmem:[%s6818_s0 + $0x28] sm:$0xf]  ;;  %v121_v51 = vsel %vm5164_vm2, %v116_v41, %v120_v25  ;;  %v1313_v2 = vrot.slane %v1312_v52, 4  ;;  %v148_v25 = vrot.slane %v146_v11, 5  ;;  %v5296_v27 = vld [vmem:[%s6818_s0 + $0x30] sm:$0xf] }
  0x21   :  { %4489 = vmatprep.subr.bf16.mxu0 %v5219_v7  ;;  %v3737_v58 = vcombine.low %v107_v40, %v121_v51  ;;  %v137_v4 = vshrl.u32 %v5251_v50, 16  ;;  %v140_v5 = vshll.u32 %v5251_v50, 16  ;;  %v1348_v40 = vshrl.u32 %v3874_v19, 16  ;;  %v4786_v52 = vld [vmem:[%s6817_s1 + $0x150] sm:$0xff]  }
  0x22   :  { %v1318_v15 = vsel %vm5164_vm2, %v1313_v2, %v1317_v45  ;;  %v1351_v41 = vshll.u32 %v3874_v19, 16  ;;  %v151_v51 = vshrl.u32 %v5296_v27, 16  ;;  %v135_v55 = vsel %vm5164_vm2, %v130_v36, %v134_v10  ;;  %v5330_v2 = vld [vmem:[%s6818_s0 + $0x3c] sm:$0x1]  ;;  %v3878_v10 = vld [vmem:[%s6818_s0 + $0x40] sm:$0xf] }
  0x23   :  { %4346 = vmatmul.mubr.bf16.vlgmr.msra.gmra.mrb[0].mxu1 %v3737_v58  ;;  %v139_v16 = vrot.slane %v137_v4, 4  ;;  %v142_v17 = vrot.slane %v140_v5, 5  ;;  %v3913_v29 = vcombine.low %v1318_v15, %v1332_v22  ;;  %v1340_v56 = vor.u32 %v1339_v37, %v1336_v34  ;;  %v5343_v19 = vld [vmem:[%s6818_s0 + $0x44] sm:$0x1] }
  0x24   :  { %4362 = vmatpush3.bf16.msra.mxu1 %v5204_v0  ;;  %v5291_v0 = vld [vmem:[%s6818_s0 + $0x34] sm:$0x1]  ;;  %v1350_v57 = vrot.slane %v1348_v40, 4  ;;  %v1353_v58 = vrot.slane %v1351_v41, 5  ;;  %v153_v63 = vrot.slane %v151_v51, 4  ;;  %v154_v1 = vshll.u32 %v5296_v27, 16 }
  0x25   :  { %4363 = vmatprep.subr.bf16.mxu1 %v4783_v60  ;;  %v143_v31 = vor.u32 %v142_v17, %v139_v16  ;;  %4474 = vmatmul.mubr.bf16.vlgmr.msra.gmra.mrb[0].mxu0 %v3913_v29  ;;  %v1357_v47 = vshll.u32 %v5291_v0, 16  ;;  %v1341_v5 = vrot.slane %v1340_v56, 4  ;;  %v165_v15 = vshrl.u32 %v5305_v42, 16  ;;  %v4791_v41 = vld [vmem:[%s6817_s1 + $0x28] sm:$0xff]   ;;  %v5362_v51 = vld [vmem:[%s6818_s0 + $0x50] sm:$0xf] }
  0x26   :  { %4490 = vmatpush3.bf16.msra.mxu0 %v5219_v7  ;;  %v1354_v8 = vor.u32 %v1353_v58, %v1350_v57  ;;  %v156_v11 = vrot.slane %v154_v1, 5  ;;  %v168_v16 = vshll.u32 %v5305_v42, 16  ;;  %v174_v17 = vshll.u32 %v54_v59, 16 }
  0x27   :  { %v144_v45 = vrot.slane %v143_v31, 4  ;;  %4491 = vmatprep.subr.bf16.mxu0 %v4784_v30  ;;  %v1359_v7 = vrot.slane %v1357_v47, 5  ;;  %v1346_v20 = vsel %vm5164_vm2, %v1341_v5, %v1345_v46  ;;  %v162_v23 = vrot.slane %v160_v9, 5 }
  0x28   :  { %4364 = vmatpush3.bf16.msra.mxu1 %v4783_v60  ;;  %v3876_v60 = vld [vmem:[%s6818_s0 + $0x38] sm:$0xf]  ;;  %v1355_v22 = vrot.slane %v1354_v8, 4  ;;  %v157_v29 = vor.u32 %v156_v11, %v153_v63  ;;  %v167_v31 = vrot.slane %v165_v15, 4  ;;  %v170_v34 = vrot.slane %v168_v16, 5 }
  0x29   :  { %4365 = vmatprep.subr.bf16.mxu1 %v4785_v21  ;;  %v149_v62 = vsel %vm5164_vm2, %v144_v45, %v148_v25  ;;  %v1362_v25 = vshrl.u32 %v3876_v60, 16  ;;  %v176_v35 = vrot.slane %v174_v17, 5  ;;  %v1365_v37 = vshll.u32 %v3876_v60, 16  ;;  %v5373_v60 = vld [vmem:[%s6818_s0 + $0x54] sm:$0x1] }
  0x2a   :  { %v3738_v4 = vcombine.low %v135_v55, %v149_v62  ;;  %4492 = vmatpush3.bf16.msra.mxu0 %v4784_v30  ;;  %v1360_v30 = vsel %vm5164_vm2, %v1355_v22, %v1359_v7  ;;  %v1371_v40 = vshll.u32 %v5330_v2, 16  ;;  %v158_v46 = vrot.slane %v157_v29, 4  ;;  %v5367_v55 = vld [vmem:[%s6818_s0 + $0x58] sm:$0xf]  ;;  %v5384_v8 = vld [vmem:[%s6818_s0 + $0x5c] sm:$0x1] }
  0x2b   :  { %4493 = vmatprep.subr.bf16.mxu0 %v4786_v52  ;;  %v1364_v36 = vrot.slane %v1362_v25, 4  ;;  %v3914_v45 = vcombine.low %v1346_v20, %v1360_v30  ;;  %v171_v47 = vor.u32 %v170_v34, %v167_v31  ;;  %v1376_v48 = vshrl.u32 %v3878_v10, 16  ;;  %6830 = vst [vmem:[#allocation2_spill] sm:$0xff] %v5384_v8  ;;  %v3880_v17 = vld [vmem:[%s6818_s0 + $0x58] sm:$0xf]  ;;  %v4792_v31 = vld [vmem:[%s6817_s1 + $0x168] sm:$0xff]  }
  0x2c   :  { %4366 = vmatpush3.bf16.msra.mxu1 %v4785_v21  ;;  %4349 = vmatprep.mubr.bf16.mxu1 %v3738_v4  ;;  %v4788_v21 = vld [vmem:[%s6817_s1 + $0x158] sm:$0xff]   ;;  %v1367_v56 = vrot.slane %v1365_v37, 5  ;;  %v1373_v57 = vrot.slane %v1371_v40, 5  ;;  %v1379_v58 = vshll.u32 %v3878_v10, 16  ;;  %v1385_v59 = vshll.u32 %v5343_v19, 16  ;;  %v4793_v34 = vld [vmem:[%s6817_s1 + $0x30] sm:$0xff]  }
  0x2d   :  { %4367 = vmatprep.subr.bf16.mxu1 %v4787_v3  ;;  %4477 = vmatprep.mubr.bf16.mxu0 %v3914_v45  ;;  %v163_v62 = vsel %vm5164_vm2, %v158_v46, %v162_v23  ;;  %v172_v7 = vrot.slane %v171_v47, 4  ;;  %v1378_v63 = vrot.slane %v1376_v48, 4  ;;  %v179_v1 = vshrl.u32 %v5362_v51, 16  ;;  %v5397_v29 = vld [vmem:[%s6818_s0 + $0x5c] sm:$0x1] }
  0x2e   :  { %4494 = vmatpush3.bf16.msra.mxu0 %v4786_v52  ;;  %v1368_v52 = vor.u32 %v1367_v56, %v1364_v36  ;;  %v1381_v4 = vrot.slane %v1379_v58, 5  ;;  %v1387_v5 = vrot.slane %v1385_v59, 5  ;;  %v182_v9 = vshll.u32 %v5362_v51, 16  ;;  %v3882_v36 = vld [vmem:[%s6818_s0 + $0x60] sm:$0xf] }
  0x2f   :  { %4495 = vmatprep.subr.bf16.mxu0 %v4788_v21  ;;  %v177_v10 = vsel %vm5164_vm2, %v172_v7, %v176_v35  ;;  %v181_v11 = vrot.slane %v179_v1, 4  ;;  %v188_v15 = vshll.u32 %v5373_v60, 16  ;;  %v193_v16 = vshrl.u32 %v5367_v55, 16  ;;  %v5415_v46 = vld [vmem:[%s6818_s0 + $0x64] sm:$0x1]  ;;  %v4794_v7 = vld [vmem:[%s6817_s1 + $0x170] sm:$0xff]  }
  0x30   :  { %4368 = vmatpush3.bf16.msra.mxu1 %v4787_v3  ;;  %v4790_v3 = vld [vmem:[%s6817_s1 + $0x160] sm:$0xff]   ;;  %v3739_v20 = vcombine.low %v163_v62, %v177_v10  ;;  %v1369_v22 = vrot.slane %v1368_v52, 4  ;;  %v1382_v23 = vor.u32 %v1381_v4, %v1378_v63  ;;  %v184_v25 = vrot.slane %v182_v9, 5  ;;  %v4795_v9 = vld [vmem:[%s6817_s1 + $0x38] sm:$0xff]  }
  0x31   :  { %4369 = vmatprep.subr.bf16.mxu1 %v4789_v26  ;;  %v195_v35 = vrot.slane %v193_v16, 4  ;;  %v196_v30 = vshll.u32 %v5367_v55, 16  ;;  %v1390_v47 = vshrl.u32 %v3880_v17, 16  ;;  %v5420_v48 = vld [vmem:[%s6818_s0 + $0x60] sm:$0xf]  ;;  %v1393_v59 = vshll.u32 %v3880_v17, 16 }
  0x32   :  { %4496 = vmatpush3.bf16.msra.mxu0 %v4788_v21  ;;  %v202_v21 = vshll.u32 %v5384_v8, 16  ;;  %4350 = vmatmul.mubr.bf16.gmra.mrb[4].mxu1 %v3739_v20  ;;  %v1374_v37 = vsel %vm5164_vm2, %v1369_v22, %v1373_v57  ;;  %v1383_v40 = vrot.slane %v1382_v23, 4  ;;  %v185_v45 = vor.u32 %v184_v25, %v181_v11  ;;  %v5426_v57 = vld [vmem:[%s6818_s0 + $0x68] sm:$0xf]  ;;  %v5439_v16 = vld [vmem:[%s6818_s0 + $0x64] sm:$0x1] }
  0x33   :  { %4497 = vmatprep.subr.bf16.mxu0 %v4790_v3  ;;  %v198_v56 = vrot.slane %v196_v30, 5  ;;  %v1399_v62 = vshll.u32 %v5397_v29, 16  ;;  %v1392_v52 = vrot.slane %v1390_v47, 4  ;;  %v1404_v4 = vshrl.u32 %v3882_v36, 16  ;;  %6831 = vst [vmem:[#allocation3_spill] sm:$0xff] %v5439_v16 }
  0x34   :  { %4370 = vmatpush3.bf16.msra.mxu1 %v4789_v26  ;;  %v190_v26 = vrot.slane %v188_v15, 5  ;;  %v204_v58 = vrot.slane %v202_v21, 5  ;;  %v1388_v63 = vsel %vm5164_vm2, %v1383_v40, %v1387_v5  ;;  %v186_v1 = vrot.slane %v185_v45, 4  ;;  %v5447_v22 = vld [vmem:[%s6818_s0 + $0x6c] sm:$0x1] }
  0x35   :  { %4371 = vmatprep.subr.bf16.mxu1 %v4791_v41  ;;  %v3915_v10 = vcombine.low %v1374_v37, %v1388_v63  ;;  %v199_v11 = vor.u32 %v198_v56, %v195_v35  ;;  %v1395_v15 = vrot.slane %v1393_v59, 5  ;;  %v1406_v17 = vrot.slane %v1404_v4, 4  ;;  %6832 = vst [vmem:[#allocation4_spill] sm:$0xff] %v5447_v22  ;;  %v5457_v21 = vld [vmem:[%s6818_s0 + $0x6c] sm:$0x1] }
  0x36   :  { %4498 = vmatpush3.bf16.msra.mxu0 %v4790_v3  ;;  %v191_v5 = vsel %vm5164_vm2, %v186_v1, %v190_v26  ;;  %v1407_v3 = vshll.u32 %v3882_v36, 16  ;;  %v1413_v20 = vshll.u32 %v5415_v46, 16  ;;  %v207_v35 = vshrl.u32 %v5420_v48, 16  ;;  %v3884_v26 = vld [vmem:[%s6818_s0 + $0x68] sm:$0xf]  ;;  %v4796_v36 = vld [vmem:[%s6817_s1 + $0x178] sm:$0xff]  }
  0x37   :  { %4499 = vmatprep.subr.bf16.mxu0 %v4792_v31  ;;  %4478 = vmatmul.mubr.bf16.gmra.mrb[4].mxu0 %v3915_v10  ;;  %v200_v23 = vrot.slane %v199_v11, 4  ;;  %v1396_v25 = vor.u32 %v1395_v15, %v1392_v52  ;;  %v210_v30 = vshll.u32 %v5420_v48, 16  ;;  %v216_v45 = vshll.u32 %v5439_v16, 16  ;;  %v3886_v56 = vld [vmem:[%s6818_s0 + $0x70] sm:$0xf]  ;;  %v5472_v1 = vld [vmem:[%s6817_s1 + $0x80] sm:$0xff]  }
  0x38   :  { %4372 = vmatpush3.bf16.msra.mxu1 %v4791_v41  ;;  %v1401_v41 = vrot.slane %v1399_v62, 5  ;;  %v1409_v37 = vrot.slane %v1407_v3, 5  ;;  %v1415_v40 = vrot.slane %v1413_v20, 5  ;;  %v221_v47 = vshrl.u32 %v5426_v57, 16  ;;  %v5481_v20 = vld [vmem:[%s6818_s0 + $0x74] sm:$0x1] }
  0x39   :  { %4373 = vmatprep.subr.bf16.mxu1 %v4793_v34  ;;  %v205_v59 = vsel %vm5164_vm2, %v200_v23, %v204_v58  ;;  %v209_v62 = vrot.slane %v207_v35, 4  ;;  %v212_v63 = vrot.slane %v210_v30, 5  ;;  %v218_v10 = vrot.slane %v216_v45, 5 }
  0x3a   :  { %4500 = vmatpush3.bf16.msra.mxu0 %v4792_v31  ;;  %v3740_v52 = vcombine.low %v191_v5, %v205_v59  ;;  %v1410_v4 = vor.u32 %v1409_v37, %v1406_v17  ;;  %v223_v11 = vrot.slane %v221_v47, 4  ;;  %v224_v3 = vshll.u32 %v5426_v57, 16  ;;  %v5486_v5 = vld [vmem:[%s6817_s1 + $0x180] sm:$0xff]  }
  0x3b   :  { %4501 = vmatprep.subr.bf16.mxu0 %v4794_v7  ;;  %v213_v15 = vor.u32 %v212_v63, %v209_v62  ;;  %v230_v58 = vshll.u32 %v5447_v22, 16  ;;  %v1418_v23 = vshrl.u32 %v3884_v26, 16  ;;  %v1432_v45 = vshrl.u32 %v3886_v56, 16 }
  0x3c   :  { %4374 = vmatpush3.bf16.msra.mxu1 %v4793_v34  ;;  %v1397_v34 = vrot.slane %v1396_v25, 4  ;;  %4353 = vmatprep.mubr.bf16.mxu1 %v3740_v52  ;;  %v1411_v17 = vrot.slane %v1410_v4, 4  ;;  %v1427_v25 = vshll.u32 %v5457_v21, 16  ;;  %v226_v30 = vrot.slane %v224_v3, 5 }
  0x3d   :  { %4375 = vmatprep.subr.bf16.mxu1 %v4795_v9  ;;  %v214_v35 = vrot.slane %v213_v15, 4  ;;  %v232_v37 = vrot.slane %v230_v58, 5  ;;  %v1420_v59 = vrot.slane %v1418_v23, 4  ;;  %v1434_v4 = vrot.slane %v1432_v45, 4  ;;  %v5507_v15 = vld [vmem:[%s6818_s0 + $0x74] sm:$0x1] }
  0x3e   :  { %v1402_v31 = vsel %vm5164_vm2, %v1397_v34, %v1401_v41  ;;  %v1421_v41 = vshll.u32 %v3884_v26, 16  ;;  %4502 = vmatpush3.bf16.msra.mxu0 %v4794_v7  ;;  %v1416_v47 = vsel %vm5164_vm2, %v1411_v17, %v1415_v40  ;;  %v1429_v34 = vrot.slane %v1427_v25, 5  ;;  %v5500_v7 = vld [vmem:[%s6818_s0 + $0x78] sm:$0xf]  ;;  %6833 = vst [vmem:[#allocation5_spill] sm:$0xff] %v5507_v15 }
  0x3f   :  { %4503 = vmatprep.subr.bf16.mxu0 %v4796_v36  ;;  %v3916_v62 = vcombine.low %v1402_v31, %v1416_v47  ;;  %v219_v63 = vsel %vm5164_vm2, %v214_v35, %v218_v10  ;;  %v227_v52 = vor.u32 %v226_v30, %v223_v11  ;;  %v1435_v3 = vshll.u32 %v3886_v56, 16  ;;  %v5513_v17 = vld [vmem:[%s6818_s0 + $0x7c] sm:$0x1]  ;;  %v3888_v56 = vld [vmem:[%s6818_s0 + $0x78] sm:$0xf] }
  0x40   :  { %4376 = vmatpush3.bf16.msra.mxu1 %v4795_v9  ;;  %v5492_v9 = vld [vmem:[%s6818_s0 + $0x70] sm:$0xf]  ;;  %v1423_v26 = vrot.slane %v1421_v41, 5  ;;  %v1441_v58 = vshll.u32 %v5481_v20, 16  ;;  %6834 = vst [vmem:[#allocation6_spill] sm:$0xff] %v5513_v17  ;;  %v244_v23 = vshll.u32 %v5507_v15, 16 }
  0x41   :  { %4393 = vmatprep.subr.bf16.mxu1 %v5472_v1  ;;  %v235_v31 = vshrl.u32 %v5492_v9, 16  ;;  %4481 = vmatprep.mubr.bf16.mxu0 %v3916_v62  ;;  %v228_v10 = vrot.slane %v227_v52, 4  ;;  %v238_v11 = vshll.u32 %v5492_v9, 16  ;;  %v249_v41 = vshrl.u32 %v5500_v7, 16  ;;  %v3890_v52 = vld [vmem:[%s6818_s0 + $0x80] sm:$0xf] }
  0x42   :  { %v1424_v40 = vor.u32 %v1423_v26, %v1420_v59  ;;  %4504 = vmatpush3.bf16.msra.mxu0 %v4796_v36  ;;  %v1437_v35 = vrot.slane %v1435_v3, 5  ;;  %v1443_v30 = vrot.slane %v1441_v58, 5  ;;  %v5526_v36 = vld [vmem:[%s6818_s0 + $0x7c] sm:$0x1]  ;;  %v246_v26 = vrot.slane %v244_v23, 5 }
  0x43   :  { %4521 = vmatprep.subr.bf16.mxu0 %v5486_v5  ;;  %v237_v45 = vrot.slane %v235_v31, 4  ;;  %v233_v47 = vsel %vm5164_vm2, %v228_v10, %v232_v37  ;;  %v240_v59 = vrot.slane %v238_v11, 5  ;;  %v251_v62 = vrot.slane %v249_v41, 4  ;;  %v5540_v37 = vld [vmem:[%s6818_s0 + $0x84] sm:$0x1] }
  0x44   :  { %v1425_v25 = vrot.slane %v1424_v40, 4  ;;  %v3741_v33 = vcombine.low %v219_v63, %v233_v47  ;;  %v1438_v3 = vor.u32 %v1437_v35, %v1434_v4  ;;  %v252_v58 = vshll.u32 %v5500_v7, 16 }
  0x45   :  { %v241_v31 = vor.u32 %v240_v59, %v237_v45  ;;  %v258_v53 = vshll.u32 %v5513_v17, 16  ;;  %v1446_v10 = vshrl.u32 %v3888_v56, 16  ;;  %v1449_v11 = vshll.u32 %v3888_v56, 16 }
  0x46   :  { %v1430_v40 = vsel %vm5164_vm2, %v1425_v25, %v1429_v34  ;;  %4354 = vmatmul.mubr.bf16.gmra.mrb[8].mxu1 %v3741_v33  ;;  %v1439_v23 = vrot.slane %v1438_v3, 4  ;;  %v254_v41 = vrot.slane %v252_v58, 5  ;;  %v1455_v63 = vshll.u32 %v5526_v36, 16  ;;  %v5546_v34 = vld [vmem:[%s6818_s0 + $0x80] sm:$0xf] }
  0x47   :  { %v1460_v47 = vshrl.u32 %v3890_v52, 16  ;;  %v242_v4 = vrot.slane %v241_v31, 4  ;;  %v260_v25 = vrot.slane %v258_v53, 5  ;;  %v1448_v35 = vrot.slane %v1446_v10, 4  ;;  %v5553_v58 = vld [vmem:[%s6818_s0 + $0x88] sm:$0xf] }
  0x48   :  { %v1451_v45 = vrot.slane %v1449_v11, 5  ;;  %v1444_v56 = vsel %vm5164_vm2, %v1439_v23, %v1443_v30  ;;  %v255_v33 = vor.u32 %v254_v41, %v251_v62  ;;  %v1457_v59 = vrot.slane %v1455_v63, 5  ;;  %v5560_v11 = vld [vmem:[%s6818_s0 + $0x84] sm:$0x1]  ;;  %v5565_v30 = vld [vmem:[%s6818_s0 + $0x8c] sm:$0x1] }
  0x49   :  { %v1462_v3 = vrot.slane %v1460_v47, 4  ;;  %v3917_v38 = vcombine.low %v1430_v40, %v1444_v56  ;;  %v247_v31 = vsel %vm5164_vm2, %v242_v4, %v246_v26  ;;  %v1463_v10 = vshll.u32 %v3890_v52, 16  ;;  %6835 = vst [vmem:[#allocation7_spill] sm:$0xff] %v5560_v11  ;;  %6836 = vst [vmem:[#allocation8_spill] sm:$0xff] %v5565_v30  ;;  %v3892_v26 = vld [vmem:[%s6818_s0 + $0x88] sm:$0xf] }
  0x4a   :  { %v1452_v53 = vor.u32 %v1451_v45, %v1448_v35  ;;  %v256_v62 = vrot.slane %v255_v33, 4  ;;  %v1469_v23 = vshll.u32 %v5540_v37, 16  ;;  %v263_v40 = vshrl.u32 %v5546_v34, 16  ;;  %v5576_v52 = vld [vmem:[%s6818_s0 + $0x8c] sm:$0x1] }
  0x4b   :  { %v266_v41 = vshll.u32 %v5546_v34, 16  ;;  %v1773_v63 = vrot.slane %v5231_v18, 5  ;;  %4482 = vmatmul.mubr.bf16.gmra.mrb[8].mxu0 %v3917_v38  ;;  %v1465_v4 = vrot.slane %v1463_v10, 5  ;;  %v277_v35 = vshrl.u32 %v5553_v58, 16  ;;  %v3894_v45 = vld [vmem:[%s6818_s0 + $0x90] sm:$0xf] }
  0x4c   :  { %v1453_v47 = vrot.slane %v1452_v53, 4  ;;  %v261_v56 = vsel %vm5164_vm2, %v256_v62, %v260_v25  ;;  %v265_v33 = vrot.slane %v263_v40, 4  ;;  %v272_v22 = vshll.u32 %v5560_v11, 16  ;;  %v5593_v25 = vld [vmem:[%s6818_s0 + $0x94] sm:$0x1] }
  0x4d   :  { %v268_v24 = vrot.slane %v266_v41, 5  ;;  %v3742_v16 = vcombine.low %v247_v31, %v261_v56  ;;  %v1466_v38 = vor.u32 %v1465_v4, %v1462_v3  ;;  %v1471_v53 = vrot.slane %v1469_v23, 5 }
  0x4e   :  { %v1458_v18 = vsel %vm5164_vm2, %v1453_v47, %v1457_v59  ;;  %v279_v17 = vrot.slane %v277_v35, 4  ;;  %v280_v15 = vshll.u32 %v5553_v58, 16  ;;  %v286_v8 = vshll.u32 %v5565_v30, 16  ;;  %v3928_v47 = vld [vmem:[%s6818_s0 + $0x8] sm:$0xe] }
  0x4f   :  { %v269_v10 = vor.u32 %v268_v24, %v265_v33  ;;  %4357 = vmatprep.mubr.bf16.mxu1 %v3742_v16  ;;  %v1467_v62 = vrot.slane %v1466_v38, 4  ;;  %v1474_v40 = vshrl.u32 %v3892_v26, 16  ;;  %v1477_v31 = vshll.u32 %v3892_v26, 16  ;;  %v3929_v16 = vld [vmem:[%s6818_s0 + $0x10] sm:$0xe] }
  0x50   :  { %v1483_v41 = vshll.u32 %v5576_v52, 16  ;;  %v274_v3 = vrot.slane %v272_v22, 5  ;;  %v282_v23 = vrot.slane %v280_v15, 5  ;;  %v1488_v24 = vshrl.u32 %v3894_v45, 16 }
  0x51   :  { %v270_v59 = vrot.slane %v269_v10, 4  ;;  %v1472_v4 = vsel %vm5164_vm2, %v1467_v62, %v1471_v53  ;;  %v288_v35 = vrot.slane %v286_v8, 5  ;;  %v1476_v56 = vrot.slane %v1474_v40, 4  ;;  %v3930_v62 = vld [vmem:[%s6818_s0 + $0x18] sm:$0xe] }
  0x52   :  { %v1479_v33 = vrot.slane %v1477_v31, 5  ;;  %v3918_v26 = vcombine.low %v1458_v18, %v1472_v4  ;;  %v283_v38 = vor.u32 %v282_v23, %v279_v17  ;;  %v1485_v10 = vrot.slane %v1483_v41, 5  ;;  %v3931_v31 = vld [vmem:[%s6818_s0 + $0x20] sm:$0xe] }
  0x53   :  { %v1490_v22 = vrot.slane %v1488_v24, 4  ;;  %v1491_v11 = vshll.u32 %v3894_v45, 16  ;;  %v1497_v8 = vshll.u32 %v5593_v25, 16  ;;  %v3944_v53 = vrot.slane %v3928_v47, 9 }
  0x54   :  { %v1480_v30 = vor.u32 %v1479_v33, %v1476_v56  ;;  %4485 = vmatprep.mubr.bf16.mxu0 %v3918_v26  ;;  %v275_v17 = vsel %vm5164_vm2, %v270_v59, %v274_v3  ;;  %v284_v18 = vrot.slane %v283_v38, 4  ;;  %v3945_v40 = vrot.slane %v3929_v16, 9 }
  0x55   :  { %v3946_v41 = vrot.slane %v3930_v62, 9  ;;  %v1493_v45 = vrot.slane %v1491_v11, 5  ;;  %v1499_v24 = vrot.slane %v1497_v8, 5  ;;  %v6839_v47 = vrot.slane %v5146_v28, 5 }
  0x56   :  { %v1481_v23 = vrot.slane %v1480_v30, 4  ;;  %v289_v56 = vsel %vm5164_vm2, %v284_v18, %v288_v35  ;;  %v6840_v59 = vrot.slane %v5154_v32, 5  ;;  %v6841_v33 = vrot.slane %v5214_v6, 5  ;;  %v3932_v32 = vld [vmem:[%s6818_s0 + $0x28] sm:$0xe] }
  0x57   :  { %v1762_v4 = vsel %vm5606_vm5, %v3944_v53, %v6839_v47  ;;  %v3947_v11 = vrot.slane %v3931_v31, 9  ;;  %v3743_v16 = vcombine.low %v275_v17, %v289_v56  ;;  %v1494_v26 = vor.u32 %v1493_v45, %v1490_v22  ;;  %v3933_v6 = vld [vmem:[%s6818_s0 + $0x30] sm:$0xe] }
  0x58   :  { %v1766_v3 = vsel %vm5606_vm5, %v3945_v40, %v6840_v59  ;;  %v1770_v30 = vsel %vm5606_vm5, %v3946_v41, %v6841_v33  ;;  %v3754_v35 = vcombine.low %v5246_v43, %v5251_v50  ;;  %v1486_v8 = vsel %vm5164_vm2, %v1481_v23, %v1485_v10  ;;  %v3934_v10 = vld [vmem:[%s6818_s0 + $0x38] sm:$0xe]  ;;  %v4801_v41 = vld [vmem:[%s6817_s1 + $0x88] sm:$0xff]  }
  0x59   :  { %v3976_v28 = vcombine.low %v1762_v4, %v1766_v3  ;;  %v1774_v38 = vsel %vm5606_vm5, %v3947_v11, %v1773_v63  ;;  %4358 = vmatmul.mubr.bf16.gmra.mrb[12].mxu1 %v3743_v16  ;;  %v1495_v22 = vrot.slane %v1494_v26, 4  ;;  %v6842_v63 = vcombine.low %v5120_v12, %v5125_v13  ;;  %v3935_v13 = vld [vmem:[%s6818_s0 + $0x40] sm:$0xe]  ;;  %v3936_v59 = vld [vmem:[%s6818_s0 + $0x58] sm:$0xe] }
  0x5a   :  { %v3977_v53 = vcombine.low %v1770_v30, %v1774_v38  ;;  %v1777_v43 = vrot.slane %v5275_v14, 5  ;;  %v1781_v50 = vrot.slane %v5291_v0, 5  ;;  %v3755_v62 = vcombine.low %v5296_v27, %v5305_v42  ;;  %v5665_v14 = vld [vmem:[%s6818_s0 + $0x4] sm:$0x1]  ;;  %v5671_v27 = vld [vmem:[%s6818_s0 + $0xc] sm:$0x1] }
  0x5b   :  { %4377 = vmatprep.mubr.bf16.mxu1 %v6842_v63  ;;  %v1500_v17 = vsel %vm5164_vm2, %v1495_v22, %v1499_v24  ;;  %v3948_v18 = vrot.slane %v3932_v32, 9  ;;  %v3949_v40 = vrot.slane %v3933_v6, 9  ;;  %v3753_v12 = vcombine.low %v5172_v44, %v5180_v49  ;;  %v3937_v3 = vld [vmem:[%s6818_s0 + $0x60] sm:$0xe]  ;;  %v4805_v30 = vld [vmem:[%s6817_s1 + $0x90] sm:$0xff]   ;;  %v4807_v38 = vld [vmem:[%s6817_s1 + $0x98] sm:$0xff]  }
  0x5c   :  { %v3919_v31 = vcombine.low %v1486_v8, %v1500_v17  ;;  %v730_v0 = vrot.slane %v5665_v14, 5  ;;  %v734_v42 = vrot.slane %v5671_v27, 5  ;;  %v738_v44 = vrot.slane %v5188_v54, 5  ;;  %v4806_v22 = vld [vmem:[%s6817_s1 + $0x190] sm:$0xff]   ;;  %v4808_v17 = vld [vmem:[%s6817_s1 + $0x198] sm:$0xff]   ;;  %v4812_v54 = vld [vmem:[%s6817_s1 + $0x1a0] sm:$0xff]  }
  0x5d   :  { %v742_v49 = vrot.slane %v5197_v61, 5  ;;  %v3950_v23 = vrot.slane %v3934_v10, 9  ;;  %v1785_v45 = vrot.slane %v5330_v2, 5  ;;  %v1778_v24 = vsel %vm5606_vm5, %v3948_v18, %v1777_v43  ;;  %v3938_v2 = vld [vmem:[%s6818_s0 + $0x68] sm:$0xe]  ;;  %v4811_v18 = vld [vmem:[%s6817_s1 + $0xa0] sm:$0xff]  }
  0x5e   :  { %4486 = vmatmul.mubr.bf16.gmra.mrb[12].mxu0 %v3919_v31  ;;  %v1782_v47 = vsel %vm5606_vm5, %v3949_v40, %v1781_v50  ;;  %v3951_v4 = vrot.slane %v3935_v13, 9  ;;  %v1789_v56 = vrot.slane %v5343_v19, 5  ;;  %v4802_v19 = vld [vmem:[%s6817_s1 + $0x188] sm:$0xff]   ;;  %v1793_v11 = vrot.slane %v5397_v29, 5 }
  0x5f   :  { %4505 = vmatprep.mubr.bf16.mxu0 %v3976_v28  ;;  %v3978_v33 = vcombine.low %v1778_v24, %v1782_v47  ;;  %v1797_v16 = vrot.slane %v5415_v46, 5  ;;  %v3952_v26 = vrot.slane %v3936_v59, 9  ;;  %v3953_v28 = vrot.slane %v3937_v3, 9  ;;  %v678_v43 = vld [vmem:[%s6818_s0 + $0x8] sm:$0xe]  ;;  %v4817_v3 = vld [vmem:[%s6817_s1 + $0xb0] sm:$0xff]  }
  0x60   :  { %v1801_v32 = vrot.slane %v5457_v21, 5  ;;  %v1805_v6 = vrot.slane %v5481_v20, 5  ;;  %v1809_v8 = vrot.slane %v5526_v36, 5  ;;  %v1786_v29 = vsel %vm5606_vm5, %v3950_v23, %v1785_v45  ;;  %v3940_v21 = vld [vmem:[%s6818_s0 + $0x78] sm:$0xe]  ;;  %v4813_v47 = vld [vmem:[%s6817_s1 + $0xa8] sm:$0xff]  }
  0x61   :  { %4378 = vmatmul.mubr.bf16.vlgmr.msra.gmra.mrb[0].mxu1 %v3753_v12  ;;  %v1790_v46 = vsel %vm5606_vm5, %v3951_v4, %v1789_v56  ;;  %v3756_v63 = vcombine.low %v5362_v51, %v5367_v55  ;;  %v3941_v20 = vld [vmem:[%s6818_s0 + $0x80] sm:$0xe]  ;;  %v1794_v36 = vsel %vm5606_vm5, %v3952_v26, %v1793_v11  ;;  %v3956_v40 = vrot.slane %v3940_v21, 9  ;;  %v680_v23 = vld [vmem:[%s6818_s0 + $0x18] sm:$0xe]  ;;  %v4814_v59 = vld [vmem:[%s6817_s1 + $0x1a8] sm:$0xff]  }
  0x62   :  { %4394 = vmatpush3.bf16.msra.mxu1 %v5472_v1  ;;  %4381 = vmatprep.mubr.bf16.mxu1 %v3754_v35  ;;  %v3939_v1 = vld [vmem:[%s6818_s0 + $0x70] sm:$0xe]  ;;  %v3954_v35 = vrot.slane %v3938_v2, 9  ;;  %v677_v51 = vld [vmem:[%s6818_s0] sm:$0xe]  ;;  %v3979_v55 = vcombine.low %v1786_v29, %v1790_v46  ;;  %v3957_v31 = vrot.slane %v3941_v20, 9  ;;  %v3758_v4 = vcombine.low %v5492_v9, %v5500_v7 }
  0x63   :  { %4395 = vmatprep.subr.bf16.mxu1 %v4801_v41  ;;  %v3768_v50 = vrot.slane %v677_v51, 9  ;;  %v3769_v10 = vrot.slane %v678_v43, 9  ;;  %v3771_v45 = vrot.slane %v680_v23, 9  ;;  %v3942_v27 = vld [vmem:[%s6818_s0 + $0x88] sm:$0xe]  ;;  %v1810_v61 = vsel %vm5606_vm5, %v3956_v40, %v1809_v8  ;;  %v4820_v20 = vld [vmem:[%s6817_s1 + $0x1b8] sm:$0xff]  }
  0x64   :  { %v1802_v24 = vsel %vm5606_vm5, %v3954_v35, %v1801_v32  ;;  %v3943_v7 = vld [vmem:[%s6818_s0 + $0x90] sm:$0xe]  ;;  %v3958_v2 = vrot.slane %v3942_v27, 9  ;;  %v682_v26 = vld [vmem:[%s6818_s0 + $0x28] sm:$0xe] }
  0x65   :  { %v5749_v13 = vsel %vm5606_vm5, %v3768_v50, %v730_v0  ;;  %v3757_v0 = vcombine.low %v5420_v48, %v5426_v57  ;;  %v5789_v9 = vsel %vm5606_vm5, %v3771_v45, %v742_v49  ;;  %v3773_v32 = vrot.slane %v682_v26, 9  ;;  %v683_v29 = vld [vmem:[%s6818_s0 + $0x30] sm:$0xe]  ;;  %v684_v46 = vld [vmem:[%s6818_s0 + $0x38] sm:$0xe] }
  0x66   :  { %4506 = vmatmul.mubr.bf16.vlgmr.msra.gmra.mrb[0].mxu0 %v3977_v53  ;;  %4396 = vmatpush3.bf16.msra.mxu1 %v4801_v41  ;;  %v1798_v53 = vsel %vm5606_vm5, %v3953_v28, %v1797_v16  ;;  %v679_v41 = vld [vmem:[%s6818_s0 + $0x10] sm:$0xe]  ;;  %v681_v16 = vld [vmem:[%s6818_s0 + $0x20] sm:$0xe]  ;;  %v3759_v28 = vcombine.low %v5546_v34, %v5553_v58  ;;  %v5055_v34 = vld [vmem:[%s6818_s0 + $0x24] sm:$0x1] }
  0x67   :  { %4522 = vmatpush3.bf16.msra.mxu0 %v5486_v5  ;;  %4509 = vmatprep.mubr.bf16.mxu0 %v3978_v33  ;;  %v3955_v5 = vrot.slane %v3939_v1, 9  ;;  %v3980_v12 = vcombine.low %v1794_v36, %v1798_v53  ;;  %v3770_v14 = vrot.slane %v679_v41, 9  ;;  %v3959_v33 = vrot.slane %v3943_v7, 9  ;;  %v4818_v1 = vld [vmem:[%s6817_s1 + $0x1b0] sm:$0xff]   ;;  %v4822_v36 = vld [vmem:[%s6817_s1 + $0xc0] sm:$0xff]  }
  0x68   :  { %4523 = vmatprep.subr.bf16.mxu0 %v4802_v19  ;;  %4397 = vmatprep.subr.bf16.mxu1 %v4805_v30  ;;  %v3772_v35 = vrot.slane %v681_v16, 9  ;;  %v746_v58 = vrot.slane %v5055_v34, 5  ;;  %v5057_v53 = vld [vmem:[%s6818_s0 + $0x34] sm:$0x1]  ;;  %v686_v40 = vld [vmem:[%s6818_s0 + $0x58] sm:$0xe] }
  0x69   :  { %4382 = vmatmul.mubr.bf16.gmra.mrb[4].mxu1 %v3755_v62  ;;  %v1813_v62 = vrot.slane %v5540_v37, 5  ;;  %v5761_v37 = vsel %vm5606_vm5, %v3769_v10, %v734_v42  ;;  %v1806_v48 = vsel %vm5606_vm5, %v3955_v5, %v1805_v6  ;;  %v5783_v57 = vsel %vm5606_vm5, %v3770_v14, %v738_v44  ;;  %v5056_v6 = vld [vmem:[%s6818_s0 + $0x2c] sm:$0x1]  ;;  %v6843_v41 = vld [vmem:[#allocation2_spill] sm:$0xff] }
  0x6a   :  { %4398 = vmatpush3.bf16.msra.mxu1 %v4805_v30  ;;  %4385 = vmatprep.mubr.bf16.mxu1 %v3756_v63  ;;  %v3800_v42 = vcombine.low %v5749_v13, %v5761_v37  ;;  %v3801_v56 = vcombine.low %v5783_v57, %v5789_v9  ;;  %v3981_v49 = vcombine.low %v1802_v24, %v1806_v48  ;;  %v1821_v30 = vrot.slane %v5593_v25, 5  ;;  %v685_v63 = vld [vmem:[%s6818_s0 + $0x50] sm:$0xe]  ;;  %v4825_v10 = vld [vmem:[%s6817_s1 + $0xc8] sm:$0xff]   ;;  %v6844_v37 = vld [vmem:[#allocation5_spill] sm:$0xff] }
  0x6b   :  { %4524 = vmatpush3.bf16.msra.mxu0 %v4802_v19  ;;  %4399 = vmatprep.subr.bf16.mxu1 %v4807_v38  ;;  %v1814_v44 = vsel %vm5606_vm5, %v3957_v31, %v1813_v62  ;;  %v1817_v19 = vrot.slane %v5576_v52, 5  ;;  %v750_v8 = vrot.slane %v5056_v6, 5  ;;  %v754_v51 = vrot.slane %v5057_v53, 5  ;;  %v6845_v24 = vld [vmem:[#allocation6_spill] sm:$0xff]  ;;  %v4827_v48 = vld [vmem:[%s6818_s0 + $0x30] ss:$8 sps:$4 sm:$0xff]  }
  0x6c   :  { %4525 = vmatprep.subr.bf16.mxu0 %v4806_v22  ;;  %v3982_v11 = vcombine.low %v1810_v61, %v1814_v44  ;;  %v1822_v25 = vsel %vm5606_vm5, %v3959_v33, %v1821_v30  ;;  %v747_v43 = vsel %vm5606_vm5, %v3772_v35, %v746_v58  ;;  %v3776_v31 = vrot.slane %v685_v63, 9  ;;  %v687_v44 = vld [vmem:[%s6818_s0 + $0x60] sm:$0xe]  ;;  %v692_v9 = vld [vmem:[%s6818_s0 + $0x88] sm:$0xe]  ;;  %v4831_v63 = vld [vmem:[%s6817_s1 + $0xd8] sm:$0xff]  }
  0x6d   :  { %v1818_v52 = vsel %vm5606_vm5, %v3958_v2, %v1817_v19  ;;  %v751_v50 = vsel %vm5606_vm5, %v3773_v32, %v750_v8  ;;  %v762_v62 = vrot.slane %v5373_v60, 5  ;;  %v766_v23 = vrot.slane %v6843_v41, 5  ;;  %v689_v60 = vld [vmem:[%s6818_s0 + $0x70] sm:$0xe]  ;;  %v691_v57 = vld [vmem:[%s6818_s0 + $0x80] sm:$0xe] }
  0x6e   :  { %4510 = vmatmul.mubr.bf16.gmra.mrb[4].mxu0 %v3979_v55  ;;  %4400 = vmatpush3.bf16.msra.mxu1 %v4807_v38  ;;  %v4819_v38 = vld [vmem:[%s6817_s1 + $0xb8] sm:$0xff]   ;;  %v3983_v21 = vcombine.low %v1818_v52, %v1822_v25  ;;  %v3802_v13 = vcombine.low %v747_v43, %v751_v50  ;;  %v778_v14 = vrot.slane %v6844_v37, 5  ;;  %v3777_v45 = vrot.slane %v686_v40, 9  ;;  %v6846_v19 = vld [vmem:[#allocation7_spill] sm:$0xff]  ;;  %v4830_v32 = vld [vmem:[%s6817_s1 + $0x1d0] sm:$0xff]  }
  0x6f   :  { %4526 = vmatpush3.bf16.msra.mxu0 %v4806_v22  ;;  %4513 = vmatprep.mubr.bf16.mxu0 %v3980_v12  ;;  %v4821_v22 = vld [vmem:[%s6818_s0 + $0x10] ss:$8 sps:$4 sm:$0xff]   ;;  %v5058_v55 = vld [vmem:[%s6818_s0 + $0x3c] sm:$0x1]  ;;  %v4824_v12 = vld [vmem:[%s6817_s1 + $0x1c0] sm:$0xff]   ;;  %v3780_v27 = vrot.slane %v689_v60, 9  ;;  %v763_v61 = vsel %vm5606_vm5, %v3776_v31, %v762_v62 }
  0x70   :  { %4527 = vmatprep.subr.bf16.mxu0 %v4808_v17  ;;  %4401 = vmatprep.subr.bf16.mxu1 %v4811_v18  ;;  %v758_v5 = vrot.slane %v5058_v55, 5  ;;  %v3782_v2 = vrot.slane %v691_v57, 9  ;;  %v786_v33 = vrot.slane %v6846_v19, 5  ;;  %v767_v30 = vsel %vm5606_vm5, %v3777_v45, %v766_v23  ;;  %v4833_v53 = vld [vmem:[%s6818_s0 + $0x60] ss:$8 sps:$4 sm:$0xff]   ;;  %v4832_v62 = vld [vmem:[%s6817_s1 + $0x1d8] sm:$0xff]  }
  0x71   :  { %4386 = vmatmul.mubr.bf16.gmra.mrb[8].mxu1 %v3757_v0  ;;  %v690_v0 = vld [vmem:[%s6818_s0 + $0x78] sm:$0xe]  ;;  %v3783_v26 = vrot.slane %v692_v9, 9  ;;  %v3778_v25 = vrot.slane %v687_v44, 9  ;;  %v3804_v6 = vcombine.low %v763_v61, %v767_v30  ;;  %v4044_v45 = vld [vmem:[%s6818_s0 + $0x20] sm:$0xf] }
  0x72   :  { %4402 = vmatpush3.bf16.msra.mxu1 %v4811_v18  ;;  %4389 = vmatprep.mubr.bf16.mxu1 %v3758_v4  ;;  %v3775_v18 = vrot.slane %v684_v46, 9  ;;  %v4823_v4 = vld [vmem:[%s6818_s0 + $0x20] ss:$8 sps:$4 sm:$0xff]   ;;  %v5932_v35 = vsel %vm5606_vm5, %v3782_v2, %v786_v33  ;;  %v4042_v55 = vld [vmem:[%s6818_s0 + $0x18] sm:$0xf] }
  0x73   :  { %4528 = vmatpush3.bf16.msra.mxu0 %v4808_v17  ;;  %4403 = vmatprep.subr.bf16.mxu1 %v4813_v47  ;;  %v3774_v17 = vrot.slane %v683_v29, 9  ;;  %v6849_v29 = vld [vmem:[#allocation4_spill] sm:$0xff]  ;;  %v2323_v40 = vshrl.u32 %v4042_v55, 16  ;;  %v2326_v31 = vshll.u32 %v4042_v55, 16  ;;  %v4839_v33 = vld [vmem:[%s6818_s0 + $0x80] ss:$8 sps:$4 sm:$0xff]  }
  0x74   :  { %4529 = vmatprep.subr.bf16.mxu0 %v4812_v54  ;;  %v774_v46 = vrot.slane %v6849_v29, 5 }
  0x75   :  { %v755_v7 = vsel %vm5606_vm5, %v3774_v17, %v754_v51  ;;  %v2325_v23 = vrot.slane %v2323_v40, 4  ;;  %v2328_v37 = vrot.slane %v2326_v31, 5  ;;  %v4842_v40 = vld [vmem:[%s6817_s1 + $0x1f0] sm:$0xff]   ;;  %v4843_v31 = vld [vmem:[%s6817_s1 + $0xf8] sm:$0xff]  }
  0x76   :  { %4514 = vmatmul.mubr.bf16.gmra.mrb[8].mxu0 %v3981_v49  ;;  %4404 = vmatpush3.bf16.msra.mxu1 %v4813_v47  ;;  %v782_v47 = vrot.slane %v6845_v24, 5  ;;  %v4828_v49 = vld [vmem:[%s6817_s1 + $0xd0] sm:$0xff]   ;;  %v5989_v24 = vld [vmem:[%s6818_s0 + $0x24] sm:$0x1] }
  0x77   :  { %4530 = vmatpush3.bf16.msra.mxu0 %v4812_v54  ;;  %4517 = vmatprep.mubr.bf16.mxu0 %v3982_v11  ;;  %v759_v54 = vsel %vm5606_vm5, %v3775_v18, %v758_v5  ;;  %v688_v11 = vld [vmem:[%s6818_s0 + $0x68] sm:$0xe]  ;;  %v5969_v5 = vld [vmem:[%s6818_s0 + $0x1c] sm:$0x1]  ;;  %v2346_v61 = vshll.u32 %v5989_v24, 16 }
  0x78   :  { %4531 = vmatprep.subr.bf16.mxu0 %v4814_v59  ;;  %4405 = vmatprep.subr.bf16.mxu1 %v4817_v3  ;;  %v3803_v34 = vcombine.low %v755_v7, %v759_v54  ;;  %v3779_v8 = vrot.slane %v688_v11, 9  ;;  %v2337_v7 = vshrl.u32 %v4044_v45, 16  ;;  %v2340_v54 = vshll.u32 %v4044_v45, 16  ;;  %v4054_v45 = vld [vmem:[%s6818_s0 + $0x48] sm:$0xf] }
  0x79   :  { %4390 = vmatmul.mubr.bf16.gmra.mrb[12].mxu1 %v3759_v28  ;;  %v6847_v28 = vld [vmem:[#allocation8_spill] sm:$0xff] }
  0x7a   :  { %4406 = vmatpush3.bf16.msra.mxu1 %v4817_v3  ;;  %4409 = vmatprep.mubr.bf16.mxu1 %v3800_v42  ;;  %v3781_v42 = vrot.slane %v690_v0, 9  ;;  %v790_v52 = vrot.slane %v6847_v28, 5  ;;  %v775_v17 = vsel %vm5606_vm5, %v3779_v8, %v774_v46  ;;  %v2339_v2 = vrot.slane %v2337_v7, 4  ;;  %v4845_v8 = vld [vmem:[%s6818_s0 + $0x8] ss:$8 sps:$4 sm:$0xff]  }
  0x7b   :  { %4532 = vmatpush3.bf16.msra.mxu0 %v4814_v59  ;;  %4407 = vmatprep.subr.bf16.mxu1 %v4819_v38  ;;  %v5914_v59 = vsel %vm5606_vm5, %v3780_v27, %v778_v14  ;;  %v2332_v14 = vshll.u32 %v5969_v5, 16  ;;  %v4836_v27 = vld [vmem:[%s6817_s1 + $0x1e0] sm:$0xff]   ;;  %v2342_v19 = vrot.slane %v2340_v54, 5  ;;  %v6046_v46 = vld [vmem:[%s6818_s0 + $0x3c] sm:$0x1]  ;;  %v2407_v7 = vshrl.u32 %v4054_v45, 16 }
  0x7c   :  { %4533 = vmatprep.subr.bf16.mxu0 %v4818_v1  ;;  %v5918_v3 = vsel %vm5606_vm5, %v3781_v42, %v782_v47  ;;  %v5936_v58 = vsel %vm5606_vm5, %v3783_v26, %v790_v52  ;;  %v4046_v47 = vld [vmem:[%s6818_s0 + $0x28] sm:$0xf]  ;;  %v2410_v54 = vshll.u32 %v4054_v45, 16 }
  0x7d   :  { %v3806_v16 = vcombine.low %v5914_v59, %v5918_v3  ;;  %v4837_v42 = vld [vmem:[%s6817_s1 + $0xe8] sm:$0xff]   ;;  %v2351_v57 = vshrl.u32 %v4046_v47, 16  ;;  %v2354_v9 = vshll.u32 %v4046_v47, 16  ;;  %v2334_v11 = vrot.slane %v2332_v14, 5  ;;  %v4048_v59 = vld [vmem:[%s6818_s0 + $0x30] sm:$0xf] }
  0x7e   :  { %4518 = vmatmul.mubr.bf16.gmra.mrb[12].mxu0 %v3983_v21  ;;  %4408 = vmatpush3.bf16.msra.mxu1 %v4819_v38  ;;  %v4829_v21 = vld [vmem:[%s6818_s0 + $0x40] ss:$8 sps:$4 sm:$0xff]   ;;  %v6035_v3 = vld [vmem:[%s6818_s0 + $0x34] sm:$0x1]  ;;  %v6069_v14 = vld [vmem:[%s6818_s0 + $0x44] sm:$0x1] }
  0x7f   :  { %4534 = vmatpush3.bf16.msra.mxu0 %v4818_v1  ;;  %4537 = vmatprep.mubr.bf16.mxu0 %v4821_v22  ;;  %v6848_v1 = vld [vmem:[#allocation3_spill] sm:$0xff]  ;;  %v3807_v22 = vcombine.low %v5932_v35, %v5936_v58  ;;  %v2353_v26 = vrot.slane %v2351_v57, 4  ;;  %v2356_v28 = vrot.slane %v2354_v9, 5  ;;  %v4844_v35 = vld [vmem:[%s6817_s1 + $0x1f8] sm:$0xff]  }
  0x80   :  { %4535 = vmatprep.subr.bf16.mxu0 %v4820_v20  ;;  %4425 = vmatprep.subr.bf16.mxu1 %v4822_v36  ;;  %v770_v38 = vrot.slane %v6848_v1, 5  ;;  %v4838_v52 = vld [vmem:[%s6817_s1 + $0x1e8] sm:$0xff]   ;;  %v2343_v1 = vor.u32 %v2342_v19, %v2339_v2  ;;  %v2409_v2 = vrot.slane %v2407_v7, 4  ;;  %v2412_v19 = vrot.slane %v2410_v54, 5 }
  0x81   :  { %4410 = vmatmul.mubr.bf16.vlgmr.msra.gmra.mrb[0].mxu1 %v3801_v56  ;;  %v4826_v56 = vld [vmem:[%s6817_s1 + $0x1c8] sm:$0xff]  }
  0x82   :  { %4426 = vmatpush3.bf16.msra.mxu1 %v4822_v36  ;;  %4413 = vmatprep.mubr.bf16.mxu1 %v3802_v13  ;;  %v5956_v36 = vld [vmem:[%s6818_s0 + $0x14] sm:$0x1]  ;;  %v771_v51 = vsel %vm5606_vm5, %v3778_v25, %v770_v38  ;;  %v6022_v38 = vrot.slane %v2346_v61, 5  ;;  %v2344_v29 = vrot.slane %v2343_v1, 4  ;;  %v4846_v61 = vld [vmem:[%s6818_s0 + $0x18] ss:$8 sps:$4 sm:$0xff]  }
  0x83   :  { %4536 = vmatpush3.bf16.msra.mxu0 %v4820_v20  ;;  %4427 = vmatprep.subr.bf16.mxu1 %v4825_v10  ;;  %v4040_v20 = vld [vmem:[%s6818_s0 + $0x10] sm:$0xf]  ;;  %v2318_v18 = vshll.u32 %v5956_v36, 16  ;;  %v3805_v60 = vcombine.low %v771_v51, %v775_v17  ;;  %v6115_v1 = vld [vmem:[%s6818_s0 + $0x64] sm:$0x1] }
  0x84   :  { %4553 = vmatprep.subr.bf16.mxu0 %v4824_v12  ;;  %v2309_v43 = vshrl.u32 %v4040_v20, 16  ;;  %v2312_v50 = vshll.u32 %v4040_v20, 16  ;;  %v4840_v25 = vld [vmem:[%s6817_s1 + $0xf0] sm:$0xff]   ;;  %v2374_v20 = vshll.u32 %v6035_v3, 16 }
  0x85   :  { %v5980_v41 = vrot.slane %v2318_v18, 5  ;;  %v2388_v18 = vshll.u32 %v6046_v46, 16 }
  0x86   :  { %4538 = vmatmul.mubr.bf16.vlgmr.msra.gmra.mrb[0].mxu0 %v4823_v4  ;;  %4428 = vmatpush3.bf16.msra.mxu1 %v4825_v10  ;;  %v4834_v10 = vld [vmem:[%s6817_s1 + $0xe0] sm:$0xff]   ;;  %v2314_v13 = vrot.slane %v2312_v50, 5  ;;  %v5997_v4 = vld [vmem:[%s6818_s0 + $0x2c] sm:$0x1] }
  0x87   :  { %4554 = vmatpush3.bf16.msra.mxu0 %v4824_v12  ;;  %4541 = vmatprep.mubr.bf16.mxu0 %v4827_v48  ;;  %v2311_v12 = vrot.slane %v2309_v43, 4  ;;  %v2329_v48 = vor.u32 %v2328_v37, %v2325_v23  ;;  %v4052_v37 = vld [vmem:[%s6818_s0 + $0x40] sm:$0xf]  ;;  %v2390_v58 = vrot.slane %v2388_v18, 5  ;;  %v2804_v39 = vrot.slane %v5997_v4, 5 }
  0x88   :  { %4555 = vmatprep.subr.bf16.mxu0 %v4826_v56  ;;  %4429 = vmatprep.subr.bf16.mxu1 %v4828_v49 }
  0x89   :  { %4414 = vmatmul.mubr.bf16.gmra.mrb[4].mxu1 %v3803_v34  ;;  %v2315_v0 = vor.u32 %v2314_v13, %v2311_v12  ;;  %v2330_v30 = vrot.slane %v2329_v48, 4  ;;  %v2396_v48 = vshll.u32 %v4052_v37, 16 }
  0x8a   :  { %4430 = vmatpush3.bf16.msra.mxu1 %v4828_v49  ;;  %4417 = vmatprep.mubr.bf16.mxu1 %v3804_v6  ;;  %v4835_v49 = vld [vmem:[%s6818_s0 + $0x70] ss:$8 sps:$4 sm:$0xff]   ;;  %v2357_v6 = vor.u32 %v2356_v28, %v2353_v26 }
  0x8b   :  { %4556 = vmatpush3.bf16.msra.mxu0 %v4826_v56  ;;  %4431 = vmatprep.subr.bf16.mxu1 %v4831_v63  ;;  %v2316_v44 = vrot.slane %v2315_v0, 4  ;;  %v2360_v56 = vshll.u32 %v5997_v4, 16  ;;  %v4849_v28 = vld [vmem:[%s6818_s0 + $0x28] ss:$8 sps:$4 sm:$0xff]   ;;  %v2808_v4 = vrot.slane %v6035_v3, 5 }
  0x8c   :  { %4557 = vmatprep.subr.bf16.mxu0 %v4830_v32  ;;  %v2358_v51 = vrot.slane %v2357_v6, 4  ;;  %v4058_v6 = vld [vmem:[%s6818_s0 + $0x68] sm:$0xf] }
  0x8d   :  { %v6024_v34 = vrot.slane %v2360_v56, 5  ;;  %v2398_v56 = vrot.slane %v2396_v48, 5 }
  0x8e   :  { %4542 = vmatmul.mubr.bf16.gmra.mrb[4].mxu0 %v4829_v21  ;;  %4432 = vmatpush3.bf16.msra.mxu1 %v4831_v63  ;;  %v2365_v63 = vshrl.u32 %v4048_v59, 16  ;;  %v2368_v21 = vshll.u32 %v4048_v59, 16  ;;  %v6130_v59 = vld [vmem:[%s6818_s0 + $0x6c] sm:$0x1] }
  0x8f   :  { %4558 = vmatpush3.bf16.msra.mxu0 %v4830_v32  ;;  %4545 = vmatprep.mubr.bf16.mxu0 %v4833_v53  ;;  %v2321_v32 = vsel %vm5164_vm2, %v2316_v44, %v5980_v41  ;;  %v2335_v53 = vsel %vm5164_vm2, %v2330_v30, %v2334_v11  ;;  %v2349_v41 = vsel %vm5164_vm2, %v2344_v29, %v6022_v38  ;;  %v6104_v30 = vld [vmem:[%s6817_s1 + $0x208] sm:$0xff]  }
  0x90   :  { %4559 = vmatprep.subr.bf16.mxu0 %v4832_v62  ;;  %4433 = vmatprep.subr.bf16.mxu1 %v4834_v10  ;;  %v2367_v50 = vrot.slane %v2365_v63, 4  ;;  %v2370_v17 = vrot.slane %v2368_v21, 5  ;;  %v4088_v13 = vcombine.low %v2321_v32, %v2335_v53  ;;  %v2363_v0 = vsel %vm5164_vm2, %v2358_v51, %v6024_v34 }
  0x91   :  { %4418 = vmatmul.mubr.bf16.gmra.mrb[8].mxu1 %v3805_v60  ;;  %v4841_v60 = vld [vmem:[%s6818_s0 + $0x90] ss:$8 sps:$4 sm:$0xff]   ;;  %v4089_v26 = vcombine.low %v2349_v41, %v2363_v0  ;;  %v2430_v63 = vshll.u32 %v6115_v1, 16  ;;  %v2435_v21 = vshrl.u32 %v4058_v6, 16  ;;  %v2438_v51 = vshll.u32 %v4058_v6, 16 }
  0x92   :  { %4434 = vmatpush3.bf16.msra.mxu1 %v4834_v10  ;;  %4421 = vmatprep.mubr.bf16.mxu1 %v3806_v16  ;;  %v4050_v16 = vld [vmem:[%s6818_s0 + $0x38] sm:$0xf]  ;;  %v2371_v23 = vor.u32 %v2370_v17, %v2367_v50  ;;  %v6139_v50 = vld [vmem:[%s6817_s1 + $0x210] sm:$0xff]   ;;  %v6166_v0 = vld [vmem:[%s6818_s0 + $0x7c] sm:$0x1] }
  0x93   :  { %4560 = vmatpush3.bf16.msra.mxu0 %v4832_v62  ;;  %4435 = vmatprep.subr.bf16.mxu1 %v4837_v42  ;;  %v2379_v55 = vshrl.u32 %v4050_v16, 16  ;;  %v2382_v43 = vshll.u32 %v4050_v16, 16  ;;  %v6058_v62 = vrot.slane %v2374_v20, 5  ;;  %v2432_v18 = vrot.slane %v2430_v63, 5  ;;  %v6151_v41 = vld [vmem:[%s6818_s0 + $0x74] sm:$0x1] }
  0x94   :  { %4561 = vmatprep.subr.bf16.mxu0 %v4836_v27  ;;  %v2372_v44 = vrot.slane %v2371_v23, 4  ;;  %v6193_v6 = vld [vmem:[%s6818_s0 + $0x84] sm:$0x1] }
  0x95   :  { %v2381_v10 = vrot.slane %v2379_v55, 4  ;;  %v2384_v12 = vrot.slane %v2382_v43, 5  ;;  %v2444_v55 = vshll.u32 %v6130_v59, 16 }
  0x96   :  { %4546 = vmatmul.mubr.bf16.gmra.mrb[8].mxu0 %v4835_v49  ;;  %4436 = vmatpush3.bf16.msra.mxu1 %v4837_v42  ;;  %v2393_v42 = vshrl.u32 %v4052_v37, 16  ;;  %v6098_v49 = vld [vmem:[%s6817_s1 + $0x200] sm:$0xff]   ;;  %v2377_v38 = vsel %vm5164_vm2, %v2372_v44, %v6058_v62  ;;  %v2472_v44 = vshll.u32 %v6166_v0, 16 }
  0x97   :  { %4562 = vmatpush3.bf16.msra.mxu0 %v4836_v27  ;;  %4549 = vmatprep.mubr.bf16.mxu0 %v4839_v33  ;;  %v2385_v47 = vor.u32 %v2384_v12, %v2381_v10  ;;  %v6086_v27 = vld [vmem:[%s6818_s0 + $0x4c] sm:$0x1]  ;;  %v4850_v62 = vld [vmem:[%s6818_s0 + $0x38] ss:$8 sps:$4 sm:$0xff]   ;;  %v2440_v10 = vrot.slane %v2438_v51, 5  ;;  %v2446_v12 = vrot.slane %v2444_v55, 5 }
  0x98   :  { %4563 = vmatprep.subr.bf16.mxu0 %v4838_v52  ;;  %4437 = vmatprep.subr.bf16.mxu1 %v4840_v25  ;;  %v2395_v9 = vrot.slane %v2393_v42, 4  ;;  %v2416_v33 = vshll.u32 %v6086_v27, 16  ;;  %v4853_v37 = vld [vmem:[%s6818_s0 + $0x58] ss:$8 sps:$4 sm:$0xff]  }
  0x99   :  { %4422 = vmatmul.mubr.bf16.gmra.mrb[12].mxu1 %v3807_v22  ;;  %v2402_v22 = vshll.u32 %v6069_v14, 16  ;;  %v2386_v57 = vrot.slane %v2385_v47, 4  ;;  %v6215_v51 = vld [vmem:[%s6817_s1 + $0x220] sm:$0xff]  }
  0x9a   :  { %4438 = vmatpush3.bf16.msra.mxu1 %v4840_v25  ;;  %4441 = vmatprep.mubr.bf16.mxu1 %v4845_v8  ;;  %v2399_v11 = vor.u32 %v2398_v56, %v2395_v9  ;;  %v4056_v25 = vld [vmem:[%s6818_s0 + $0x60] sm:$0xf]  ;;  %v2418_v20 = vrot.slane %v2416_v33, 5  ;;  %v6177_v9 = vld [vmem:[%s6817_s1 + $0x218] sm:$0xff]  }
  0x9b   :  { %4564 = vmatpush3.bf16.msra.mxu0 %v4838_v52  ;;  %4439 = vmatprep.subr.bf16.mxu1 %v4843_v31  ;;  %v2413_v52 = vor.u32 %v2412_v19, %v2409_v2  ;;  %v2391_v34 = vsel %vm5164_vm2, %v2386_v57, %v2390_v58  ;;  %v6122_v32 = vrot.slane %v2402_v22, 5  ;;  %v2421_v16 = vshrl.u32 %v4056_v25, 16 }
  0x9c   :  { %4565 = vmatprep.subr.bf16.mxu0 %v4842_v40  ;;  %v2400_v8 = vrot.slane %v2399_v11, 4  ;;  %v2424_v29 = vshll.u32 %v4056_v25, 16  ;;  %v2832_v25 = vrot.slane %v6151_v41, 5 }
  0x9d   :  { %v2423_v53 = vrot.slane %v2421_v16, 4  ;;  %v2414_v43 = vrot.slane %v2413_v52, 4  ;;  %v2474_v52 = vrot.slane %v2472_v44, 5  ;;  %v2792_v16 = vrot.slane %v5956_v36, 5 }
  0x9e   :  { %4550 = vmatmul.mubr.bf16.gmra.mrb[12].mxu0 %v4841_v60  ;;  %4440 = vmatpush3.bf16.msra.mxu1 %v4843_v31  ;;  %v2426_v17 = vrot.slane %v2424_v29, 5  ;;  %v4090_v31 = vcombine.low %v2377_v38, %v2391_v34  ;;  %v2405_v23 = vsel %vm5164_vm2, %v2400_v8, %v6122_v32  ;;  %v4062_v60 = vld [vmem:[%s6818_s0 + $0x78] sm:$0xf]  ;;  %v4064_v32 = vld [vmem:[%s6818_s0 + $0x80] sm:$0xf] }
  0x9f   :  { %4566 = vmatpush3.bf16.msra.mxu0 %v4842_v40  ;;  %4569 = vmatprep.mubr.bf16.mxu0 %v4088_v13  ;;  %v2437_v40 = vrot.slane %v2435_v21, 4  ;;  %v4060_v13 = vld [vmem:[%s6818_s0 + $0x70] sm:$0xf]  ;;  %v2463_v58 = vshrl.u32 %v4062_v60, 16  ;;  %v2466_v22 = vshll.u32 %v4062_v60, 16  ;;  %v2419_v57 = vsel %vm5164_vm2, %v2414_v43, %v2418_v20 }
  0xa0   :  { %4567 = vmatprep.subr.bf16.mxu0 %v4844_v35  ;;  %4617 = vmatprep.subr.bf16.mxu1 %v6098_v49  ;;  %v2427_v45 = vor.u32 %v2426_v17, %v2423_v53  ;;  %v2449_v47 = vshrl.u32 %v4060_v13, 16  ;;  %v2452_v42 = vshll.u32 %v4060_v13, 16  ;;  %v4091_v38 = vcombine.low %v2405_v23, %v2419_v57  ;;  %v4854_v29 = vld [vmem:[%s6818_s0 + $0x68] ss:$8 sps:$4 sm:$0xff]   ;;  %v6207_v20 = vld [vmem:[%s6818_s0 + $0x8c] sm:$0x1] }
  0xa1   :  { %4442 = vmatmul.mubr.bf16.vlgmr.msra.gmra.mrb[0].mxu1 %v4846_v61  ;;  %v2441_v48 = vor.u32 %v2440_v10, %v2437_v40  ;;  %v2465_v2 = vrot.slane %v2463_v58, 4  ;;  %v2468_v19 = vrot.slane %v2466_v22, 5  ;;  %v4066_v21 = vld [vmem:[%s6818_s0 + $0x88] sm:$0xf]  ;;  %v2477_v53 = vshrl.u32 %v4064_v32, 16 }
  0xa2   :  { %4625 = vmatpush3.bf16.msra.mxu1 %v6098_v49  ;;  %4445 = vmatprep.mubr.bf16.mxu1 %v4849_v28  ;;  %v2428_v7 = vrot.slane %v2427_v45, 4  ;;  %v2451_v54 = vrot.slane %v2449_v47, 4  ;;  %v2454_v61 = vrot.slane %v2452_v42, 5  ;;  %v2480_v55 = vshll.u32 %v4064_v32, 16  ;;  %v6223_v40 = vld [vmem:[%s6817_s1 + $0x228] sm:$0xff]  }
  0xa3   :  { %4568 = vmatpush3.bf16.msra.mxu0 %v4844_v35  ;;  %4618 = vmatprep.subr.bf16.mxu1 %v6104_v30  ;;  %v2458_v35 = vshll.u32 %v6151_v41, 16  ;;  %v2442_v56 = vrot.slane %v2441_v48, 4  ;;  %v2469_v28 = vor.u32 %v2468_v19, %v2465_v2  ;;  %v2486_v43 = vshll.u32 %v6193_v6, 16  ;;  %v4068_v42 = vld [vmem:[%s6818_s0 + $0x90] sm:$0xf] }
  0xa4   :  { %4585 = vmatprep.subr.bf16.mxu0 %v6098_v49  ;;  %v2433_v33 = vsel %vm5164_vm2, %v2428_v7, %v2432_v18  ;;  %v2491_v17 = vshrl.u32 %v4066_v21, 16  ;;  %v2500_v10 = vshll.u32 %v6207_v20, 16  ;;  %v2482_v13 = vrot.slane %v2480_v55, 5  ;;  %v6238_v48 = vld [vmem:[%s6818_s0 + $0x94] sm:$0x1] }
  0xa5   :  { %v2460_v11 = vrot.slane %v2458_v35, 5  ;;  %v2470_v63 = vrot.slane %v2469_v28, 4  ;;  %v2488_v23 = vrot.slane %v2486_v43, 5  ;;  %v2796_v45 = vrot.slane %v5969_v5, 5  ;;  %v6248_v22 = vld [vmem:[%s6818_s0 + $0x9c] sm:$0x1] }
  0xa6   :  { %4570 = vmatmul.mubr.bf16.vlgmr.msra.gmra.mrb[0].mxu0 %v4089_v26  ;;  %4626 = vmatpush3.bf16.msra.mxu1 %v6104_v30  ;;  %v2447_v26 = vsel %vm5164_vm2, %v2442_v56, %v2446_v12  ;;  %v4857_v12 = vld [vmem:[%s6818_s0 + $0x78] ss:$8 sps:$4 sm:$0xff]   ;;  %v2502_v47 = vrot.slane %v2500_v10, 5  ;;  %v2505_v7 = vshrl.u32 %v4068_v42, 16  ;;  %v2514_v44 = vshll.u32 %v6238_v48, 16  ;;  %v6254_v2 = vld [vmem:[%s6817_s1 + $0x230] sm:$0xff]  }
  0xa7   :  { %4586 = vmatpush3.bf16.msra.mxu0 %v6098_v49  ;;  %4573 = vmatprep.mubr.bf16.mxu0 %v4090_v31  ;;  %v2455_v49 = vor.u32 %v2454_v61, %v2451_v54  ;;  %v4092_v8 = vcombine.low %v2433_v33, %v2447_v26  ;;  %v2475_v18 = vsel %vm5164_vm2, %v2470_v63, %v2474_v52  ;;  %v2479_v31 = vrot.slane %v2477_v53, 4  ;;  %v4858_v28 = vld [vmem:[%s6818_s0 + $0x88] ss:$8 sps:$4 sm:$0xff]   ;;  %v4112_v43 = vld [vmem:[%s6818_s0 + $0x60] sm:$0xe] }
  0xa8   :  { %4587 = vmatprep.subr.bf16.mxu0 %v6104_v30  ;;  %4619 = vmatprep.subr.bf16.mxu1 %v6139_v50  ;;  %v2508_v54 = vshll.u32 %v4068_v42, 16  ;;  %v2507_v33 = vrot.slane %v2505_v7, 4  ;;  %v2516_v52 = vrot.slane %v2514_v44, 5  ;;  %v2824_v63 = vrot.slane %v6115_v1, 5  ;;  %v4113_v10 = vld [vmem:[%s6818_s0 + $0x68] sm:$0xe] }
  0xa9   :  { %4446 = vmatmul.mubr.bf16.gmra.mrb[4].mxu1 %v4850_v62  ;;  %v2456_v34 = vrot.slane %v2455_v49, 4  ;;  %v2494_v62 = vshll.u32 %v4066_v21, 16  ;;  %v2483_v58 = vor.u32 %v2482_v13, %v2479_v31  ;;  %v6283_v31 = vld [vmem:[%s6817_s1 + $0x238] sm:$0xff]   ;;  %v4114_v42 = vld [vmem:[%s6818_s0 + $0x70] sm:$0xe] }
  0xaa   :  { %4627 = vmatpush3.bf16.msra.mxu1 %v6139_v50  ;;  %4449 = vmatprep.mubr.bf16.mxu1 %v4853_v37  ;;  %v2493_v37 = vrot.slane %v2491_v17, 4  ;;  %v2510_v49 = vrot.slane %v2508_v54, 5  ;;  %v2828_v17 = vrot.slane %v6130_v59, 5  ;;  %v4108_v7 = vld [vmem:[%s6818_s0 + $0x30] sm:$0xe] }
  0xab   :  { %4588 = vmatpush3.bf16.msra.mxu0 %v6104_v30  ;;  %4620 = vmatprep.subr.bf16.mxu1 %v6177_v9  ;;  %v2461_v30 = vsel %vm5164_vm2, %v2456_v34, %v2460_v11  ;;  %v2496_v60 = vrot.slane %v2494_v62, 5  ;;  %v2484_v19 = vrot.slane %v2483_v58, 4  ;;  %v2528_v11 = vshll.u32 %v6248_v22, 16  ;;  %v4109_v54 = vld [vmem:[%s6818_s0 + $0x38] sm:$0xe] }
  0xac   :  { %4589 = vmatprep.subr.bf16.mxu0 %v6139_v50  ;;  %v4093_v35 = vcombine.low %v2461_v30, %v2475_v18  ;;  %v4105_v30 = vld [vmem:[%s6818_s0 + $0x18] sm:$0xe]  ;;  %v2836_v58 = vrot.slane %v6166_v0, 5 }
  0xad   :  { %v2497_v61 = vor.u32 %v2496_v60, %v2493_v37  ;;  %v2489_v32 = vsel %vm5164_vm2, %v2484_v19, %v2488_v23  ;;  %v4121_v62 = vrot.slane %v4105_v30, 9  ;;  %v4129_v23 = vrot.slane %v4113_v10, 9  ;;  %v4106_v37 = vld [vmem:[%s6818_s0 + $0x20] sm:$0xe]  ;;  %v4107_v60 = vld [vmem:[%s6818_s0 + $0x28] sm:$0xe] }
  0xae   :  { %4574 = vmatmul.mubr.bf16.gmra.mrb[4].mxu0 %v4091_v38  ;;  %4628 = vmatpush3.bf16.msra.mxu1 %v6177_v9  ;;  %v4123_v44 = vrot.slane %v4107_v60, 9  ;;  %v4119_v41 = vld [vmem:[%s6818_s0 + $0x98] sm:$0xe] }
  0xaf   :  { %4590 = vmatpush3.bf16.msra.mxu0 %v6139_v50  ;;  %4577 = vmatprep.mubr.bf16.mxu0 %v4092_v8  ;;  %v4070_v50 = vld [vmem:[%s6818_s0 + $0x98] sm:$0xf]  ;;  %v2498_v26 = vrot.slane %v2497_v61, 4  ;;  %v2511_v8 = vor.u32 %v2510_v49, %v2507_v33  ;;  %v2797_v36 = vsel %vm5606_vm5, %v4121_v62, %v2796_v45  ;;  %v2829_v45 = vsel %vm5606_vm5, %v4129_v23, %v2828_v17 }
  0xb0   :  { %4591 = vmatprep.subr.bf16.mxu0 %v6177_v9  ;;  %4621 = vmatprep.subr.bf16.mxu1 %v6215_v51  ;;  %v2519_v57 = vshrl.u32 %v4070_v50, 16  ;;  %v2522_v56 = vshll.u32 %v4070_v50, 16  ;;  %v2800_v50 = vrot.slane %v5989_v24, 5  ;;  %v4124_v33 = vrot.slane %v4108_v7, 9 }
  0xb1   :  { %4450 = vmatmul.mubr.bf16.gmra.mrb[8].mxu1 %v4854_v29  ;;  %v2530_v29 = vrot.slane %v2528_v11, 5  ;;  %v2503_v21 = vsel %vm5164_vm2, %v2498_v26, %v2502_v47  ;;  %v2512_v1 = vrot.slane %v2511_v8, 4  ;;  %v4122_v47 = vrot.slane %v4106_v37, 9 }
  0xb2   :  { %4629 = vmatpush3.bf16.msra.mxu1 %v6215_v51  ;;  %4453 = vmatprep.mubr.bf16.mxu1 %v4857_v12  ;;  %v2521_v38 = vrot.slane %v2519_v57, 4  ;;  %v2524_v34 = vrot.slane %v2522_v56, 5  ;;  %v4094_v18 = vcombine.low %v2489_v32, %v2503_v21  ;;  %v4128_v12 = vrot.slane %v4112_v43, 9  ;;  %v4116_v57 = vld [vmem:[%s6818_s0 + $0x80] sm:$0xe] }
  0xb3   :  { %4592 = vmatpush3.bf16.msra.mxu0 %v6177_v9  ;;  %4622 = vmatprep.subr.bf16.mxu1 %v6223_v40  ;;  %v4104_v9 = vld [vmem:[%s6818_s0 + $0x10] sm:$0xe]  ;;  %v4130_v56 = vrot.slane %v4114_v42, 9  ;;  %v2801_v49 = vsel %vm5606_vm5, %v4122_v47, %v2800_v50  ;;  %v4125_v11 = vrot.slane %v4109_v54, 9  ;;  %v2812_v26 = vrot.slane %v6046_v46, 5 }
  0xb4   :  { %4593 = vmatprep.subr.bf16.mxu0 %v6215_v51  ;;  %v2525_v53 = vor.u32 %v2524_v34, %v2521_v38  ;;  %v4120_v55 = vrot.slane %v4104_v9, 9  ;;  %v4132_v34 = vrot.slane %v4116_v57, 9  ;;  %v2840_v46 = vrot.slane %v6193_v6, 5  ;;  %v4118_v32 = vld [vmem:[%s6818_s0 + $0x90] sm:$0xe] }
  0xb5   :  { %v2813_v8 = vsel %vm5606_vm5, %v4125_v11, %v2812_v26  ;;  %v2844_v6 = vrot.slane %v6207_v20, 5  ;;  %v4110_v9 = vld [vmem:[%s6818_s0 + $0x40] sm:$0xe]  ;;  %v4111_v21 = vld [vmem:[%s6818_s0 + $0x48] sm:$0xe]  ;;  %v4134_v30 = vrot.slane %v4118_v32, 9 }
  0xb6   :  { %4578 = vmatmul.mubr.bf16.gmra.mrb[8].mxu0 %v4093_v35  ;;  %4630 = vmatpush3.bf16.msra.mxu1 %v6223_v40  ;;  %v2526_v13 = vrot.slane %v2525_v53, 4  ;;  %v2793_v59 = vsel %vm5606_vm5, %v4120_v55, %v2792_v16  ;;  %v2825_v16 = vsel %vm5606_vm5, %v4128_v12, %v2824_v63  ;;  %v4115_v35 = vld [vmem:[%s6818_s0 + $0x78] sm:$0xe]  ;;  %v2848_v20 = vrot.slane %v6238_v48, 5 }
  0xb7   :  { %4594 = vmatpush3.bf16.msra.mxu0 %v6215_v51  ;;  %4623 = vmatprep.subr.bf16.mxu1 %v6254_v2  ;;  %v2517_v51 = vsel %vm5164_vm2, %v2512_v1, %v2516_v52  ;;  %v4156_v0 = vcombine.low %v2825_v16, %v2829_v45  ;;  %v4152_v24 = vcombine.low %v2793_v59, %v2797_v36  ;;  %v4131_v19 = vrot.slane %v4115_v35, 9 }
  0xb8   :  { %4595 = vmatprep.subr.bf16.mxu0 %v6223_v40  ;;  %4581 = vmatprep.mubr.bf16.mxu0 %v4094_v18  ;;  %v2531_v5 = vsel %vm5164_vm2, %v2526_v13, %v2530_v29  ;;  %v2833_v52 = vsel %vm5606_vm5, %v4130_v56, %v2832_v25  ;;  %v2809_v25 = vsel %vm5606_vm5, %v4124_v33, %v2808_v4  ;;  %v4135_v55 = vrot.slane %v4119_v41, 9 }
  0xb9   :  { %4454 = vmatmul.mubr.bf16.gmra.mrb[12].mxu1 %v4858_v28  ;;  %v4095_v61 = vcombine.low %v2517_v51, %v2531_v5  ;;  %v2805_v28 = vsel %vm5606_vm5, %v4123_v44, %v2804_v39  ;;  %v2837_v38 = vsel %vm5606_vm5, %v4131_v19, %v2836_v58  ;;  %v4154_v43 = vcombine.low %v2809_v25, %v2813_v8 }
  0xba   :  { %4631 = vmatpush3.bf16.msra.mxu1 %v6254_v2  ;;  %4609 = vmatprep.mubr.bf16.mxu1 %v4156_v0  ;;  %v4157_v3 = vcombine.low %v2833_v52, %v2837_v38  ;;  %v4153_v63 = vcombine.low %v2801_v49, %v2805_v28  ;;  %v4126_v18 = vrot.slane %v4110_v9, 9  ;;  %v2852_v1 = vrot.slane %v6248_v22, 5  ;;  %v6399_v52 = vld [vmem:[%s6819_s2] ss:$0 sm:$0xff] }
  0xbb   :  { %4596 = vmatpush3.bf16.msra.mxu0 %v6223_v40  ;;  %4624 = vmatprep.subr.bf16.mxu1 %v6283_v31  ;;  %v4117_v40 = vld [vmem:[%s6818_s0 + $0x88] sm:$0xe]  ;;  %v2816_v62 = vrot.slane %v6069_v14, 5  ;;  %v4127_v10 = vrot.slane %v4111_v21, 9  ;;  %v2820_v12 = vrot.slane %v6086_v27, 5  ;;  %v2849_v13 = vsel %vm5606_vm5, %v4134_v30, %v2848_v20 }
  0xbc   :  { %4597 = vmatprep.subr.bf16.mxu0 %v6254_v2  ;;  %v4133_v29 = vrot.slane %v4117_v40, 9  ;;  %v2853_v48 = vsel %vm5606_vm5, %v4135_v55, %v2852_v1 }
  0xbd   :  { %v4159_v59 = vcombine.low %v2849_v13, %v2853_v48  ;;  %v2817_v22 = vsel %vm5606_vm5, %v4126_v18, %v2816_v62 }
  0xbe   :  { %4582 = vmatmul.mubr.bf16.gmra.mrb[12].mxu0 %v4095_v61  ;;  %4632 = vmatpush3.bf16.msra.mxu1 %v6283_v31  ;;  %v2845_v53 = vsel %vm5606_vm5, %v4133_v29, %v2844_v6 }
  0xbf   :  { %4598 = vmatpush3.bf16.msra.mxu0 %v6254_v2  ;;  %4601 = vmatprep.mubr.bf16.mxu0 %v4152_v24  ;;  %v2841_v2 = vsel %vm5606_vm5, %v4132_v34, %v2840_v46 }
  0xc0   :  { %4599 = vmatprep.subr.bf16.mxu0 %v6283_v31  ;;  %v4158_v17 = vcombine.low %v2841_v2, %v2845_v53 }
  0xc1   :  { %4610 = vmatmul.mubr.bf16.vlgmr.msra.gmra.mrb[16].mxu1 %v4157_v3 }
  0xc2   :  { %4613 = vmatprep.mubr.bf16.mxu1 %v4158_v17 }
  0xc3   :  { %4600 = vmatpush3.bf16.msra.mxu0 %v6283_v31  ;;  %v2821_v31 = vsel %vm5606_vm5, %v4127_v10, %v2820_v12 }
  0xc4   :  { %v4155_v14 = vcombine.low %v2817_v22, %v2821_v31 }
  0xc6   :  { %4602 = vmatmul.mubr.bf16.vlgmr.msra.gmra.mrb[0].mxu0 %v4153_v63 }
  0xc7   :  { %4605 = vmatprep.mubr.bf16.mxu0 %v4154_v43 }
  0xc9   :  { %4614 = vmatmul.mubr.bf16.gmra.mrb[20].mxu1 %v4159_v59 }
  0xce   :  { %4606 = vmatmul.mubr.bf16.gmra.mrb[4].mxu0 %v4155_v14 }
 0x174   :  { %v4443_v27 = vpop.f32.mrb[0].mxu1 }
 0x175   :  { %v1166_v23 = vpop.f32.mrb[1].mxu1 }
 0x176   :  { %v4444_v37 = vpop.f32.mrb[2].mxu1 }
 0x177   :  { %v1169_v60 = vpop.f32.mrb[3].mxu1 }
 0x17c   :  { %v6388_v51 = vpop.f32.mrb[4].mxu1 }
 0x17d   :  { %v6390_v36 = vpop.f32.mrb[5].mxu1 }
 0x17e   :  { %v6392_v16 = vpop.f32.mrb[6].mxu1 }
 0x17f   :  { %v6394_v47 = vpop.f32.mrb[7].mxu1 }
 0x184   :  { %v4451_v42 = vpop.f32.mrb[8].mxu1 }
 0x185   :  { %v1198_v35 = vpop.f32.mrb[9].mxu1 }
 0x186   :  { %v4452_v58 = vpop.f32.mrb[10].mxu1 }
 0x187   :  { %v1201_v15 = vpop.f32.mrb[11].mxu1 }
 0x189   :  { %v4579_v5 = vpop.f32.mrb[8].mxu0 }
 0x18a   :  { %v4641_v45 = vadd.f32 %v4579_v5, %v4451_v42  ;;  %v2695_v50 = vpop.f32.mrb[9].mxu0 }
 0x18b   :  { %v4643_v7 = vadd.f32 %v2695_v50, %v1198_v35  ;;  %v4580_v54 = vpop.f32.mrb[10].mxu0 }
 0x18c   :  { %v4645_v61 = vadd.f32 %v4580_v54, %v4452_v58  ;;  %v2698_v0 = vpop.f32.mrb[11].mxu0  ;;  %v4455_v44 = vpop.f32.mrb[12].mxu1 }
 0x18d   :  { %v4647_v39 = vadd.f32 %v2698_v0, %v1201_v15  ;;  %v1214_v57 = vpop.f32.mrb[13].mxu1 }
 0x18e   :  { %v4456_v24 = vpop.f32.mrb[14].mxu1 }
 0x18f   :  { %v1217_v56 = vpop.f32.mrb[15].mxu1 }
 0x191   :  { %v4583_v19 = vpop.f32.mrb[12].mxu0 }
 0x192   :  { %v4649_v33 = vadd.f32 %v4583_v19, %v4455_v44  ;;  %v2711_v49 = vpop.f32.mrb[13].mxu0 }
 0x193   :  { %v4651_v4 = vadd.f32 %v2711_v49, %v1214_v57  ;;  %v4584_v11 = vpop.f32.mrb[14].mxu0 }
 0x194   :  { %v4653_v26 = vadd.f32 %v4584_v11, %v4456_v24  ;;  %v2714_v40 = vpop.f32.mrb[15].mxu0  ;;  %v4611_v28 = vpop.f32.mrb[16].mxu1 }
 0x195   :  { %v4655_v38 = vadd.f32 %v2714_v40, %v1217_v56  ;;  %v4642_v34 = vadd.f32 %v4641_v45, %v4611_v28  ;;  %v3017_v3 = vpop.f32.mrb[17].mxu1 }
 0x196   :  { %v4644_v46 = vadd.f32 %v4643_v7, %v3017_v3  ;;  %v4612_v32 = vpop.f32.mrb[18].mxu1 }
 0x197   :  { %v4646_v41 = vadd.f32 %v4645_v61, %v4612_v32  ;;  %v3020_v25 = vpop.f32.mrb[19].mxu1  ;;  %v6402_v8 = vadd.f32 %v4642_v34, %v6399_v52  ;;  %v5060_v61 = vmov 1  }
 0x198   :  { %v4648_v29 = vadd.f32 %v4647_v39, %v3020_v25  ;;  %v3079_v22 = vadd.f32 %v4644_v46, %v6399_v52  ;;  %4763 = vset.pattern.permute.xlu1 %v5060_v61  ;;  %4764 = vset.pattern.permute.xlu0 %v5060_v61 }
 0x199   :  { %v4603_v6 = vpop.f32.mrb[0].mxu0  ;;  %3123 = vrot.lane.b32.xlu0 %v6402_v8, %s5059_s29 }
 0x19a   :  { %v4633_v9 = vadd.f32 %v4603_v6, %v4443_v27  ;;  %v2985_v63 = vpop.f32.mrb[1].mxu0 }
 0x19b   :  { %v4634_v2 = vadd.f32 %v2985_v63, %v1166_v23  ;;  %v4604_v21 = vpop.f32.mrb[2].mxu0 }
 0x19c   :  { %v4635_v53 = vadd.f32 %v4604_v21, %v4444_v37  ;;  %v2988_v30 = vpop.f32.mrb[3].mxu0  ;;  %v3073_v20 = vadd.f32 %v4633_v9, %v6399_v52  ;;  %v4615_v55 = vpop.f32.mrb[20].mxu1 }
 0x19d   :  { %v3071_v43 = vadd.f32 %v4634_v2, %v6399_v52  ;;  %v4636_v17 = vadd.f32 %v2988_v30, %v1169_v60  ;;  %v4650_v18 = vadd.f32 %v4649_v33, %v4615_v55  ;;  %v3033_v1 = vpop.f32.mrb[21].mxu1  ;;  %v3082_v60 = vadd.f32 %v4646_v41, %v6399_v52 }
 0x19e   :  { %3107 = vrot.lane.b32.xlu1 %v3073_v20, %s5059_s29  ;;  %v4652_v62 = vadd.f32 %v4651_v4, %v3033_v1  ;;  %v4616_v10 = vpop.f32.mrb[22].mxu1  ;;  %v3074_v48 = vadd.f32 %v4635_v53, %v6399_v52 }
 0x19f   :  { %3103 = vrot.lane.b32.xlu0 %v3071_v43, %s5059_s29  ;;  %v4654_v12 = vadd.f32 %v4653_v26, %v4616_v10  ;;  %v3036_v13 = vpop.f32.mrb[23].mxu1  ;;  %v3072_v58 = vadd.f32 %v4636_v17, %v6399_v52  ;;  %v6450_v7 = vadd.f32 %v4650_v18, %v6399_v52 }
 0x1a0   :  { %v4656_v59 = vadd.f32 %v4655_v38, %v3036_v13  ;;  %v6440_v45 = vadd.f32 %v4652_v62, %v6399_v52 }
 0x1a1   :  { %v4607_v31 = vpop.f32.mrb[4].mxu0  ;;  %v6457_v54 = vadd.f32 %v4654_v12, %v6399_v52 }
 0x1a2   :  { %v4637_v14 = vadd.f32 %v4607_v31, %v6388_v51  ;;  %v3001_v27 = vpop.f32.mrb[5].mxu0  ;;  %3109 = vrot.lane.b32.xlu1 %v3074_v48, %s5059_s29  ;;  %v3080_v51 = vadd.f32 %v4648_v29, %v6399_v52  ;;  %v6447_v50 = vadd.f32 %v4656_v59, %v6399_v52 }
 0x1a3   :  { %v4638_v23 = vadd.f32 %v3001_v27, %v6390_v36  ;;  %v4608_v37 = vpop.f32.mrb[6].mxu0  ;;  %3119 = vrot.lane.b32.xlu0 %v3079_v22, %s5059_s29 }
 0x1a4   :  { %v4639_v42 = vadd.f32 %v4608_v37, %v6392_v16  ;;  %v3004_v35 = vpop.f32.mrb[7].mxu0  ;;  %v3077_v36 = vadd.f32 %v4637_v14, %v6399_v52 }
 0x1a5   :  { %v4640_v15 = vadd.f32 %v3004_v35, %v6394_v47  ;;  %v6430_v16 = vadd.f32 %v4638_v23, %v6399_v52 }
 0x1a6   :  { %3125 = vrot.lane.b32.xlu1 %v3082_v60, %s5059_s29  ;;  %v6427_v5 = vadd.f32 %v4639_v42, %v6399_v52 }
 0x1a7   :  { %3105 = vrot.lane.b32.xlu0 %v3072_v58, %s5059_s29  ;;  %v6437_v47 = vadd.f32 %v4640_v15, %v6399_v52 }
 0x1aa   :  { %3121 = vrot.lane.b32.xlu1 %v3080_v51, %s5059_s29 }
 0x1ab   :  { %3115 = vrot.lane.b32.xlu0 %v3077_v36, %s5059_s29 }
 0x1ae   :  { %3117 = vrot.lane.b32.xlu1 %v6427_v5, %s5059_s29 }
 0x1af   :  { %3111 = vrot.lane.b32.xlu0 %v6430_v16, %s5059_s29 }
 0x1b2   :  { %3113 = vrot.lane.b32.xlu1 %v6437_v47, %s5059_s29 }
 0x1b3   :  { %3127 = vrot.lane.b32.xlu0 %v6440_v45, %s5059_s29 }
 0x1b6   :  { %3129 = vrot.lane.b32.xlu1 %v6447_v50, %s5059_s29 }
 0x1b7   :  { %3131 = vrot.lane.b32.xlu0 %v6450_v7, %s5059_s29 }
 0x1ba   :  { %3133 = vrot.lane.b32.xlu1 %v6457_v54, %s5059_s29 }
 0x20b   :  { %v3124_v0 = vpop.permute.xlu0 %3123 }
 0x20c   :  { %v3161_v44 = vsub.f32 %v6402_v8, %v3124_v0 }
 0x20e   :  { %v4179_v39 = vmul.f32 -1.442695, %v3161_v44 }
 0x210   :  { %v3108_v57 = vpop.permute.xlu1 %3107  ;;  %4861 = vpow2.f32 %v4179_v39 }
 0x211   :  { %v3153_v24 = vsub.f32 %v3073_v20, %v3108_v57  ;;  %v3104_v56 = vpop.permute.xlu0 %3103 }
 0x212   :  { %v3151_v19 = vsub.f32 %v3071_v43, %v3104_v56 }
 0x213   :  { %v4171_v33 = vmul.f32 -1.442695, %v3153_v24 }
 0x214   :  { %v3110_v49 = vpop.permute.xlu1 %3109  ;;  %v4169_v4 = vmul.f32 -1.442695, %v3151_v19 }
 0x215   :  { %4863 = vpow2.f32 %v4171_v33  ;;  %v3154_v11 = vsub.f32 %v3074_v48, %v3110_v49  ;;  %v3120_v26 = vpop.permute.xlu0 %3119 }
 0x216   :  { %4865 = vpow2.f32 %v4169_v4  ;;  %v3159_v40 = vsub.f32 %v3079_v22, %v3120_v26 }
 0x217   :  { %v4172_v28 = vmul.f32 -1.442695, %v3154_v11 }
 0x218   :  { %v4177_v52 = vmul.f32 -1.442695, %v3159_v40  ;;  %v3126_v38 = vpop.permute.xlu1 %3125 }
 0x219   :  { %4867 = vpow2.f32 %v4172_v28  ;;  %v3162_v34 = vsub.f32 %v3082_v60, %v3126_v38  ;;  %v3106_v3 = vpop.permute.xlu0 %3105 }
 0x21a   :  { %v4862_v46 = vpop.eup %4861  ;;  %4869 = vpow2.f32 %v4177_v52  ;;  %v3152_v32 = vsub.f32 %v3072_v58, %v3106_v3 }
 0x21b   :  { %v3225_v41 = vadd.f32 1.0, %v4862_v46  ;;  %v4180_v25 = vmul.f32 -1.442695, %v3162_v34 }
 0x21c   :  { %v4170_v8 = vmul.f32 -1.442695, %v3152_v32  ;;  %v3122_v29 = vpop.permute.xlu1 %3121 }
 0x21d   :  { %4871 = vrcp.f32 %v3225_v41  ;;  %v3160_v6 = vsub.f32 %v3080_v51, %v3122_v29  ;;  %v3116_v9 = vpop.permute.xlu0 %3115 }
 0x21e   :  { %4873 = vpow2.f32 %v4180_v25  ;;  %v3157_v63 = vsub.f32 %v3077_v36, %v3116_v9 }
 0x21f   :  { %v4864_v2 = vpop.eup %4863  ;;  %4875 = vpow2.f32 %v4170_v8  ;;  %v4178_v21 = vmul.f32 -1.442695, %v3160_v6 }
 0x220   :  { %v4866_v53 = vpop.eup %4865  ;;  %v3217_v30 = vadd.f32 1.0, %v4864_v2  ;;  %v4175_v20 = vmul.f32 -1.442695, %v3157_v63  ;;  %v3118_v55 = vpop.permute.xlu1 %3117 }
 0x221   :  { %v3215_v43 = vadd.f32 1.0, %v4866_v53  ;;  %4877 = vpow2.f32 %v4178_v21  ;;  %v3158_v17 = vsub.f32 %v6427_v5, %v3118_v55  ;;  %v3112_v18 = vpop.permute.xlu0 %3111 }
 0x222   :  { %4879 = vrcp.f32 %v3217_v30  ;;  %v3155_v1 = vsub.f32 %v6430_v16, %v3112_v18 }
 0x223   :  { %v4868_v62 = vpop.eup %4867  ;;  %4881 = vrcp.f32 %v3215_v43  ;;  %v4176_v10 = vmul.f32 -1.442695, %v3158_v17 }
 0x224   :  { %v4870_v12 = vpop.eup %4869  ;;  %v3218_v13 = vadd.f32 1.0, %v4868_v62  ;;  %4883 = vpow2.f32 %v4175_v20  ;;  %v4173_v48 = vmul.f32 -1.442695, %v3155_v1  ;;  %v3114_v59 = vpop.permute.xlu1 %3113 }
 0x225   :  { %v3223_v22 = vadd.f32 1.0, %v4870_v12  ;;  %4885 = vpow2.f32 %v4176_v10  ;;  %v3156_v31 = vsub.f32 %v6437_v47, %v3114_v59  ;;  %v3128_v14 = vpop.permute.xlu0 %3127 }
 0x226   :  { %4887 = vrcp.f32 %v3218_v13  ;;  %v3163_v27 = vsub.f32 %v6440_v45, %v3128_v14 }
 0x227   :  { %v6466_v23 = vpop.eup %4871  ;;  %4889 = vrcp.f32 %v3223_v22  ;;  %v4174_v37 = vmul.f32 -1.442695, %v3156_v31 }
 0x228   :  { %v4874_v60 = vpop.eup %4873  ;;  %4891 = vpow2.f32 %v4173_v48  ;;  %v4181_v42 = vmul.f32 -1.442695, %v3163_v27  ;;  %v3130_v35 = vpop.permute.xlu1 %3129  ;;  %v3273_v58 = vmax.f32 %v6466_v23, 1e-07  ;;  %v3305_v32 = vsub.f32 1.0, %v6466_v23 }
 0x229   :  { %v4876_v15 = vpop.eup %4875  ;;  %v3226_v51 = vadd.f32 1.0, %v4874_v60  ;;  %4893 = vpow2.f32 %v4174_v37  ;;  %v3164_v36 = vsub.f32 %v6447_v50, %v3130_v35  ;;  %v3132_v5 = vpop.permute.xlu0 %3131 }
 0x22a   :  { %v3216_v16 = vadd.f32 1.0, %v4876_v15  ;;  %4895 = vpow2.f32 %v4181_v42  ;;  %v3165_v47 = vsub.f32 %v6450_v7, %v3132_v5  ;;  %v6471_v45 = vmin.f32 %v3273_v58, 0.9999999 }
 0x22b   :  { %v4878_v61 = vpop.eup %4877  ;;  %4897 = vrcp.f32 %v3226_v51  ;;  %v4182_v0 = vmul.f32 -1.442695, %v3164_v36  ;;  %v6495_v17 = vmax.f32 %v3305_v32, 1e-07 }
 0x22c   :  { %v4880_v44 = vpop.eup %4879  ;;  %4899 = vrcp.f32 %v3216_v16  ;;  %v3224_v39 = vadd.f32 1.0, %v4878_v61  ;;  %v4183_v57 = vmul.f32 -1.442695, %v3165_v47  ;;  %v3134_v24 = vpop.permute.xlu1 %3133  ;;  %v3353_v56 = vsub.f32 1.0, %v6471_v45 }
 0x22d   :  { %v6474_v19 = vpop.eup %4881  ;;  %4901 = vpow2.f32 %v4182_v0  ;;  %v3166_v50 = vsub.f32 %v6457_v54, %v3134_v24  ;;  %v3265_v33 = vmax.f32 %v4880_v44, 1e-07  ;;  %v3297_v4 = vsub.f32 1.0, %v4880_v44 }
 0x22e   :  { %v4884_v49 = vpop.eup %4883  ;;  %4903 = vrcp.f32 %v3224_v39  ;;  %v3263_v7 = vmax.f32 %v6474_v19, 1e-07  ;;  %v3337_v23 = vmin.f32 %v6495_v17, 0.9999999  ;;  %v3295_v37 = vsub.f32 1.0, %v6474_v19 }
 0x22f   :  { %v4886_v11 = vpop.eup %4885  ;;  %v3221_v26 = vadd.f32 1.0, %v4884_v49  ;;  %4905 = vpow2.f32 %v4183_v57  ;;  %v4184_v40 = vmul.f32 -1.442695, %v3166_v50  ;;  %v6478_v28 = vmin.f32 %v3265_v33, 0.9999999 }
 0x230   :  { %v4888_v52 = vpop.eup %4887  ;;  %v3222_v38 = vadd.f32 1.0, %v4886_v11  ;;  %v6480_v34 = vmin.f32 %v3263_v7, 0.9999999  ;;  %4907 = vrcp.f32 %v3353_v56  ;;  %v6487_v8 = vmax.f32 %v3297_v4, 1e-07 }
 0x231   :  { %v6482_v3 = vpop.eup %4889  ;;  %4909 = vrcp.f32 %v3221_v26  ;;  %v3345_v54 = vsub.f32 1.0, %v6478_v28  ;;  %v3266_v46 = vmax.f32 %v4888_v52, 1e-07  ;;  %v3298_v63 = vsub.f32 1.0, %v4888_v52 }
 0x232   :  { %v4892_v41 = vpop.eup %4891  ;;  %4911 = vrcp.f32 %v3222_v38  ;;  %v3271_v25 = vmax.f32 %v6482_v3, 1e-07  ;;  %v3343_v53 = vsub.f32 1.0, %v6480_v34  ;;  %v3329_v62 = vmin.f32 %v6487_v8, 0.9999999 }
 0x233   :  { %v4894_v29 = vpop.eup %4893  ;;  %v3219_v6 = vadd.f32 1.0, %v4892_v41  ;;  %4913 = vpow2.f32 %v4184_v40  ;;  %v6489_v9 = vmin.f32 %v3266_v46, 0.9999999  ;;  %v6499_v13 = vmax.f32 %v3298_v63, 1e-07 }
 0x234   :  { %v4896_v2 = vpop.eup %4895  ;;  %v3220_v21 = vadd.f32 1.0, %v4894_v29  ;;  %4915 = vrcp.f32 %v3345_v54  ;;  %v6492_v30 = vmin.f32 %v3271_v25, 0.9999999  ;;  %v3425_v58 = vsub.f32 1.0, %v3329_v62 }
 0x235   :  { %v4898_v20 = vpop.eup %4897  ;;  %4917 = vrcp.f32 %v3219_v6  ;;  %v3227_v55 = vadd.f32 1.0, %v4896_v2  ;;  %v3346_v43 = vsub.f32 1.0, %v6489_v9  ;;  %v3330_v47 = vmin.f32 %v6499_v13, 0.9999999 }
 0x236   :  { %v4900_v18 = vpop.eup %4899  ;;  %4919 = vrcp.f32 %v3220_v21  ;;  %v3274_v1 = vmax.f32 %v4898_v20, 1e-07  ;;  %v3351_v12 = vsub.f32 1.0, %v6492_v30  ;;  %v3306_v31 = vsub.f32 1.0, %v4898_v20 }
 0x237   :  { %v4902_v10 = vpop.eup %4901  ;;  %4921 = vrcp.f32 %v3227_v55  ;;  %v3264_v5 = vmax.f32 %v4900_v18, 1e-07  ;;  %v6518_v44 = vmax.f32 %v3295_v37, 1e-07  ;;  %v3296_v39 = vsub.f32 1.0, %v4900_v18 }
 0x238   :  { %v4904_v48 = vpop.eup %4903  ;;  %v3228_v59 = vadd.f32 1.0, %v4902_v10  ;;  %4923 = vrcp.f32 %v3343_v53  ;;  %v6501_v22 = vmin.f32 %v3274_v1, 0.9999999  ;;  %v6516_v61 = vmax.f32 %v3306_v31, 1e-07 }
 0x239   :  { %v4906_v14 = vpop.eup %4905  ;;  %4925 = vrcp.f32 %v3346_v43  ;;  %v3272_v27 = vmax.f32 %v4904_v48, 1e-07  ;;  %v3303_v56 = vsub.f32 1.0, %v6482_v3  ;;  %v3433_v33 = vsub.f32 1.0, %v3337_v23 }
 0x23a   :  { %v4908_v60 = vpop.eup %4907  ;;  %4927 = vrcp.f32 %v3228_v59  ;;  %v3229_v42 = vadd.f32 1.0, %v4906_v14  ;;  %v3354_v35 = vsub.f32 1.0, %v6501_v22  ;;  %v6527_v49 = vmin.f32 %v3264_v5, 0.9999999 }
 0x23b   :  { %v6508_v15 = vpop.eup %4909  ;;  %v3380_v51 = vmul.f32 %v4908_v60, %v6471_v45  ;;  %4929 = vrcp.f32 %v3351_v12  ;;  %v6511_v36 = vmin.f32 %v3272_v27, 0.9999999  ;;  %v3426_v4 = vsub.f32 1.0, %v3330_v47 }
 0x23c   :  { %v6513_v16 = vpop.eup %4911  ;;  %4931 = vrcp.f32 %v3229_v42  ;;  %v3338_v11 = vmin.f32 %v6516_v61, 0.9999999  ;;  %v3327_v40 = vmin.f32 %v6518_v44, 0.9999999  ;;  %v3304_v52 = vsub.f32 1.0, %v4904_v48 }
 0x23d   :  { %v4914_v0 = vpop.eup %4913  ;;  %4933 = vlog2.f32 %v3380_v51  ;;  %v3352_v45 = vsub.f32 1.0, %v6511_v36  ;;  %v6539_v3 = vmax.f32 %v3303_v56, 1e-07  ;;  %v3344_v32 = vsub.f32 1.0, %v6527_v49 }
 0x23e   :  { %v4916_v57 = vpop.eup %4915  ;;  %v3230_v24 = vadd.f32 1.0, %v4914_v0  ;;  %4935 = vrcp.f32 %v3354_v35  ;;  %v3434_v29 = vsub.f32 1.0, %v3338_v11  ;;  %v3423_v63 = vsub.f32 1.0, %v3327_v40 }
 0x23f   :  { %v6522_v19 = vpop.eup %4917  ;;  %v3364_v50 = vmul.f32 %v4916_v57, %v6478_v28  ;;  %4937 = vrcp.f32 %v3425_v58  ;;  %v6537_v28 = vmax.f32 %v3296_v39, 1e-07  ;;  %v6551_v21 = vmax.f32 %v3304_v52, 1e-07 }
 0x240   :  { %v6529_v7 = vpop.eup %4919  ;;  %4939 = vrcp.f32 %v3230_v24  ;;  %v3269_v20 = vmax.f32 %v6508_v15, 1e-07  ;;  %v3270_v43 = vmax.f32 %v6513_v16, 1e-07  ;;  %v3301_v39 = vsub.f32 1.0, %v6508_v15 }
 0x241   :  { %v6534_v26 = vpop.eup %4921  ;;  %4941 = vlog2.f32 %v3364_v50  ;;  %v3328_v2 = vmin.f32 %v6537_v28, 0.9999999  ;;  %v3336_v48 = vmin.f32 %v6551_v21, 0.9999999  ;;  %v3268_v52 = vmax.f32 %v6529_v7, 1e-07 }
 0x242   :  { %v4924_v38 = vpop.eup %4923  ;;  %4943 = vrcp.f32 %v3352_v45  ;;  %v6569_v14 = vmin.f32 %v3269_v20, 0.9999999  ;;  %v3275_v15 = vmax.f32 %v6534_v26, 1e-07  ;;  %v3302_v61 = vsub.f32 1.0, %v6513_v16 }
 0x243   :  { %v4926_v54 = vpop.eup %4925  ;;  %v3360_v46 = vmul.f32 %v4924_v38, %v6480_v34  ;;  %4945 = vrcp.f32 %v3433_v33  ;;  %v3424_v12 = vsub.f32 1.0, %v3328_v2  ;;  %v3432_v8 = vsub.f32 1.0, %v3336_v48 }
 0x244   :  { %v6543_v41 = vpop.eup %4927  ;;  %v3366_v25 = vmul.f32 %v4926_v54, %v6489_v9  ;;  %4947 = vrcp.f32 %v3426_v4  ;;  %v3335_v9 = vmin.f32 %v6539_v3, 0.9999999  ;;  %v3349_v0 = vsub.f32 1.0, %v6569_v14 }
 0x245   :  { %v4930_v6 = vpop.eup %4929  ;;  %4949 = vlog2.f32 %v3360_v46  ;;  %v6593_v38 = vmax.f32 %v3301_v39, 1e-07  ;;  %v3276_v54 = vmax.f32 %v6543_v41, 1e-07 }
 0x246   :  { %v6553_v34 = vpop.eup %4931  ;;  %4951 = vlog2.f32 %v3366_v25  ;;  %v3376_v53 = vmul.f32 %v4930_v6, %v6492_v30  ;;  %v3431_v31 = vsub.f32 1.0, %v3335_v9 }
 0x247   :  { %v4934_v55 = vpop.eup %4933  ;;  %4953 = vrcp.f32 %v3344_v32  ;;  %v3277_v42 = vmax.f32 %v6553_v34, 1e-07 }
 0x248   :  { %v4936_v18 = vpop.eup %4935  ;;  %4955 = vlog2.f32 %v3376_v53  ;;  %v3412_v33 = vmul.f32 0.6931472, %v4934_v55 }
 0x249   :  { %v4938_v1 = vpop.eup %4937  ;;  %v3382_v10 = vmul.f32 %v4936_v18, %v6501_v22  ;;  %4957 = vrcp.f32 %v3434_v29  ;;  %v6571_v22 = vmin.f32 %v3270_v43, 0.9999999  ;;  %v6586_v17 = vmin.f32 %v3277_v42, 0.9999999 }
 0x24a   :  { %v6563_v30 = vpop.eup %4939  ;;  %v3444_v59 = vmul.f32 %v4938_v1, %v3329_v62  ;;  %4959 = vrcp.f32 %v3423_v63  ;;  %v3267_v62 = vmax.f32 %v6522_v19, 1e-07  ;;  %v3299_v29 = vsub.f32 1.0, %v6522_v19 }
 0x24b   :  { %v4942_v27 = vpop.eup %4941  ;;  %4961 = vlog2.f32 %v3382_v10  ;;  %v3350_v24 = vsub.f32 1.0, %v6571_v22  ;;  %v3278_v45 = vmax.f32 %v6563_v30, 1e-07  ;;  %v6605_v18 = vmin.f32 %v3275_v15, 0.9999999 }
 0x24c   :  { %v4944_v37 = vpop.eup %4943  ;;  %v3396_v60 = vmul.f32 0.6931472, %v4942_v27  ;;  %4963 = vlog2.f32 %v3444_v59  ;;  %v6588_v4 = vmin.f32 %v3267_v62, 0.9999999  ;;  %v6607_v19 = vmin.f32 %v3268_v52, 0.9999999 }
 0x24d   :  { %v4946_v35 = vpop.eup %4945  ;;  %v3378_v58 = vmul.f32 %v4944_v37, %v6511_v36  ;;  %4965 = vrcp.f32 %v3424_v12  ;;  %v6596_v25 = vmin.f32 %v3278_v45, 0.9999999  ;;  %v6613_v12 = vmax.f32 %v3299_v29, 1e-07 }
 0x24e   :  { %v4948_v51 = vpop.eup %4947  ;;  %3519 = vperm.xlu1 %4763, %v3396_v60   ;;  %v3460_v5 = vmul.f32 %v4946_v35, %v3337_v23  ;;  %4967 = vrcp.f32 %v3431_v31  ;;  %v3347_v43 = vsub.f32 1.0, %v6588_v4  ;;  %v6620_v42 = vmin.f32 %v3276_v54, 0.9999999 }
 0x24f   :  { %v4950_v57 = vpop.eup %4949  ;;  %4969 = vlog2.f32 %v3378_v58  ;;  %v3446_v36 = vmul.f32 %v4948_v51, %v3330_v47  ;;  %v3358_v44 = vsub.f32 1.0, %v6596_v25  ;;  %v3348_v58 = vsub.f32 1.0, %v6607_v19 }
 0x250   :  { %v4952_v56 = vpop.eup %4951  ;;  %v3392_v50 = vmul.f32 0.6931472, %v4950_v57  ;;  %4971 = vlog2.f32 %v3460_v5  ;;  %v3331_v3 = vmin.f32 %v6613_v12, 0.9999999 }
 0x251   :  { %v4954_v23 = vpop.eup %4953  ;;  %4973 = vlog2.f32 %v3446_v36  ;;  %v3398_v63 = vmul.f32 0.6931472, %v4952_v56  ;;  %v3356_v36 = vsub.f32 1.0, %v6620_v42 }
 0x252   :  { %v4956_v13 = vpop.eup %4955  ;;  %3509 = vperm.xlu0 %4764, %v3392_v50   ;;  %3559 = vperm.xlu1 %4763, %v3412_v33   ;;  %v3362_v47 = vmul.f32 %v4954_v23, %v6527_v49  ;;  %4975 = vrcp.f32 %v3432_v8  ;;  %v3357_v49 = vsub.f32 1.0, %v6586_v17  ;;  %v6623_v8 = vmax.f32 %v3302_v61, 1e-07 }
 0x253   :  { %v4958_v46 = vpop.eup %4957  ;;  %v3408_v32 = vmul.f32 0.6931472, %v4956_v13  ;;  %4977 = vrcp.f32 %v3349_v0  ;;  %v3427_v21 = vsub.f32 1.0, %v3331_v3  ;;  %v3308_v23 = vsub.f32 1.0, %v6543_v41 }
 0x254   :  { %v4960_v6 = vpop.eup %4959  ;;  %4979 = vlog2.f32 %v3362_v47  ;;  %v3462_v53 = vmul.f32 %v4958_v46, %v3338_v11  ;;  %v3307_v11 = vsub.f32 1.0, %v6534_v26  ;;  %v3355_v26 = vsub.f32 1.0, %v6605_v18 }
 0x255   :  { %v4962_v20 = vpop.eup %4961  ;;  %v3440_v55 = vmul.f32 %v4960_v6, %v3327_v40  ;;  %4981 = vrcp.f32 %v3350_v24  ;;  %v3333_v40 = vmin.f32 %v6593_v38, 0.9999999  ;;  %v3309_v24 = vsub.f32 1.0, %v6553_v34 }
 0x256   :  { %v4964_v1 = vpop.eup %4963  ;;  %3524 = vperm.xlu0 %4764, %v3398_v63   ;;  %3549 = vperm.xlu1 %4763, %v3408_v32   ;;  %4983 = vlog2.f32 %v3462_v53  ;;  %v3414_v31 = vmul.f32 0.6931472, %v4962_v20  ;;  %v6625_v28 = vmax.f32 %v3307_v11, 1e-07  ;;  %v3334_v56 = vmin.f32 %v6623_v8, 0.9999999 }
 0x257   :  { %v4966_v10 = vpop.eup %4965  ;;  %4985 = vlog2.f32 %v3440_v55  ;;  %v3476_v27 = vmul.f32 0.6931472, %v4964_v1  ;;  %v3429_v0 = vsub.f32 1.0, %v3333_v40  ;;  %v6644_v47 = vmax.f32 %v3309_v24, 1e-07 }
 0x258   :  { %v4968_v59 = vpop.eup %4967  ;;  %v3442_v37 = vmul.f32 %v4966_v10, %v3328_v2  ;;  %4987 = vrcp.f32 %v3357_v49  ;;  %v3339_v50 = vmin.f32 %v6625_v28, 0.9999999  ;;  %v3430_v46 = vsub.f32 1.0, %v3334_v56 }
 0x259   :  { %v4970_v60 = vpop.eup %4969  ;;  %v3456_v16 = vmul.f32 %v4968_v59, %v3335_v9  ;;  %4989 = vrcp.f32 %v3347_v43  ;;  %v3300_v9 = vsub.f32 1.0, %v6529_v7  ;;  %v3310_v32 = vsub.f32 1.0, %v6563_v30 }
 0x25a   :  { %v4972_v35 = vpop.eup %4971  ;;  %3564 = vperm.xlu0 %4764, %v3414_v31   ;;  %3615 = vperm.xlu1 %4763, %v3476_v27   ;;  %4991 = vlog2.f32 %v3442_v37  ;;  %v3410_v51 = vmul.f32 0.6931472, %v4970_v60  ;;  %v3435_v41 = vsub.f32 1.0, %v3339_v50  ;;  %v6653_v63 = vmax.f32 %v3308_v23, 1e-07 }
 0x25b   :  { %v4974_v2 = vpop.eup %4973  ;;  %4993 = vlog2.f32 %v3456_v16  ;;  %v3492_v5 = vmul.f32 0.6931472, %v4972_v35  ;;  %v3341_v1 = vmin.f32 %v6644_v47, 0.9999999  ;;  %v6657_v30 = vmax.f32 %v3310_v32, 1e-07 }
 0x25c   :  { %v4976_v62 = vpop.eup %4975  ;;  %4995 = vrcp.f32 %v3358_v44  ;;  %v3478_v15 = vmul.f32 0.6931472, %v4974_v2 }
 0x25d   :  { %v4978_v39 = vpop.eup %4977  ;;  %v3458_v57 = vmul.f32 %v4976_v62, %v3336_v48  ;;  %4997 = vrcp.f32 %v3355_v26  ;;  %v6640_v48 = vmax.f32 %v3300_v9, 1e-07  ;;  %v3437_v16 = vsub.f32 1.0, %v3341_v1 }
 0x25e   :  { %v4980_v45 = vpop.eup %4979  ;;  %3554 = vperm.xlu0 %4764, %v3410_v51   ;;  %3655 = vperm.xlu1 %4763, %v3492_v5   ;;  %v3372_v7 = vmul.f32 %v4978_v39, %v6569_v14  ;;  %4999 = vrcp.f32 %v3348_v58  ;;  %v3342_v26 = vmin.f32 %v6657_v30, 0.9999999 }
 0x25f   :  { %v4982_v33 = vpop.eup %4981  ;;  %5001 = vlog2.f32 %v3458_v57  ;;  %v3394_v52 = vmul.f32 0.6931472, %v4980_v45 }
 0x260   :  { %v4984_v34 = vpop.eup %4983  ;;  %5003 = vlog2.f32 %v3372_v7  ;;  %v3374_v14 = vmul.f32 %v4982_v33, %v6571_v22  ;;  %v3332_v22 = vmin.f32 %v6640_v48, 0.9999999 }
 0x261   :  { %v4986_v13 = vpop.eup %4985  ;;  %5005 = vrcp.f32 %v3429_v0  ;;  %v3494_v49 = vmul.f32 0.6931472, %v4984_v34  ;;  %v3438_v0 = vsub.f32 1.0, %v3342_v26 }
 0x262   :  { %v4988_v54 = vpop.eup %4987  ;;  %3620 = vperm.xlu0 %4764, %v3478_v15   ;;  %3514 = vperm.xlu1 %4763, %v3394_v52   ;;  %5007 = vlog2.f32 %v3374_v14  ;;  %v3472_v20 = vmul.f32 0.6931472, %v4986_v13  ;;  %v3428_v10 = vsub.f32 1.0, %v3332_v22 }
 0x263   :  { %v4990_v29 = vpop.eup %4989  ;;  %v3388_v6 = vmul.f32 %v4988_v54, %v6586_v17  ;;  %5009 = vrcp.f32 %v3356_v36 }
 0x264   :  { %v4992_v53 = vpop.eup %4991  ;;  %v3368_v55 = vmul.f32 %v4990_v29, %v6588_v4  ;;  %5011 = vrcp.f32 %v3427_v21  ;;  %v3340_v4 = vmin.f32 %v6653_v63, 0.9999999 }
 0x265   :  { %v4994_v43 = vpop.eup %4993  ;;  %5013 = vlog2.f32 %v3388_v6  ;;  %v3474_v59 = vmul.f32 0.6931472, %v4992_v53 }
 0x266   :  { %v4996_v61 = vpop.eup %4995  ;;  %3660 = vperm.xlu0 %4764, %v3494_v49   ;;  %3605 = vperm.xlu1 %4763, %v3472_v20   ;;  %5015 = vlog2.f32 %v3368_v55  ;;  %v3488_v31 = vmul.f32 0.6931472, %v4994_v43  ;;  %v3436_v58 = vsub.f32 1.0, %v3340_v4 }
 0x267   :  { %v4998_v17 = vpop.eup %4997  ;;  %v3390_v11 = vmul.f32 %v4996_v61, %v6596_v25  ;;  %5017 = vrcp.f32 %v3430_v46 }
 0x268   :  { %v5000_v44 = vpop.eup %4999  ;;  %v3384_v27 = vmul.f32 %v4998_v17, %v6605_v18  ;;  %5019 = vrcp.f32 %v3435_v41 }
 0x269   :  { %v5002_v37 = vpop.eup %5001  ;;  %5021 = vlog2.f32 %v3390_v11  ;;  %v3370_v60 = vmul.f32 %v5000_v44, %v6607_v19 }
 0x26a   :  { %v5004_v25 = vpop.eup %5003  ;;  %3610 = vperm.xlu0 %4764, %v3474_v59   ;;  %3645 = vperm.xlu1 %4763, %v3488_v31   ;;  %5023 = vlog2.f32 %v3384_v27  ;;  %v3490_v2 = vmul.f32 0.6931472, %v5002_v37 }
 0x26b   :  { %v5006_v35 = vpop.eup %5005  ;;  %5025 = vlog2.f32 %v3370_v60  ;;  %v3404_v9 = vmul.f32 0.6931472, %v5004_v25 }
 0x26c   :  { %v5008_v18 = vpop.eup %5007  ;;  %v3452_v19 = vmul.f32 %v5006_v35, %v3333_v40  ;;  %5027 = vrcp.f32 %v3428_v10  ;;  %v3503_v10 = vlaneseq }
 0x26d   :  { %v5010_v62 = vpop.eup %5009  ;;  %5029 = vrcp.f32 %v3437_v16  ;;  %v3406_v24 = vmul.f32 0.6931472, %v5008_v18 }
 0x26e   :  { %v5012_v51 = vpop.eup %5011  ;;  %3650 = vperm.xlu0 %4764, %v3490_v2   ;;  %3539 = vperm.xlu1 %4763, %v3404_v9   ;;  %5031 = vlog2.f32 %v3452_v19  ;;  %v3386_v5 = vmul.f32 %v5010_v62, %v6620_v42  ;;  %v6685_v59 = vand.u32 127, %v3503_v10 }
 0x26f   :  { %v5014_v39 = vpop.eup %5013  ;;  %v3448_v57 = vmul.f32 %v5012_v51, %v3331_v3  ;;  %5033 = vrcp.f32 %v3436_v58 }
 0x270   :  { %v5016_v36 = vpop.eup %5015  ;;  %v3420_v45 = vmul.f32 0.6931472, %v5014_v39  ;;  %5035 = vlog2.f32 %v3386_v5  ;;  %vm3506_vm6 = vcmp.eq.s32.totalorder %v6685_v59, 1  ;;  %vm3505_vm7 = vcmp.eq.s32.totalorder %v6685_v59, 0 }
 0x271   :  { %v5018_v38 = vpop.eup %5017  ;;  %5037 = vrcp.f32 %v3438_v0  ;;  %v3400_v3 = vmul.f32 0.6931472, %v5016_v36 }
 0x272   :  { %v5020_v40 = vpop.eup %5019  ;;  %3544 = vperm.xlu0 %4764, %v3406_v24   ;;  %3579 = vperm.xlu1 %4763, %v3420_v45   ;;  %v3454_v7 = vmul.f32 %v5018_v38, %v3334_v56  ;;  %5039 = vlog2.f32 %v3448_v57 }
 0x273   :  { %v5022_v33 = vpop.eup %5021  ;;  %v3464_v42 = vmul.f32 %v5020_v40, %v3339_v50 }
 0x274   :  { %v5024_v12 = vpop.eup %5023  ;;  %v3422_v21 = vmul.f32 0.6931472, %v5022_v33  ;;  %5041 = vlog2.f32 %v3454_v7 }
 0x275   :  { %v5026_v23 = vpop.eup %5025  ;;  %5043 = vlog2.f32 %v3464_v42  ;;  %v3416_v52 = vmul.f32 0.6931472, %v5024_v12 }
 0x276   :  { %v5028_v34 = vpop.eup %5027  ;;  %3529 = vperm.xlu1 %4763, %v3400_v3   ;;  %3584 = vperm.xlu0 %4764, %v3422_v21   ;;  %v3402_v14 = vmul.f32 0.6931472, %v5026_v23 }
 0x277   :  { %v5030_v15 = vpop.eup %5029  ;;  %v3450_v8 = vmul.f32 %v5028_v34, %v3332_v22 }
 0x278   :  { %v5032_v56 = vpop.eup %5031  ;;  %v3468_v28 = vmul.f32 %v5030_v15, %v3341_v1 }
 0x279   :  { %v5034_v50 = vpop.eup %5033  ;;  %5045 = vlog2.f32 %v3450_v8  ;;  %v3484_v41 = vmul.f32 0.6931472, %v5032_v56 }
 0x27a   :  { %v5036_v13 = vpop.eup %5035  ;;  %3569 = vperm.xlu1 %4763, %v3416_v52   ;;  %3534 = vperm.xlu0 %4764, %v3402_v14   ;;  %v3466_v54 = vmul.f32 %v5034_v50, %v3340_v4  ;;  %5047 = vlog2.f32 %v3468_v28 }
 0x27b   :  { %v5038_v46 = vpop.eup %5037  ;;  %v3418_v32 = vmul.f32 0.6931472, %v5036_v13 }
 0x27c   :  { %5049 = vlog2.f32 %v3466_v54  ;;  %v5040_v48 = vpop.eup %5039  ;;  %v3470_v29 = vmul.f32 %v5038_v46, %v3342_v26 }
 0x27d   :  { %v3480_v47 = vmul.f32 0.6931472, %v5040_v48 }
 0x27e   :  { %v5042_v6 = vpop.eup %5041  ;;  %3635 = vperm.xlu1 %4763, %v3484_v41   ;;  %3574 = vperm.xlu0 %4764, %v3418_v32   ;;  %5051 = vlog2.f32 %v3470_v29 }
 0x27f   :  { %v3486_v22 = vmul.f32 0.6931472, %v5042_v6  ;;  %v5044_v53 = vpop.eup %5043 }
 0x280   :  { %v3496_v20 = vmul.f32 0.6931472, %v5044_v53 }
 0x282   :  { %3625 = vperm.xlu1 %4763, %v3480_v47   ;;  %3640 = vperm.xlu0 %4764, %v3486_v22  }
 0x283   :  { %v5046_v49 = vpop.eup %5045 }
 0x284   :  { %v3482_v63 = vmul.f32 0.6931472, %v5046_v49  ;;  %v5048_v55 = vpop.eup %5047 }
 0x285   :  { %v3500_v1 = vmul.f32 0.6931472, %v5048_v55 }
 0x286   :  { %v5050_v43 = vpop.eup %5049  ;;  %3665 = vperm.xlu1 %4763, %v3496_v20   ;;  %3630 = vperm.xlu0 %4764, %v3482_v63  }
 0x287   :  { %v3498_v61 = vmul.f32 0.6931472, %v5050_v43 }
 0x288   :  { %v5052_v30 = vpop.eup %5051 }
 0x289   :  { %v3502_v17 = vmul.f32 0.6931472, %v5052_v30 }
 0x28a   :  { %3675 = vperm.xlu1 %4763, %v3500_v1   ;;  %3670 = vperm.xlu0 %4764, %v3498_v61  }
 0x28e   :  { %3680 = vperm.xlu0 %4764, %v3502_v17  }
 0x2cd   :  { %v3520_v11 = vpop.permute.xlu1 %3519 }
 0x2ce   :  { %v3589_v37 = vsel %vm3506_vm6, %v3520_v11, -16.118095 }
 0x2d1   :  { %v3510_v4 = vpop.permute.xlu0 %3509  ;;  %v3560_v44 = vpop.permute.xlu1 %3559 }
 0x2d2   :  { %v3597_v26 = vsel %vm3506_vm6, %v3560_v44, -16.118095  ;;  %v3587_v51 = vsel %vm3506_vm6, %v3510_v4, -16.118095 }
 0x2d5   :  { %v3525_v31 = vpop.permute.xlu0 %3524  ;;  %v3550_v27 = vpop.permute.xlu1 %3549 }
 0x2d6   :  { %v3590_v2 = vsel %vm3506_vm6, %v3525_v31, -16.118095  ;;  %v3595_v24 = vsel %vm3506_vm6, %v3550_v27, -16.118095 }
 0x2d9   :  { %v3565_v60 = vpop.permute.xlu0 %3564  ;;  %v3616_v16 = vpop.permute.xlu1 %3615 }
 0x2da   :  { %v3685_v25 = vsel %vm3505_vm7, %v3616_v16, %v3589_v37  ;;  %v3598_v5 = vsel %vm3506_vm6, %v3565_v60, -16.118095 }
 0x2db   :  { %3702 = vst.msk [vmem:[%s6820_s3 + $0x10] sm:$0xff] %vm3699_vm8, %v3685_v25 }
 0x2dd   :  { %v3555_v35 = vpop.permute.xlu0 %3554  ;;  %v3656_v58 = vpop.permute.xlu1 %3655 }
 0x2de   :  { %v3693_v18 = vsel %vm3505_vm7, %v3656_v58, %v3597_v26  ;;  %v3596_v42 = vsel %vm3506_vm6, %v3555_v35, -16.118095 }
 0x2df   :  { %3710 = vst.msk [vmem:[%s6820_s3 + $0x50] sm:$0xff] %vm3699_vm8, %v3693_v18 }
 0x2e1   :  { %v3621_v9 = vpop.permute.xlu0 %3620  ;;  %v3515_v19 = vpop.permute.xlu1 %3514 }
 0x2e2   :  { %v3686_v62 = vsel %vm3505_vm7, %v3621_v9, %v3590_v2  ;;  %v3588_v45 = vsel %vm3506_vm6, %v3515_v19, -16.118095 }
 0x2e3   :  { %3703 = vst.msk [vmem:[%s6820_s3 + $0x18] sm:$0xff] %vm3699_vm8, %v3686_v62 }
 0x2e5   :  { %v3661_v0 = vpop.permute.xlu0 %3660  ;;  %v3606_v39 = vpop.permute.xlu1 %3605 }
 0x2e6   :  { %v3694_v57 = vsel %vm3505_vm7, %v3661_v0, %v3598_v5  ;;  %v3683_v36 = vsel %vm3505_vm7, %v3606_v39, %v3587_v51 }
 0x2e7   :  { %3711 = vst.msk [vmem:[%s6820_s3 + $0x58] sm:$0xff] %vm3699_vm8, %v3694_v57  ;;  %3700 = vst.msk [vmem:[%s6820_s3] sm:$0xff] %vm3699_vm8, %v3683_v36 }
 0x2e9   :  { %v3611_v38 = vpop.permute.xlu0 %3610  ;;  %v3646_v40 = vpop.permute.xlu1 %3645 }
 0x2ea   :  { %v3684_v7 = vsel %vm3505_vm7, %v3611_v38, %v3588_v45  ;;  %v3691_v33 = vsel %vm3505_vm7, %v3646_v40, %v3595_v24 }
 0x2eb   :  { %3701 = vst.msk [vmem:[%s6820_s3 + $0x8] sm:$0xff] %vm3699_vm8, %v3684_v7  ;;  %3708 = vst.msk [vmem:[%s6820_s3 + $0x40] sm:$0xff] %vm3699_vm8, %v3691_v33 }
 0x2ed   :  { %v3651_v12 = vpop.permute.xlu0 %3650  ;;  %v3540_v3 = vpop.permute.xlu1 %3539 }
 0x2ee   :  { %v3692_v21 = vsel %vm3505_vm7, %v3651_v12, %v3596_v42  ;;  %v3593_v14 = vsel %vm3506_vm6, %v3540_v3, -16.118095 }
 0x2ef   :  { %3709 = vst.msk [vmem:[%s6820_s3 + $0x48] sm:$0xff] %vm3699_vm8, %v3692_v21 }
 0x2f1   :  { %v3545_v23 = vpop.permute.xlu0 %3544  ;;  %v3580_v34 = vpop.permute.xlu1 %3579 }
 0x2f2   :  { %v3594_v54 = vsel %vm3506_vm6, %v3545_v23, -16.118095  ;;  %v3601_v63 = vsel %vm3506_vm6, %v3580_v34, -16.118095 }
 0x2f5   :  { %v3585_v15 = vpop.permute.xlu0 %3584  ;;  %v3530_v8 = vpop.permute.xlu1 %3529 }
 0x2f6   :  { %v3591_v46 = vsel %vm3506_vm6, %v3530_v8, -16.118095  ;;  %v3602_v17 = vsel %vm3506_vm6, %v3585_v15, -16.118095 }
 0x2f9   :  { %v3535_v56 = vpop.permute.xlu0 %3534  ;;  %v3570_v52 = vpop.permute.xlu1 %3569 }
 0x2fa   :  { %v3592_v6 = vsel %vm3506_vm6, %v3535_v56, -16.118095  ;;  %v3599_v47 = vsel %vm3506_vm6, %v3570_v52, -16.118095 }
 0x2fd   :  { %v3575_v28 = vpop.permute.xlu0 %3574  ;;  %v3636_v50 = vpop.permute.xlu1 %3635 }
 0x2fe   :  { %v3689_v13 = vsel %vm3505_vm7, %v3636_v50, %v3593_v14  ;;  %v3600_v55 = vsel %vm3506_vm6, %v3575_v28, -16.118095 }
 0x2ff   :  { %3706 = vst.msk [vmem:[%s6820_s3 + $0x30] sm:$0xff] %vm3699_vm8, %v3689_v13 }
 0x301   :  { %v3641_v41 = vpop.permute.xlu0 %3640  ;;  %v3626_v32 = vpop.permute.xlu1 %3625 }
 0x302   :  { %v3690_v48 = vsel %vm3505_vm7, %v3641_v41, %v3594_v54  ;;  %v3687_v29 = vsel %vm3505_vm7, %v3626_v32, %v3591_v46 }
 0x303   :  { %3707 = vst.msk [vmem:[%s6820_s3 + $0x38] sm:$0xff] %vm3699_vm8, %v3690_v48  ;;  %3704 = vst.msk [vmem:[%s6820_s3 + $0x20] sm:$0xff] %vm3699_vm8, %v3687_v29 }
 0x305   :  { %v3631_v22 = vpop.permute.xlu0 %3630  ;;  %v3666_v53 = vpop.permute.xlu1 %3665 }
 0x306   :  { %v3688_v49 = vsel %vm3505_vm7, %v3631_v22, %v3592_v6  ;;  %v3695_v20 = vsel %vm3505_vm7, %v3666_v53, %v3599_v47 }
 0x307   :  { %3705 = vst.msk [vmem:[%s6820_s3 + $0x28] sm:$0xff] %vm3699_vm8, %v3688_v49  ;;  %3712 = vst.msk [vmem:[%s6820_s3 + $0x60] sm:$0xff] %vm3699_vm8, %v3695_v20 }
 0x309   :  { %v3671_v43 = vpop.permute.xlu0 %3670  ;;  %v3676_v1 = vpop.permute.xlu1 %3675 }
 0x30a   :  { %v3696_v61 = vsel %vm3505_vm7, %v3671_v43, %v3600_v55  ;;  %v3697_v30 = vsel %vm3505_vm7, %v3676_v1, %v3601_v63 }
 0x30b   :  { %3713 = vst.msk [vmem:[%s6820_s3 + $0x68] sm:$0xff] %vm3699_vm8, %v3696_v61  ;;  %3714 = vst.msk [vmem:[%s6820_s3 + $0x70] sm:$0xff] %vm3699_vm8, %v3697_v30 }
 0x30d   :  { %v3681_v11 = vpop.permute.xlu0 %3680 }
 0x30e   :  { %v3698_v10 = vsel %vm3505_vm7, %v3681_v11, %v3602_v17 }
 0x30f   :  { %3715 = vst.msk [vmem:[%s6820_s3 + $0x78] sm:$0xff] %vm3699_vm8, %v3698_v10 }

</bundles_post_ra>
